<compile_context>
chip_gen: v7x
topology: tpu7x:2x2x1
jax: 0.10.0
libtpu: 0.0.40
codegen_flags: <defaults>
</compile_context>

<pallas_src>
import math

import jax
import jax.numpy as jnp
import numpy as np
from jax import lax
from jax.experimental import pallas as pl
from jax.experimental.pallas import tpu as pltpu


def diffs6_kernel(h_ref, w_in_ref, convw_ref, convb_ref, wxp_ref,
                  dtb1_ref, dtb2_ref, a1_ref, a2_ref, dd_ref, wout_ref,
                  out_ref,
                  h1_sc, h2_sc, xs_sc, dl1_sc, dl2_sc, du1_sc, du2_sc,
                  bc_sc, yd_sc):
    T = out_ref.shape[1]                     # time-chunk length
    d_inner = a1_ref.shape[1]
    n = a1_ref.shape[0]                      # d_state
    K = convw_ref.shape[0]                   # d_conv
    c = pl.program_id(1)                     # chunk index within the sequence

    def silu(v):
        return v / (1.0 + jnp.exp(-v))

    def softplus(v):
        return jnp.maximum(v, 0.0) + jnp.log(1.0 + jnp.exp(-jnp.abs(v)))

    # ---- reset carried state at the start of each batch element ----
    @pl.when(c == 0)
    def _init():
        h1_sc[...] = jnp.zeros_like(h1_sc)
        h2_sc[...] = jnp.zeros_like(h2_sc)
        xs_sc[0:8, :] = jnp.zeros((8, d_inner), jnp.float32)

    # ---- fused in_proj: one bf16 MXU matmul, x|z split at a lane boundary ----
    xz = jnp.dot(h_ref[0], w_in_ref[...],
                 preferred_element_type=jnp.float32)            # (T, 2*d_inner)
    x = xz[:, :d_inner]
    z = xz[:, d_inner:]

    # ---- causal depthwise conv via sublane-aligned staging scratch ----
    # rows [8, 8+T): current chunk's x ; rows [8-(K-1), 8): carried tail.
    t0 = 8 - (K - 1)
    xs_sc[8:8 + T, :] = x
    x_conv = xs_sc[t0:t0 + T, :] * convw_ref[0:1, :]
    for k in range(1, K):                                       # K shifted VPU FMAs
        x_conv = x_conv + xs_sc[t0 + k:t0 + k + T, :] * convw_ref[k:k + 1, :]
    x_conv = x_conv + convb_ref[...]
    if K > 1:                                                   # carry last K-1 rows
        xs_sc[t0:8, :] = xs_sc[T + t0:T + 8, :]
    x_act = silu(x_conv)
    z_silu = silu(z)

    # ---- fused x_proj (dt_proj folded in) for BOTH branches: one bf16 matmul ----
    # columns: [dt1 (d_inner) | dt2 (d_inner) | B1 | C1 | B2 | C2]  (each n wide)
    xp = jnp.dot(x_act.astype(jnp.bfloat16), wxp_ref[...],
                 preferred_element_type=jnp.float32)            # (T, 2*d_inner + 4n)

    dl1 = softplus(xp[:, :d_inner] + dtb1_ref[...])             # delta, branch 1
    dl2 = softplus(xp[:, d_inner:2 * d_inner] + dtb2_ref[...])  # delta, branch 2
    dl1_sc[...] = dl1
    dl2_sc[...] = dl2
    du1_sc[...] = dl1 * x_act                                   # delta * u
    du2_sc[...] = dl2 * x_act
    o = 2 * d_inner
    # B/C relayout (lanes -> sublanes) done once per chunk, in bulk.
    bc_sc[...] = xp[:, o:o + 4 * n][:, :, None]                 # (T, 4n, 1)

    # ---- interleaved dual selective scan over the chunk ----
    # Both branch recurrences stepped together (2x ILP on the serial VPU chain);
    # dA / dB*u / C.h computed per step, no (T, n, d) scratch at all.
    if T % 4 == 0:
        U = 4
    elif T % 2 == 0:
        U = 2
    else:
        U = 1

    def step(i, carry):
        h1, h2 = carry
        for u in range(U):                                      # modest manual unroll
            t = i * U + u
            dl1_t = dl1_sc[pl.ds(t, 1)]                         # (1, d)
            dl2_t = dl2_sc[pl.ds(t, 1)]
            dA1 = jnp.exp(dl1_t * a1_ref[...])                  # (n, d), EUP
            dA2 = jnp.exp(dl2_t * a2_ref[...])
            bc_t = bc_sc[t]                                     # (4n, 1)
            h1 = dA1 * h1 + bc_t[0:n] * du1_sc[pl.ds(t, 1)]     # dB*u in-step
            h2 = dA2 * h2 + bc_t[2 * n:3 * n] * du2_sc[pl.ds(t, 1)]
            # y1[t] - y2[t] via a single sublane reduce (XLU, overlaps the VPU chain)
            yd_sc[pl.ds(t, 1)] = jnp.sum(
                bc_t[n:2 * n] * h1 - bc_t[3 * n:4 * n] * h2,
                axis=0, keepdims=True)
        return (h1, h2)

    h1f, h2f = lax.fori_loop(0, T // U, step, (h1_sc[...], h2_sc[...]))
    h1_sc[...] = h1f                                            # carry to next chunk
    h2_sc[...] = h2f

    # ---- skip (D) term, gating, out_proj ----
    y = (yd_sc[...] + x_act * dd_ref[...]) * z_silu
    out_ref[0] = jnp.dot(y.astype(jnp.bfloat16), wout_ref[...],
                         preferred_element_type=jnp.float32).astype(out_ref.dtype)


def _pick_chunk(L, cap=128):
    if L <= cap:
        return L
    best = None
    for c in range(cap, 0, -1):
        if L % c == 0:
            if c % 8 == 0:
                return c
            if best is None:
                best = c
    # Fallback: single full-sequence chunk.  Only (chunk, d_inner) scratches
    # scale with it now (no (T, n, d) tensors), so this stays VMEM-safe for
    # any realistic L; prefer padding L upstream for very long sequences.
    return best if best is not None else L


def diffs6_forward(hidden, params, chunk=None, single_buffer_weights=True):
    """hidden: (B, L, d_model) float32 -> (B, L, d_model) float32."""
    B, L, d_model = hidden.shape
    d_inner = params['D1'].shape[0]
    d_state = params['A1_log'].shape[1]
    d_conv = params['conv_w'].shape[-1]
    dt_rank = params['dt1_proj_w'].shape[1]
    f32, bf16 = jnp.float32, jnp.bfloat16

    if chunk is None:
        chunk = _pick_chunk(L)
    assert L % chunk == 0, "sequence length must be divisible by the time chunk"
    n_chunks = L // chunk
    r, n = dt_rank, d_state

    # ---- parameter preprocessing (plain JAX glue, done once) ----
    w_in = params['in_proj_w'].T.astype(bf16)                   # (d_model, 2*d_inner)
    convw = params['conv_w'][:, 0, :].T.astype(f32)             # (d_conv, d_inner)
    convb = params['conv_b'][None, :].astype(f32)               # (1, d_inner)

    def fold_dt(i):
        # x_proj(dt rows) followed by dt_proj is linear -> fold offline so the
        # dt segment of the fused matmul is d_inner wide and lane-aligned.
        return params[f'x{i}_proj_w'][:r, :].T @ params[f'dt{i}_proj_w'].T

    wb1 = params['x1_proj_w'][r:r + n, :].T
    wc1 = params['x1_proj_w'][r + n:, :].T
    wb2 = params['x2_proj_w'][r:r + n, :].T
    wc2 = params['x2_proj_w'][r + n:, :].T
    wxp = jnp.concatenate([fold_dt(1), fold_dt(2), wb1, wc1, wb2, wc2],
                          axis=1).astype(bf16)                  # (d_inner, 2*d_inner+4n)

    dtb1 = params['dt1_proj_b'][None, :].astype(f32)
    dtb2 = params['dt2_proj_b'][None, :].astype(f32)
    a1 = (-jnp.exp(params['A1_log'])).T.astype(f32)             # (d_state, d_inner)
    a2 = (-jnp.exp(params['A2_log'])).T.astype(f32)
    dd = (params['D1'] - params['D2'])[None, :].astype(f32)     # fused skip term
    wout = params['out_proj_w'].T.astype(bf16)                  # (d_inner, d_model)

    inputs = [hidden.astype(bf16),                              # bf16 activation stream
              w_in, convw, convb, wxp, dtb1, dtb2, a1, a2, dd, wout]

    def const_spec(a):
        idx = lambda b, c, _nd=a.ndim: (0,) * _nd
        if single_buffer_weights:
            # constant index_map -> no need to double-buffer the weights
            return pl.BlockSpec(a.shape, idx, pipeline_mode=pl.Buffered(1))
        return pl.BlockSpec(a.shape, idx)

    in_specs = [pl.BlockSpec((1, chunk, d_model), lambda b, c: (b, c, 0))]
    in_specs += [const_spec(a) for a in inputs[1:]]

    scratch_shapes = [
        pltpu.VMEM((d_state, d_inner), f32),       # h state, branch 1 (carried)
        pltpu.VMEM((d_state, d_inner), f32),       # h state, branch 2 (carried)
        pltpu.VMEM((chunk + 8, d_inner), f32),     # conv staging + carried tail
        pltpu.VMEM((chunk, d_inner), f32),         # delta, branch 1
        pltpu.VMEM((chunk, d_inner), f32),         # delta, branch 2
        pltpu.VMEM((chunk, d_inner), f32),         # delta*u, branch 1
        pltpu.VMEM((chunk, d_inner), f32),         # delta*u, branch 2
        pltpu.VMEM((chunk, 4 * d_state, 1), f32),  # [B1|C1|B2|C2] as sublane columns
        pltpu.VMEM((chunk, d_inner), f32),         # per-chunk scan output y1-y2
    ]

    # Derive the scoped-VMEM limit from the actual footprint; cap at the
    # smallest per-core VMEM across generations (v7x: 64 MiB).
    def nbytes(a):
        return int(np.prod(a.shape)) * a.dtype.itemsize
    weight_b = sum(nbytes(a) for a in inputs[1:])
    block_b = 2 * (chunk * d_model * 2) + 2 * (chunk * d_model * 4)
    scratch_b = 4 * (2 * d_state * d_inner
                     + (chunk + 8) * d_inner
                     + 5 * chunk * d_inner
                     + chunk * 4 * d_state * 128)
    vmem_limit = int(min(max(2 * (weight_b + block_b + scratch_b) + (8 << 20),
                             32 << 20), 64 << 20))

    grid_spec = pltpu.PrefetchScalarGridSpec(
        num_scalar_prefetch=0,
        grid=(B, n_chunks),
        in_specs=in_specs,
        out_specs=pl.BlockSpec((1, chunk, d_model), lambda b, c: (b, c, 0)),
        scratch_shapes=scratch_shapes,
    )

    return pl.pallas_call(
        diffs6_kernel,
        out_shape=jax.ShapeDtypeStruct((B, L, d_model), f32),
        grid_spec=grid_spec,
        compiler_params=pltpu.CompilerParams(
            dimension_semantics=("parallel", "arbitrary"),
            vmem_limit_bytes=vmem_limit),
    )(*inputs)


def diffs6_reference(hidden, params):
    """Pure-JAX reference mirroring the PyTorch forward (for validation)."""
    d_inner = params['D1'].shape[0]
    d_state = params['A1_log'].shape[1]
    d_conv = params['conv_w'].shape[-1]
    dt_rank = params['dt1_proj_w'].shape[1]
    B, L, _ = hidden.shape

    xz = hidden @ params['in_proj_w'].T
    x, z = xz[..., :d_inner], xz[..., d_inner:]

    w = params['conv_w'][:, 0, :]                            # (d_inner, d_conv)
    xp = jnp.pad(x, ((0, 0), (d_conv - 1, 0), (0, 0)))
    x_conv = sum(xp[:, k:k + L, :] * w[:, k][None, None, :] for k in range(d_conv))
    x_conv = x_conv + params['conv_b'][None, None, :]
    x_act = jax.nn.silu(x_conv)
    z_silu = jax.nn.silu(z)

    def branch(i):
        x_dbl = x_act @ params[f'x{i}_proj_w'].T
        dt = x_dbl[..., :dt_rank] @ params[f'dt{i}_proj_w'].T
        Bm = x_dbl[..., dt_rank:dt_rank + d_state]
        Cm = x_dbl[..., dt_rank + d_state:]
        delta = jax.nn.softplus(dt + params[f'dt{i}_proj_b'])
        A = -jnp.exp(params[f'A{i}_log'])                    # (d_inner, d_state)
        dA = jnp.exp(delta[..., None] * A)                   # (B,L,d_inner,d_state)
        dBu = delta[..., None] * Bm[:, :, None, :] * x_act[..., None]

        def step(h, inp):
            dA_t, dBu_t, C_t = inp
            h = dA_t * h + dBu_t
            y = jnp.einsum('bdn,bn->bd', h, C_t)
            return h, y

        h0 = jnp.zeros((B, d_inner, d_state), jnp.float32)
        _, ys = lax.scan(step, h0, (jnp.swapaxes(dA, 0, 1),
                                    jnp.swapaxes(dBu, 0, 1),
                                    jnp.swapaxes(Cm, 0, 1)))
        y = jnp.swapaxes(ys, 0, 1) + x_act * params[f'D{i}']
        return y * z_silu

    y = branch(1) - branch(2)
    return y @ params['out_proj_w'].T


if __name__ == "__main__":
    d_model, d_state, d_conv, expand = 32, 16, 4, 2
    B, L = 2, 16                                 # L=16 with chunk=8 exercises carried state
    d_inner = expand * d_model                   # 64
    dt_rank = math.ceil(d_model / 16)            # 2
    dt_min, dt_max, dt_init_floor = 0.001, 0.1, 1e-4

    key = jax.random.PRNGKey(0)
    ks = jax.random.split(key, 14)

    def linear_w(k, out_f, in_f):
        bound = 1.0 / math.sqrt(in_f)
        return jax.random.uniform(k, (out_f, in_f), jnp.float32, -bound, bound)

    params = {}
    params['in_proj_w'] = linear_w(ks[0], 2 * d_inner, d_model)
    cb = 1.0 / math.sqrt(d_conv)
    params['conv_w'] = jax.random.uniform(ks[1], (d_inner, 1, d_conv), jnp.float32, -cb, cb)
    params['conv_b'] = jax.random.uniform(ks[2], (d_inner,), jnp.float32, -cb, cb)
    params['x1_proj_w'] = linear_w(ks[3], dt_rank + 2 * d_state, d_inner)
    params['x2_proj_w'] = linear_w(ks[4], dt_rank + 2 * d_state, d_inner)
    dt_std = dt_rank ** -0.5
    params['dt1_proj_w'] = jax.random.uniform(ks[5], (d_inner, dt_rank), jnp.float32, -dt_std, dt_std)
    params['dt2_proj_w'] = jax.random.uniform(ks[6], (d_inner, dt_rank), jnp.float32, -dt_std, dt_std)

    def dt_bias(k):
        dt = jnp.exp(jax.random.uniform(k, (d_inner,), jnp.float32)
                     * (math.log(dt_max) - math.log(dt_min)) + math.log(dt_min))
        dt = jnp.maximum(dt, dt_init_floor)
        return dt + jnp.log(-jnp.expm1(-dt))

    params['dt1_proj_b'] = dt_bias(ks[7])
    params['dt2_proj_b'] = dt_bias(ks[8])
    A = jnp.tile(jnp.arange(1, d_state + 1, dtype=jnp.float32)[None, :], (d_inner, 1))
    params['A1_log'] = jnp.log(A)
    params['A2_log'] = jnp.log(A)
    # Module inits D to ones; perturb slightly so the D-skip path is actually
    # exercised by the numerical check (D1 - D2 != 0 for generic parameters).
    params['D1'] = 1.0 + 0.05 * jax.random.normal(ks[9], (d_inner,), jnp.float32)
    params['D2'] = 1.0 + 0.05 * jax.random.normal(ks[10], (d_inner,), jnp.float32)
    params['out_proj_w'] = linear_w(ks[11], d_model, d_inner)

    hidden = jax.random.normal(ks[12], (B, L, d_model), jnp.float32)

    try:
        out = diffs6_forward(hidden, params, chunk=8)
    except Exception:
        # pl.Buffered(1) single-buffering of the constant weights is purely a
        # VMEM optimization; fall back to default double-buffering if the
        # installed Pallas rejects the pipeline_mode hint.
        out = diffs6_forward(hidden, params, chunk=8, single_buffer_weights=False)
    out = jax.block_until_ready(out)

    ref = diffs6_reference(hidden, params)
    np.testing.assert_allclose(np.asarray(out), np.asarray(ref), rtol=2e-2, atol=2e-2)

    print("KERNEL_OK")
</pallas_src>

<mosaic_0001>
module attributes {stable_mosaic.version = 11 : i64} {
  func.func @diffs6_kernel(%arg0: i32, %arg1: i32, %arg2: memref<1x8x32xbf16, #tpu.memory_space<vmem>>, %arg3: memref<32x128xbf16, #tpu.memory_space<vmem>>, %arg4: memref<4x64xf32, #tpu.memory_space<vmem>>, %arg5: memref<1x64xf32, #tpu.memory_space<vmem>>, %arg6: memref<64x192xbf16, #tpu.memory_space<vmem>>, %arg7: memref<1x64xf32, #tpu.memory_space<vmem>>, %arg8: memref<1x64xf32, #tpu.memory_space<vmem>>, %arg9: memref<16x64xf32, #tpu.memory_space<vmem>>, %arg10: memref<16x64xf32, #tpu.memory_space<vmem>>, %arg11: memref<1x64xf32, #tpu.memory_space<vmem>>, %arg12: memref<64x32xbf16, #tpu.memory_space<vmem>>, %arg13: memref<1x8x32xf32, #tpu.memory_space<vmem>>, %arg14: memref<16x64xf32, #tpu.memory_space<vmem>>, %arg15: memref<16x64xf32, #tpu.memory_space<vmem>>, %arg16: memref<16x64xf32, #tpu.memory_space<vmem>>, %arg17: memref<8x64xf32, #tpu.memory_space<vmem>>, %arg18: memref<8x64xf32, #tpu.memory_space<vmem>>, %arg19: memref<8x64xf32, #tpu.memory_space<vmem>>, %arg20: memref<8x64xf32, #tpu.memory_space<vmem>>, %arg21: memref<8x64x1xf32, #tpu.memory_space<vmem>>, %arg22: memref<8x64xf32, #tpu.memory_space<vmem>>) attributes {dimension_semantics = [#tpu.dimension_semantics<parallel>, #tpu.dimension_semantics<arbitrary>], iteration_bounds = array<i64: 2, 2>, scalar_prefetch = 0 : i64, scratch_operands = 9 : i64, tpu.core_type = #tpu.core_type<tc>, window_params = [{transform_indices = @transform_0, window_bounds = array<i64: 1, 8, 32>}, {pipeline_mode = #tpu.pipeline_mode<synchronous>, transform_indices = @transform_1, window_bounds = array<i64: 32, 128>}, {pipeline_mode = #tpu.pipeline_mode<synchronous>, transform_indices = @transform_2, window_bounds = array<i64: 4, 64>}, {pipeline_mode = #tpu.pipeline_mode<synchronous>, transform_indices = @transform_3, window_bounds = array<i64: 1, 64>}, {pipeline_mode = #tpu.pipeline_mode<synchronous>, transform_indices = @transform_4, window_bounds = array<i64: 64, 192>}, {pipeline_mode = #tpu.pipeline_mode<synchronous>, transform_indices = @transform_5, window_bounds = array<i64: 1, 64>}, {pipeline_mode = #tpu.pipeline_mode<synchronous>, transform_indices = @transform_6, window_bounds = array<i64: 1, 64>}, {pipeline_mode = #tpu.pipeline_mode<synchronous>, transform_indices = @transform_7, window_bounds = array<i64: 16, 64>}, {pipeline_mode = #tpu.pipeline_mode<synchronous>, transform_indices = @transform_8, window_bounds = array<i64: 16, 64>}, {pipeline_mode = #tpu.pipeline_mode<synchronous>, transform_indices = @transform_9, window_bounds = array<i64: 1, 64>}, {pipeline_mode = #tpu.pipeline_mode<synchronous>, transform_indices = @transform_10, window_bounds = array<i64: 64, 32>}, {transform_indices = @transform_11, window_bounds = array<i64: 1, 8, 32>}]} {
    %c0_i32 = arith.constant 0 : i32
    %0 = arith.cmpi eq, %arg1, %c0_i32 : i32
    %1 = arith.extui %0 : i1 to i32
    %c0_i32_0 = arith.constant 0 : i32
    %2 = arith.cmpi ne, %1, %c0_i32_0 : i32
    scf.if %2 {
      %cst_69 = arith.constant 0.000000e+00 : f32
      %104 = vector.broadcast %cst_69 : f32 to vector<16x64xf32>
      %c0_70 = arith.constant 0 : index
      %c0_71 = arith.constant 0 : index
      %105 = vector.load %arg14[%c0_70, %c0_71] : memref<16x64xf32, #tpu.memory_space<vmem>>, vector<16x64xf32>
      tpu.vector_store %arg14[%c0_70, %c0_71], %104 {strides = array<i32>} : memref<16x64xf32, #tpu.memory_space<vmem>>, vector<16x64xf32>,
      %cst_72 = arith.constant 0.000000e+00 : f32
      %106 = vector.broadcast %cst_72 : f32 to vector<16x64xf32>
      %c0_73 = arith.constant 0 : index
      %c0_74 = arith.constant 0 : index
      %107 = vector.load %arg15[%c0_73, %c0_74] : memref<16x64xf32, #tpu.memory_space<vmem>>, vector<16x64xf32>
      tpu.vector_store %arg15[%c0_73, %c0_74], %106 {strides = array<i32>} : memref<16x64xf32, #tpu.memory_space<vmem>>, vector<16x64xf32>,
      %cst_75 = arith.constant 0.000000e+00 : f32
      %108 = vector.broadcast %cst_75 : f32 to vector<8x64xf32>
      %c0_76 = arith.constant 0 : index
      %c0_77 = arith.constant 0 : index
      %109 = vector.load %arg16[%c0_76, %c0_77] : memref<16x64xf32, #tpu.memory_space<vmem>>, vector<8x64xf32>
      tpu.vector_store %arg16[%c0_76, %c0_77], %108 {strides = array<i32>} : memref<16x64xf32, #tpu.memory_space<vmem>>, vector<8x64xf32>,
    } else {
    }
    %c0 = arith.constant 0 : index
    %c0_1 = arith.constant 0 : index
    %c0_2 = arith.constant 0 : index
    %3 = vector.load %arg2[%c0, %c0_1, %c0_2] : memref<1x8x32xbf16, #tpu.memory_space<vmem>>, vector<1x8x32xbf16>
    %4 = vector.shape_cast %3 : vector<1x8x32xbf16> to vector<8x32xbf16>
    %c0_3 = arith.constant 0 : index
    %c0_4 = arith.constant 0 : index
    %5 = vector.load %arg3[%c0_3, %c0_4] : memref<32x128xbf16, #tpu.memory_space<vmem>>, vector<32x128xbf16>
    %cst = arith.constant dense<0.000000e+00> : vector<8x128xf32>
    %6 = tpu.matmul %4, %5, %cst {dimension_numbers = #tpu.dot_dimension_numbers<[1], [0], [0], [1], [0, 0, 1, 1], [], []>} : vector<8x32xbf16>, vector<32x128xbf16>, vector<8x128xf32> -> vector<8x128xf32>
    %7 = vector.extract_strided_slice %6 {offsets = [0, 0], sizes = [8, 64], strides = [1, 1]} : vector<8x128xf32> to vector<8x64xf32>
    %8 = vector.extract_strided_slice %6 {offsets = [0, 64], sizes = [8, 64], strides = [1, 1]} : vector<8x128xf32> to vector<8x64xf32>
    %c8 = arith.constant 8 : index
    %c0_5 = arith.constant 0 : index
    %9 = vector.load %arg16[%c8, %c0_5] : memref<16x64xf32, #tpu.memory_space<vmem>>, vector<8x64xf32>
    tpu.vector_store %arg16[%c8, %c0_5], %7 {strides = array<i32>} : memref<16x64xf32, #tpu.memory_space<vmem>>, vector<8x64xf32>,
    %c5 = arith.constant 5 : index
    %c0_6 = arith.constant 0 : index
    %10 = vector.load %arg16[%c5, %c0_6] : memref<16x64xf32, #tpu.memory_space<vmem>>, vector<8x64xf32>
    %c0_7 = arith.constant 0 : index
    %c0_8 = arith.constant 0 : index
    %11 = vector.load %arg4[%c0_7, %c0_8] : memref<4x64xf32, #tpu.memory_space<vmem>>, vector<1x64xf32>
    %12 = vector.broadcast %11 : vector<1x64xf32> to vector<8x64xf32>
    %13 = arith.mulf %10, %12 : vector<8x64xf32>
    %c6 = arith.constant 6 : index
    %c0_9 = arith.constant 0 : index
    %14 = vector.load %arg16[%c6, %c0_9] : memref<16x64xf32, #tpu.memory_space<vmem>>, vector<8x64xf32>
    %c1 = arith.constant 1 : index
    %c0_10 = arith.constant 0 : index
    %15 = vector.load %arg4[%c1, %c0_10] : memref<4x64xf32, #tpu.memory_space<vmem>>, vector<1x64xf32>
    %16 = vector.broadcast %15 : vector<1x64xf32> to vector<8x64xf32>
    %17 = arith.mulf %14, %16 : vector<8x64xf32>
    %18 = arith.addf %13, %17 : vector<8x64xf32>
    %c7 = arith.constant 7 : index
    %c0_11 = arith.constant 0 : index
    %19 = vector.load %arg16[%c7, %c0_11] : memref<16x64xf32, #tpu.memory_space<vmem>>, vector<8x64xf32>
    %c2 = arith.constant 2 : index
    %c0_12 = arith.constant 0 : index
    %20 = vector.load %arg4[%c2, %c0_12] : memref<4x64xf32, #tpu.memory_space<vmem>>, vector<1x64xf32>
    %21 = vector.broadcast %20 : vector<1x64xf32> to vector<8x64xf32>
    %22 = arith.mulf %19, %21 : vector<8x64xf32>
    %23 = arith.addf %18, %22 : vector<8x64xf32>
    %c8_13 = arith.constant 8 : index
    %c0_14 = arith.constant 0 : index
    %24 = vector.load %arg16[%c8_13, %c0_14] : memref<16x64xf32, #tpu.memory_space<vmem>>, vector<8x64xf32>
    %c3 = arith.constant 3 : index
    %c0_15 = arith.constant 0 : index
    %25 = vector.load %arg4[%c3, %c0_15] : memref<4x64xf32, #tpu.memory_space<vmem>>, vector<1x64xf32>
    %26 = vector.broadcast %25 : vector<1x64xf32> to vector<8x64xf32>
    %27 = arith.mulf %24, %26 : vector<8x64xf32>
    %28 = arith.addf %23, %27 : vector<8x64xf32>
    %c0_16 = arith.constant 0 : index
    %c0_17 = arith.constant 0 : index
    %29 = vector.load %arg5[%c0_16, %c0_17] : memref<1x64xf32, #tpu.memory_space<vmem>>, vector<1x64xf32>
    %30 = vector.broadcast %29 : vector<1x64xf32> to vector<8x64xf32>
    %31 = arith.addf %28, %30 : vector<8x64xf32>
    %c13 = arith.constant 13 : index
    %c0_18 = arith.constant 0 : index
    %32 = vector.load %arg16[%c13, %c0_18] : memref<16x64xf32, #tpu.memory_space<vmem>>, vector<3x64xf32>
    %c5_19 = arith.constant 5 : index
    %c0_20 = arith.constant 0 : index
    %33 = vector.load %arg16[%c5_19, %c0_20] : memref<16x64xf32, #tpu.memory_space<vmem>>, vector<3x64xf32>
    tpu.vector_store %arg16[%c5_19, %c0_20], %32 {strides = array<i32>} : memref<16x64xf32, #tpu.memory_space<vmem>>, vector<3x64xf32>,
    %cst_21 = arith.constant 0.000000e+00 : f32
    %34 = vector.broadcast %cst_21 : f32 to vector<8x64xf32>
    %35 = arith.subf %34, %31 : vector<8x64xf32>
    %36 = math.exp %35 : vector<8x64xf32>
    %cst_22 = arith.constant 1.000000e+00 : f32
    %37 = vector.broadcast %cst_22 : f32 to vector<8x64xf32>
    %38 = arith.addf %37, %36 : vector<8x64xf32>
    %39 = arith.divf %31, %38 : vector<8x64xf32>
    %cst_23 = arith.constant 0.000000e+00 : f32
    %40 = vector.broadcast %cst_23 : f32 to vector<8x64xf32>
    %41 = arith.subf %40, %8 : vector<8x64xf32>
    %42 = math.exp %41 : vector<8x64xf32>
    %cst_24 = arith.constant 1.000000e+00 : f32
    %43 = vector.broadcast %cst_24 : f32 to vector<8x64xf32>
    %44 = arith.addf %43, %42 : vector<8x64xf32>
    %45 = arith.divf %8, %44 : vector<8x64xf32>
    %46 = arith.truncf %39 : vector<8x64xf32> to vector<8x64xbf16>
    %c0_25 = arith.constant 0 : index
    %c0_26 = arith.constant 0 : index
    %47 = vector.load %arg6[%c0_25, %c0_26] : memref<64x192xbf16, #tpu.memory_space<vmem>>, vector<64x192xbf16>
    %cst_27 = arith.constant dense<0.000000e+00> : vector<8x192xf32>
    %48 = tpu.matmul %46, %47, %cst_27 {dimension_numbers = #tpu.dot_dimension_numbers<[1], [0], [0], [1], [0, 0, 1, 1], [], []>} : vector<8x64xbf16>, vector<64x192xbf16>, vector<8x192xf32> -> vector<8x192xf32>
    %49 = vector.extract_strided_slice %48 {offsets = [0, 0], sizes = [8, 64], strides = [1, 1]} : vector<8x192xf32> to vector<8x64xf32>
    %c0_28 = arith.constant 0 : index
    %c0_29 = arith.constant 0 : index
    %50 = vector.load %arg7[%c0_28, %c0_29] : memref<1x64xf32, #tpu.memory_space<vmem>>, vector<1x64xf32>
    %51 = vector.broadcast %50 : vector<1x64xf32> to vector<8x64xf32>
    %52 = arith.addf %49, %51 : vector<8x64xf32>
    %cst_30 = arith.constant 0.000000e+00 : f32
    %53 = vector.broadcast %cst_30 : f32 to vector<8x64xf32>
    %54 = arith.maximumf %52, %53 : vector<8x64xf32>
    %55 = math.absf %52 : vector<8x64xf32>
    %cst_31 = arith.constant 0.000000e+00 : f32
    %56 = vector.broadcast %cst_31 : f32 to vector<8x64xf32>
    %57 = arith.subf %56, %55 : vector<8x64xf32>
    %58 = math.exp %57 : vector<8x64xf32>
    %cst_32 = arith.constant 1.000000e+00 : f32
    %59 = vector.broadcast %cst_32 : f32 to vector<8x64xf32>
    %60 = arith.addf %59, %58 : vector<8x64xf32>
    %61 = math.log %60 : vector<8x64xf32>
    %62 = arith.addf %54, %61 : vector<8x64xf32>
    %63 = vector.extract_strided_slice %48 {offsets = [0, 64], sizes = [8, 64], strides = [1, 1]} : vector<8x192xf32> to vector<8x64xf32>
    %c0_33 = arith.constant 0 : index
    %c0_34 = arith.constant 0 : index
    %64 = vector.load %arg8[%c0_33, %c0_34] : memref<1x64xf32, #tpu.memory_space<vmem>>, vector<1x64xf32>
    %65 = vector.broadcast %64 : vector<1x64xf32> to vector<8x64xf32>
    %66 = arith.addf %63, %65 : vector<8x64xf32>
    %cst_35 = arith.constant 0.000000e+00 : f32
    %67 = vector.broadcast %cst_35 : f32 to vector<8x64xf32>
    %68 = arith.maximumf %66, %67 : vector<8x64xf32>
    %69 = math.absf %66 : vector<8x64xf32>
    %cst_36 = arith.constant 0.000000e+00 : f32
    %70 = vector.broadcast %cst_36 : f32 to vector<8x64xf32>
    %71 = arith.subf %70, %69 : vector<8x64xf32>
    %72 = math.exp %71 : vector<8x64xf32>
    %cst_37 = arith.constant 1.000000e+00 : f32
    %73 = vector.broadcast %cst_37 : f32 to vector<8x64xf32>
    %74 = arith.addf %73, %72 : vector<8x64xf32>
    %75 = math.log %74 : vector<8x64xf32>
    %76 = arith.addf %68, %75 : vector<8x64xf32>
    %c0_38 = arith.constant 0 : index
    %c0_39 = arith.constant 0 : index
    %77 = vector.load %arg17[%c0_38, %c0_39] : memref<8x64xf32, #tpu.memory_space<vmem>>, vector<8x64xf32>
    tpu.vector_store %arg17[%c0_38, %c0_39], %62 {strides = array<i32>} : memref<8x64xf32, #tpu.memory_space<vmem>>, vector<8x64xf32>,
    %c0_40 = arith.constant 0 : index
    %c0_41 = arith.constant 0 : index
    %78 = vector.load %arg18[%c0_40, %c0_41] : memref<8x64xf32, #tpu.memory_space<vmem>>, vector<8x64xf32>
    tpu.vector_store %arg18[%c0_40, %c0_41], %76 {strides = array<i32>} : memref<8x64xf32, #tpu.memory_space<vmem>>, vector<8x64xf32>,
    %79 = arith.mulf %62, %39 : vector<8x64xf32>
    %c0_42 = arith.constant 0 : index
    %c0_43 = arith.constant 0 : index
    %80 = vector.load %arg19[%c0_42, %c0_43] : memref<8x64xf32, #tpu.memory_space<vmem>>, vector<8x64xf32>
    tpu.vector_store %arg19[%c0_42, %c0_43], %79 {strides = array<i32>} : memref<8x64xf32, #tpu.memory_space<vmem>>, vector<8x64xf32>,
    %81 = arith.mulf %76, %39 : vector<8x64xf32>
    %c0_44 = arith.constant 0 : index
    %c0_45 = arith.constant 0 : index
    %82 = vector.load %arg20[%c0_44, %c0_45] : memref<8x64xf32, #tpu.memory_space<vmem>>, vector<8x64xf32>
    tpu.vector_store %arg20[%c0_44, %c0_45], %81 {strides = array<i32>} : memref<8x64xf32, #tpu.memory_space<vmem>>, vector<8x64xf32>,
    %83 = vector.extract_strided_slice %48 {offsets = [0, 128], sizes = [8, 64], strides = [1, 1]} : vector<8x192xf32> to vector<8x64xf32>
    %84 = vector.shape_cast %83 : vector<8x64xf32> to vector<8x64x1xf32>
    %c0_46 = arith.constant 0 : index
    %c0_47 = arith.constant 0 : index
    %c0_48 = arith.constant 0 : index
    %85 = vector.load %arg21[%c0_46, %c0_47, %c0_48] : memref<8x64x1xf32, #tpu.memory_space<vmem>>, vector<8x64x1xf32>
    tpu.vector_store %arg21[%c0_46, %c0_47, %c0_48], %84 {strides = array<i32>} : memref<8x64x1xf32, #tpu.memory_space<vmem>>, vector<8x64x1xf32>,
    %c0_49 = arith.constant 0 : index
    %c0_50 = arith.constant 0 : index
    %86 = vector.load %arg14[%c0_49, %c0_50] : memref<16x64xf32, #tpu.memory_space<vmem>>, vector<16x64xf32>
    %c0_51 = arith.constant 0 : index
    %c0_52 = arith.constant 0 : index
    %87 = vector.load %arg15[%c0_51, %c0_52] : memref<16x64xf32, #tpu.memory_space<vmem>>, vector<16x64xf32>
    %c0_i32_53 = arith.constant 0 : i32
    %c2_i32 = arith.constant 2 : i32
    %88 = arith.addi %c0_i32_53, %c2_i32 : i32
    %c1_i32 = arith.constant 1 : i32
    %89:2 = scf.for %arg23 = %c0_i32_53 to %88 step %c1_i32 iter_args(%arg24 = %86, %arg25 = %87) -> (vector<16x64xf32>, vector<16x64xf32>)  : i32 {
      %c4_i32 = arith.constant 4 : i32
      %104 = arith.muli %arg23, %c4_i32 : i32
      %c0_i32_69 = arith.constant 0 : i32
      %105 = arith.addi %104, %c0_i32_69 : i32
      %106 = arith.index_cast %105 : i32 to index
      %c0_70 = arith.constant 0 : index
      %107 = vector.load %arg17[%106, %c0_70] : memref<8x64xf32, #tpu.memory_space<vmem>>, vector<1x64xf32>
      %108 = arith.index_cast %105 : i32 to index
      %c0_71 = arith.constant 0 : index
      %109 = vector.load %arg18[%108, %c0_71] : memref<8x64xf32, #tpu.memory_space<vmem>>, vector<1x64xf32>
      %c0_72 = arith.constant 0 : index
      %c0_73 = arith.constant 0 : index
      %110 = vector.load %arg9[%c0_72, %c0_73] : memref<16x64xf32, #tpu.memory_space<vmem>>, vector<16x64xf32>
      %111 = vector.broadcast %107 : vector<1x64xf32> to vector<16x64xf32>
      %112 = arith.mulf %111, %110 : vector<16x64xf32>
      %113 = math.exp %112 : vector<16x64xf32>
      %c0_74 = arith.constant 0 : index
      %c0_75 = arith.constant 0 : index
      %114 = vector.load %arg10[%c0_74, %c0_75] : memref<16x64xf32, #tpu.memory_space<vmem>>, vector<16x64xf32>
      %115 = vector.broadcast %109 : vector<1x64xf32> to vector<16x64xf32>
      %116 = arith.mulf %115, %114 : vector<16x64xf32>
      %117 = math.exp %116 : vector<16x64xf32>
      %118 = arith.index_cast %105 : i32 to index
      %c0_76 = arith.constant 0 : index
      %c0_77 = arith.constant 0 : index
      %119 = vector.load %arg21[%118, %c0_76, %c0_77] : memref<8x64x1xf32, #tpu.memory_space<vmem>>, vector<1x64x1xf32>
      %120 = vector.shape_cast %119 : vector<1x64x1xf32> to vector<64x1xf32>
      %121 = arith.mulf %113, %arg24 : vector<16x64xf32>
      %122 = vector.extract_strided_slice %120 {offsets = [0, 0], sizes = [16, 1], strides = [1, 1]} : vector<64x1xf32> to vector<16x1xf32>
      %123 = arith.index_cast %105 : i32 to index
      %c0_78 = arith.constant 0 : index
      %124 = vector.load %arg19[%123, %c0_78] : memref<8x64xf32, #tpu.memory_space<vmem>>, vector<1x64xf32>
      %125 = vector.broadcast %122 : vector<16x1xf32> to vector<16x64xf32>
      %126 = vector.broadcast %124 : vector<1x64xf32> to vector<16x64xf32>
      %127 = arith.mulf %125, %126 : vector<16x64xf32>
      %128 = arith.addf %121, %127 : vector<16x64xf32>
      %129 = arith.mulf %117, %arg25 : vector<16x64xf32>
      %130 = vector.extract_strided_slice %120 {offsets = [32, 0], sizes = [16, 1], strides = [1, 1]} : vector<64x1xf32> to vector<16x1xf32>
      %131 = arith.index_cast %105 : i32 to index
      %c0_79 = arith.constant 0 : index
      %132 = vector.load %arg20[%131, %c0_79] : memref<8x64xf32, #tpu.memory_space<vmem>>, vector<1x64xf32>
      %133 = vector.broadcast %130 : vector<16x1xf32> to vector<16x64xf32>
      %134 = vector.broadcast %132 : vector<1x64xf32> to vector<16x64xf32>
      %135 = arith.mulf %133, %134 : vector<16x64xf32>
      %136 = arith.addf %129, %135 : vector<16x64xf32>
      %137 = vector.extract_strided_slice %120 {offsets = [16, 0], sizes = [16, 1], strides = [1, 1]} : vector<64x1xf32> to vector<16x1xf32>
      %138 = vector.broadcast %137 : vector<16x1xf32> to vector<16x64xf32>
      %139 = arith.mulf %138, %128 : vector<16x64xf32>
      %140 = vector.extract_strided_slice %120 {offsets = [48, 0], sizes = [16, 1], strides = [1, 1]} : vector<64x1xf32> to vector<16x1xf32>
      %141 = vector.broadcast %140 : vector<16x1xf32> to vector<16x64xf32>
      %142 = arith.mulf %141, %136 : vector<16x64xf32>
      %143 = arith.subf %139, %142 : vector<16x64xf32>
      %cst_80 = arith.constant dense<0.000000e+00> : vector<64xf32>
      %144 = vector.multi_reduction <add>, %143, %cst_80 [0] : vector<16x64xf32> to vector<64xf32>
      %145 = vector.shape_cast %144 : vector<64xf32> to vector<1x64xf32>
      %146 = arith.index_cast %105 : i32 to index
      %c0_81 = arith.constant 0 : index
      %147 = vector.load %arg22[%146, %c0_81] : memref<8x64xf32, #tpu.memory_space<vmem>>, vector<1x64xf32>
      tpu.vector_store %arg22[%146, %c0_81], %145 {strides = array<i32>} : memref<8x64xf32, #tpu.memory_space<vmem>>, vector<1x64xf32>,
      %c4_i32_82 = arith.constant 4 : i32
      %148 = arith.muli %arg23, %c4_i32_82 : i32
      %c1_i32_83 = arith.constant 1 : i32
      %149 = arith.addi %148, %c1_i32_83 : i32
      %150 = arith.index_cast %149 : i32 to index
      %c0_84 = arith.constant 0 : index
      %151 = vector.load %arg17[%150, %c0_84] : memref<8x64xf32, #tpu.memory_space<vmem>>, vector<1x64xf32>
      %152 = arith.index_cast %149 : i32 to index
      %c0_85 = arith.constant 0 : index
      %153 = vector.load %arg18[%152, %c0_85] : memref<8x64xf32, #tpu.memory_space<vmem>>, vector<1x64xf32>
      %c0_86 = arith.constant 0 : index
      %c0_87 = arith.constant 0 : index
      %154 = vector.load %arg9[%c0_86, %c0_87] : memref<16x64xf32, #tpu.memory_space<vmem>>, vector<16x64xf32>
      %155 = vector.broadcast %151 : vector<1x64xf32> to vector<16x64xf32>
      %156 = arith.mulf %155, %154 : vector<16x64xf32>
      %157 = math.exp %156 : vector<16x64xf32>
      %c0_88 = arith.constant 0 : index
      %c0_89 = arith.constant 0 : index
      %158 = vector.load %arg10[%c0_88, %c0_89] : memref<16x64xf32, #tpu.memory_space<vmem>>, vector<16x64xf32>
      %159 = vector.broadcast %153 : vector<1x64xf32> to vector<16x64xf32>
      %160 = arith.mulf %159, %158 : vector<16x64xf32>
      %161 = math.exp %160 : vector<16x64xf32>
      %162 = arith.index_cast %149 : i32 to index
      %c0_90 = arith.constant 0 : index
      %c0_91 = arith.constant 0 : index
      %163 = vector.load %arg21[%162, %c0_90, %c0_91] : memref<8x64x1xf32, #tpu.memory_space<vmem>>, vector<1x64x1xf32>
      %164 = vector.shape_cast %163 : vector<1x64x1xf32> to vector<64x1xf32>
      %165 = arith.mulf %157, %128 : vector<16x64xf32>
      %166 = vector.extract_strided_slice %164 {offsets = [0, 0], sizes = [16, 1], strides = [1, 1]} : vector<64x1xf32> to vector<16x1xf32>
      %167 = arith.index_cast %149 : i32 to index
      %c0_92 = arith.constant 0 : index
      %168 = vector.load %arg19[%167, %c0_92] : memref<8x64xf32, #tpu.memory_space<vmem>>, vector<1x64xf32>
      %169 = vector.broadcast %166 : vector<16x1xf32> to vector<16x64xf32>
      %170 = vector.broadcast %168 : vector<1x64xf32> to vector<16x64xf32>
      %171 = arith.mulf %169, %170 : vector<16x64xf32>
      %172 = arith.addf %165, %171 : vector<16x64xf32>
      %173 = arith.mulf %161, %136 : vector<16x64xf32>
      %174 = vector.extract_strided_slice %164 {offsets = [32, 0], sizes = [16, 1], strides = [1, 1]} : vector<64x1xf32> to vector<16x1xf32>
      %175 = arith.index_cast %149 : i32 to index
      %c0_93 = arith.constant 0 : index
      %176 = vector.load %arg20[%175, %c0_93] : memref<8x64xf32, #tpu.memory_space<vmem>>, vector<1x64xf32>
      %177 = vector.broadcast %174 : vector<16x1xf32> to vector<16x64xf32>
      %178 = vector.broadcast %176 : vector<1x64xf32> to vector<16x64xf32>
      %179 = arith.mulf %177, %178 : vector<16x64xf32>
      %180 = arith.addf %173, %179 : vector<16x64xf32>
      %181 = vector.extract_strided_slice %164 {offsets = [16, 0], sizes = [16, 1], strides = [1, 1]} : vector<64x1xf32> to vector<16x1xf32>
      %182 = vector.broadcast %181 : vector<16x1xf32> to vector<16x64xf32>
      %183 = arith.mulf %182, %172 : vector<16x64xf32>
      %184 = vector.extract_strided_slice %164 {offsets = [48, 0], sizes = [16, 1], strides = [1, 1]} : vector<64x1xf32> to vector<16x1xf32>
      %185 = vector.broadcast %184 : vector<16x1xf32> to vector<16x64xf32>
      %186 = arith.mulf %185, %180 : vector<16x64xf32>
      %187 = arith.subf %183, %186 : vector<16x64xf32>
      %cst_94 = arith.constant dense<0.000000e+00> : vector<64xf32>
      %188 = vector.multi_reduction <add>, %187, %cst_94 [0] : vector<16x64xf32> to vector<64xf32>
      %189 = vector.shape_cast %188 : vector<64xf32> to vector<1x64xf32>
      %190 = arith.index_cast %149 : i32 to index
      %c0_95 = arith.constant 0 : index
      %191 = vector.load %arg22[%190, %c0_95] : memref<8x64xf32, #tpu.memory_space<vmem>>, vector<1x64xf32>
      tpu.vector_store %arg22[%190, %c0_95], %189 {strides = array<i32>} : memref<8x64xf32, #tpu.memory_space<vmem>>, vector<1x64xf32>,
      %c4_i32_96 = arith.constant 4 : i32
      %192 = arith.muli %arg23, %c4_i32_96 : i32
      %c2_i32_97 = arith.constant 2 : i32
      %193 = arith.addi %192, %c2_i32_97 : i32
      %194 = arith.index_cast %193 : i32 to index
      %c0_98 = arith.constant 0 : index
      %195 = vector.load %arg17[%194, %c0_98] : memref<8x64xf32, #tpu.memory_space<vmem>>, vector<1x64xf32>
      %196 = arith.index_cast %193 : i32 to index
      %c0_99 = arith.constant 0 : index
      %197 = vector.load %arg18[%196, %c0_99] : memref<8x64xf32, #tpu.memory_space<vmem>>, vector<1x64xf32>
      %c0_100 = arith.constant 0 : index
      %c0_101 = arith.constant 0 : index
      %198 = vector.load %arg9[%c0_100, %c0_101] : memref<16x64xf32, #tpu.memory_space<vmem>>, vector<16x64xf32>
      %199 = vector.broadcast %195 : vector<1x64xf32> to vector<16x64xf32>
      %200 = arith.mulf %199, %198 : vector<16x64xf32>
      %201 = math.exp %200 : vector<16x64xf32>
      %c0_102 = arith.constant 0 : index
      %c0_103 = arith.constant 0 : index
      %202 = vector.load %arg10[%c0_102, %c0_103] : memref<16x64xf32, #tpu.memory_space<vmem>>, vector<16x64xf32>
      %203 = vector.broadcast %197 : vector<1x64xf32> to vector<16x64xf32>
      %204 = arith.mulf %203, %202 : vector<16x64xf32>
      %205 = math.exp %204 : vector<16x64xf32>
      %206 = arith.index_cast %193 : i32 to index
      %c0_104 = arith.constant 0 : index
      %c0_105 = arith.constant 0 : index
      %207 = vector.load %arg21[%206, %c0_104, %c0_105] : memref<8x64x1xf32, #tpu.memory_space<vmem>>, vector<1x64x1xf32>
      %208 = vector.shape_cast %207 : vector<1x64x1xf32> to vector<64x1xf32>
      %209 = arith.mulf %201, %172 : vector<16x64xf32>
      %210 = vector.extract_strided_slice %208 {offsets = [0, 0], sizes = [16, 1], strides = [1, 1]} : vector<64x1xf32> to vector<16x1xf32>
      %211 = arith.index_cast %193 : i32 to index
      %c0_106 = arith.constant 0 : index
      %212 = vector.load %arg19[%211, %c0_106] : memref<8x64xf32, #tpu.memory_space<vmem>>, vector<1x64xf32>
      %213 = vector.broadcast %210 : vector<16x1xf32> to vector<16x64xf32>
      %214 = vector.broadcast %212 : vector<1x64xf32> to vector<16x64xf32>
      %215 = arith.mulf %213, %214 : vector<16x64xf32>
      %216 = arith.addf %209, %215 : vector<16x64xf32>
      %217 = arith.mulf %205, %180 : vector<16x64xf32>
      %218 = vector.extract_strided_slice %208 {offsets = [32, 0], sizes = [16, 1], strides = [1, 1]} : vector<64x1xf32> to vector<16x1xf32>
      %219 = arith.index_cast %193 : i32 to index
      %c0_107 = arith.constant 0 : index
      %220 = vector.load %arg20[%219, %c0_107] : memref<8x64xf32, #tpu.memory_space<vmem>>, vector<1x64xf32>
      %221 = vector.broadcast %218 : vector<16x1xf32> to vector<16x64xf32>
      %222 = vector.broadcast %220 : vector<1x64xf32> to vector<16x64xf32>
      %223 = arith.mulf %221, %222 : vector<16x64xf32>
      %224 = arith.addf %217, %223 : vector<16x64xf32>
      %225 = vector.extract_strided_slice %208 {offsets = [16, 0], sizes = [16, 1], strides = [1, 1]} : vector<64x1xf32> to vector<16x1xf32>
      %226 = vector.broadcast %225 : vector<16x1xf32> to vector<16x64xf32>
      %227 = arith.mulf %226, %216 : vector<16x64xf32>
      %228 = vector.extract_strided_slice %208 {offsets = [48, 0], sizes = [16, 1], strides = [1, 1]} : vector<64x1xf32> to vector<16x1xf32>
      %229 = vector.broadcast %228 : vector<16x1xf32> to vector<16x64xf32>
      %230 = arith.mulf %229, %224 : vector<16x64xf32>
      %231 = arith.subf %227, %230 : vector<16x64xf32>
      %cst_108 = arith.constant dense<0.000000e+00> : vector<64xf32>
      %232 = vector.multi_reduction <add>, %231, %cst_108 [0] : vector<16x64xf32> to vector<64xf32>
      %233 = vector.shape_cast %232 : vector<64xf32> to vector<1x64xf32>
      %234 = arith.index_cast %193 : i32 to index
      %c0_109 = arith.constant 0 : index
      %235 = vector.load %arg22[%234, %c0_109] : memref<8x64xf32, #tpu.memory_space<vmem>>, vector<1x64xf32>
      tpu.vector_store %arg22[%234, %c0_109], %233 {strides = array<i32>} : memref<8x64xf32, #tpu.memory_space<vmem>>, vector<1x64xf32>,
      %c4_i32_110 = arith.constant 4 : i32
      %236 = arith.muli %arg23, %c4_i32_110 : i32
      %c3_i32 = arith.constant 3 : i32
      %237 = arith.addi %236, %c3_i32 : i32
      %238 = arith.index_cast %237 : i32 to index
      %c0_111 = arith.constant 0 : index
      %239 = vector.load %arg17[%238, %c0_111] : memref<8x64xf32, #tpu.memory_space<vmem>>, vector<1x64xf32>
      %240 = arith.index_cast %237 : i32 to index
      %c0_112 = arith.constant 0 : index
      %241 = vector.load %arg18[%240, %c0_112] : memref<8x64xf32, #tpu.memory_space<vmem>>, vector<1x64xf32>
      %c0_113 = arith.constant 0 : index
      %c0_114 = arith.constant 0 : index
      %242 = vector.load %arg9[%c0_113, %c0_114] : memref<16x64xf32, #tpu.memory_space<vmem>>, vector<16x64xf32>
      %243 = vector.broadcast %239 : vector<1x64xf32> to vector<16x64xf32>
      %244 = arith.mulf %243, %242 : vector<16x64xf32>
      %245 = math.exp %244 : vector<16x64xf32>
      %c0_115 = arith.constant 0 : index
      %c0_116 = arith.constant 0 : index
      %246 = vector.load %arg10[%c0_115, %c0_116] : memref<16x64xf32, #tpu.memory_space<vmem>>, vector<16x64xf32>
      %247 = vector.broadcast %241 : vector<1x64xf32> to vector<16x64xf32>
      %248 = arith.mulf %247, %246 : vector<16x64xf32>
      %249 = math.exp %248 : vector<16x64xf32>
      %250 = arith.index_cast %237 : i32 to index
      %c0_117 = arith.constant 0 : index
      %c0_118 = arith.constant 0 : index
      %251 = vector.load %arg21[%250, %c0_117, %c0_118] : memref<8x64x1xf32, #tpu.memory_space<vmem>>, vector<1x64x1xf32>
      %252 = vector.shape_cast %251 : vector<1x64x1xf32> to vector<64x1xf32>
      %253 = arith.mulf %245, %216 : vector<16x64xf32>
      %254 = vector.extract_strided_slice %252 {offsets = [0, 0], sizes = [16, 1], strides = [1, 1]} : vector<64x1xf32> to vector<16x1xf32>
      %255 = arith.index_cast %237 : i32 to index
      %c0_119 = arith.constant 0 : index
      %256 = vector.load %arg19[%255, %c0_119] : memref<8x64xf32, #tpu.memory_space<vmem>>, vector<1x64xf32>
      %257 = vector.broadcast %254 : vector<16x1xf32> to vector<16x64xf32>
      %258 = vector.broadcast %256 : vector<1x64xf32> to vector<16x64xf32>
      %259 = arith.mulf %257, %258 : vector<16x64xf32>
      %260 = arith.addf %253, %259 : vector<16x64xf32>
      %261 = arith.mulf %249, %224 : vector<16x64xf32>
      %262 = vector.extract_strided_slice %252 {offsets = [32, 0], sizes = [16, 1], strides = [1, 1]} : vector<64x1xf32> to vector<16x1xf32>
      %263 = arith.index_cast %237 : i32 to index
      %c0_120 = arith.constant 0 : index
      %264 = vector.load %arg20[%263, %c0_120] : memref<8x64xf32, #tpu.memory_space<vmem>>, vector<1x64xf32>
      %265 = vector.broadcast %262 : vector<16x1xf32> to vector<16x64xf32>
      %266 = vector.broadcast %264 : vector<1x64xf32> to vector<16x64xf32>
      %267 = arith.mulf %265, %266 : vector<16x64xf32>
      %268 = arith.addf %261, %267 : vector<16x64xf32>
      %269 = vector.extract_strided_slice %252 {offsets = [16, 0], sizes = [16, 1], strides = [1, 1]} : vector<64x1xf32> to vector<16x1xf32>
      %270 = vector.broadcast %269 : vector<16x1xf32> to vector<16x64xf32>
      %271 = arith.mulf %270, %260 : vector<16x64xf32>
      %272 = vector.extract_strided_slice %252 {offsets = [48, 0], sizes = [16, 1], strides = [1, 1]} : vector<64x1xf32> to vector<16x1xf32>
      %273 = vector.broadcast %272 : vector<16x1xf32> to vector<16x64xf32>
      %274 = arith.mulf %273, %268 : vector<16x64xf32>
      %275 = arith.subf %271, %274 : vector<16x64xf32>
      %cst_121 = arith.constant dense<0.000000e+00> : vector<64xf32>
      %276 = vector.multi_reduction <add>, %275, %cst_121 [0] : vector<16x64xf32> to vector<64xf32>
      %277 = vector.shape_cast %276 : vector<64xf32> to vector<1x64xf32>
      %278 = arith.index_cast %237 : i32 to index
      %c0_122 = arith.constant 0 : index
      %279 = vector.load %arg22[%278, %c0_122] : memref<8x64xf32, #tpu.memory_space<vmem>>, vector<1x64xf32>
      tpu.vector_store %arg22[%278, %c0_122], %277 {strides = array<i32>} : memref<8x64xf32, #tpu.memory_space<vmem>>, vector<1x64xf32>,
      scf.yield %260, %268 : vector<16x64xf32>, vector<16x64xf32>
    }
    %c2_i32_54 = arith.constant 2 : i32
    %c0_55 = arith.constant 0 : index
    %c0_56 = arith.constant 0 : index
    %90 = vector.load %arg14[%c0_55, %c0_56] : memref<16x64xf32, #tpu.memory_space<vmem>>, vector<16x64xf32>
    tpu.vector_store %arg14[%c0_55, %c0_56], %89#0 {strides = array<i32>} : memref<16x64xf32, #tpu.memory_space<vmem>>, vector<16x64xf32>,
    %c0_57 = arith.constant 0 : index
    %c0_58 = arith.constant 0 : index
    %91 = vector.load %arg15[%c0_57, %c0_58] : memref<16x64xf32, #tpu.memory_space<vmem>>, vector<16x64xf32>
    tpu.vector_store %arg15[%c0_57, %c0_58], %89#1 {strides = array<i32>} : memref<16x64xf32, #tpu.memory_space<vmem>>, vector<16x64xf32>,
    %c0_59 = arith.constant 0 : index
    %c0_60 = arith.constant 0 : index
    %92 = vector.load %arg22[%c0_59, %c0_60] : memref<8x64xf32, #tpu.memory_space<vmem>>, vector<8x64xf32>
    %c0_61 = arith.constant 0 : index
    %c0_62 = arith.constant 0 : index
    %93 = vector.load %arg11[%c0_61, %c0_62] : memref<1x64xf32, #tpu.memory_space<vmem>>, vector<1x64xf32>
    %94 = vector.broadcast %93 : vector<1x64xf32> to vector<8x64xf32>
    %95 = arith.mulf %39, %94 : vector<8x64xf32>
    %96 = arith.addf %92, %95 : vector<8x64xf32>
    %97 = arith.mulf %96, %45 : vector<8x64xf32>
    %98 = arith.truncf %97 : vector<8x64xf32> to vector<8x64xbf16>
    %c0_63 = arith.constant 0 : index
    %c0_64 = arith.constant 0 : index
    %99 = vector.load %arg12[%c0_63, %c0_64] : memref<64x32xbf16, #tpu.memory_space<vmem>>, vector<64x32xbf16>
    %cst_65 = arith.constant dense<0.000000e+00> : vector<8x32xf32>
    %100 = tpu.matmul %98, %99, %cst_65 {dimension_numbers = #tpu.dot_dimension_numbers<[1], [0], [0], [1], [0, 0, 1, 1], [], []>} : vector<8x64xbf16>, vector<64x32xbf16>, vector<8x32xf32> -> vector<8x32xf32>
    %c0_66 = arith.constant 0 : index
    %c0_67 = arith.constant 0 : index
    %c0_68 = arith.constant 0 : index
    %101 = vector.load %arg13[%c0_66, %c0_67, %c0_68] : memref<1x8x32xf32, #tpu.memory_space<vmem>>, vector<1x8x32xf32>
    %102 = vector.shape_cast %101 : vector<1x8x32xf32> to vector<8x32xf32>
    %103 = vector.shape_cast %100 : vector<8x32xf32> to vector<1x8x32xf32>
    tpu.vector_store %arg13[%c0_66, %c0_67, %c0_68], %103 {strides = array<i32>} : memref<1x8x32xf32, #tpu.memory_space<vmem>>, vector<1x8x32xf32>,
    return
  }
  func.func @transform_0(%arg0: i32, %arg1: i32) -> (i32, i32, i32) {
    %c0_i32 = arith.constant 0 : i32
    %c0_i32_0 = arith.constant 0 : i32
    return %arg0, %arg1, %c0_i32 : i32, i32, i32
  }
  func.func @transform_1(%arg0: i32, %arg1: i32) -> (i32, i32) {
    %c0_i32 = arith.constant 0 : i32
    %c0_i32_0 = arith.constant 0 : i32
    %c0_i32_1 = arith.constant 0 : i32
    return %c0_i32, %c0_i32_0 : i32, i32
  }
  func.func @transform_2(%arg0: i32, %arg1: i32) -> (i32, i32) {
    %c0_i32 = arith.constant 0 : i32
    %c0_i32_0 = arith.constant 0 : i32
    %c0_i32_1 = arith.constant 0 : i32
    return %c0_i32, %c0_i32_0 : i32, i32
  }
  func.func @transform_3(%arg0: i32, %arg1: i32) -> (i32, i32) {
    %c0_i32 = arith.constant 0 : i32
    %c0_i32_0 = arith.constant 0 : i32
    %c0_i32_1 = arith.constant 0 : i32
    return %c0_i32, %c0_i32_0 : i32, i32
  }
  func.func @transform_4(%arg0: i32, %arg1: i32) -> (i32, i32) {
    %c0_i32 = arith.constant 0 : i32
    %c0_i32_0 = arith.constant 0 : i32
    %c0_i32_1 = arith.constant 0 : i32
    return %c0_i32, %c0_i32_0 : i32, i32
  }
  func.func @transform_5(%arg0: i32, %arg1: i32) -> (i32, i32) {
    %c0_i32 = arith.constant 0 : i32
    %c0_i32_0 = arith.constant 0 : i32
    %c0_i32_1 = arith.constant 0 : i32
    return %c0_i32, %c0_i32_0 : i32, i32
  }
  func.func @transform_6(%arg0: i32, %arg1: i32) -> (i32, i32) {
    %c0_i32 = arith.constant 0 : i32
    %c0_i32_0 = arith.constant 0 : i32
    %c0_i32_1 = arith.constant 0 : i32
    return %c0_i32, %c0_i32_0 : i32, i32
  }
  func.func @transform_7(%arg0: i32, %arg1: i32) -> (i32, i32) {
    %c0_i32 = arith.constant 0 : i32
    %c0_i32_0 = arith.constant 0 : i32
    %c0_i32_1 = arith.constant 0 : i32
    return %c0_i32, %c0_i32_0 : i32, i32
  }
  func.func @transform_8(%arg0: i32, %arg1: i32) -> (i32, i32) {
    %c0_i32 = arith.constant 0 : i32
    %c0_i32_0 = arith.constant 0 : i32
    %c0_i32_1 = arith.constant 0 : i32
    return %c0_i32, %c0_i32_0 : i32, i32
  }
  func.func @transform_9(%arg0: i32, %arg1: i32) -> (i32, i32) {
    %c0_i32 = arith.constant 0 : i32
    %c0_i32_0 = arith.constant 0 : i32
    %c0_i32_1 = arith.constant 0 : i32
    return %c0_i32, %c0_i32_0 : i32, i32
  }
  func.func @transform_10(%arg0: i32, %arg1: i32) -> (i32, i32) {
    %c0_i32 = arith.constant 0 : i32
    %c0_i32_0 = arith.constant 0 : i32
    %c0_i32_1 = arith.constant 0 : i32
    return %c0_i32, %c0_i32_0 : i32, i32
  }
  func.func @transform_11(%arg0: i32, %arg1: i32) -> (i32, i32, i32) {
    %c0_i32 = arith.constant 0 : i32
    %c0_i32_0 = arith.constant 0 : i32
    return %arg0, %arg1, %c0_i32 : i32, i32, i32
  }
}

module attributes {stable_mosaic.version = 11 : i64} {
  func.func @diffs6_kernel(%arg0: i32, %arg1: i32, %arg2: memref<1x8x32xbf16, #tpu.memory_space<vmem>>, %arg3: memref<32x128xbf16, #tpu.memory_space<vmem>>, %arg4: memref<4x64xf32, #tpu.memory_space<vmem>>, %arg5: memref<1x64xf32, #tpu.memory_space<vmem>>, %arg6: memref<64x192xbf16, #tpu.memory_space<vmem>>, %arg7: memref<1x64xf32, #tpu.memory_space<vmem>>, %arg8: memref<1x64xf32, #tpu.memory_space<vmem>>, %arg9: memref<16x64xf32, #tpu.memory_space<vmem>>, %arg10: memref<16x64xf32, #tpu.memory_space<vmem>>, %arg11: memref<1x64xf32, #tpu.memory_space<vmem>>, %arg12: memref<64x32xbf16, #tpu.memory_space<vmem>>, %arg13: memref<1x8x32xf32, #tpu.memory_space<vmem>>, %arg14: memref<16x64xf32, #tpu.memory_space<vmem>>, %arg15: memref<16x64xf32, #tpu.memory_space<vmem>>, %arg16: memref<16x64xf32, #tpu.memory_space<vmem>>, %arg17: memref<8x64xf32, #tpu.memory_space<vmem>>, %arg18: memref<8x64xf32, #tpu.memory_space<vmem>>, %arg19: memref<8x64xf32, #tpu.memory_space<vmem>>, %arg20: memref<8x64xf32, #tpu.memory_space<vmem>>, %arg21: memref<8x64x1xf32, #tpu.memory_space<vmem>>, %arg22: memref<8x64xf32, #tpu.memory_space<vmem>>) attributes {dimension_semantics = [#tpu.dimension_semantics<parallel>, #tpu.dimension_semantics<arbitrary>], iteration_bounds = array<i64: 2, 2>, scalar_prefetch = 0 : i64, scratch_operands = 9 : i64, tpu.core_type = #tpu.core_type<tc>, window_params = [{transform_indices = @transform_0, window_bounds = array<i64: 1, 8, 32>}, {pipeline_mode = #tpu.pipeline_mode<synchronous>, transform_indices = @transform_1, window_bounds = array<i64: 32, 128>}, {pipeline_mode = #tpu.pipeline_mode<synchronous>, transform_indices = @transform_2, window_bounds = array<i64: 4, 64>}, {pipeline_mode = #tpu.pipeline_mode<synchronous>, transform_indices = @transform_3, window_bounds = array<i64: 1, 64>}, {pipeline_mode = #tpu.pipeline_mode<synchronous>, transform_indices = @transform_4, window_bounds = array<i64: 64, 192>}, {pipeline_mode = #tpu.pipeline_mode<synchronous>, transform_indices = @transform_5, window_bounds = array<i64: 1, 64>}, {pipeline_mode = #tpu.pipeline_mode<synchronous>, transform_indices = @transform_6, window_bounds = array<i64: 1, 64>}, {pipeline_mode = #tpu.pipeline_mode<synchronous>, transform_indices = @transform_7, window_bounds = array<i64: 16, 64>}, {pipeline_mode = #tpu.pipeline_mode<synchronous>, transform_indices = @transform_8, window_bounds = array<i64: 16, 64>}, {pipeline_mode = #tpu.pipeline_mode<synchronous>, transform_indices = @transform_9, window_bounds = array<i64: 1, 64>}, {pipeline_mode = #tpu.pipeline_mode<synchronous>, transform_indices = @transform_10, window_bounds = array<i64: 64, 32>}, {transform_indices = @transform_11, window_bounds = array<i64: 1, 8, 32>}]} {
    %c0_i32 = arith.constant 0 : i32
    %0 = arith.cmpi eq, %arg1, %c0_i32 : i32
    %1 = arith.extui %0 : i1 to i32
    %c0_i32_0 = arith.constant 0 : i32
    %2 = arith.cmpi ne, %1, %c0_i32_0 : i32
    scf.if %2 {
      %cst_69 = arith.constant 0.000000e+00 : f32
      %104 = vector.broadcast %cst_69 : f32 to vector<16x64xf32>
      %c0_70 = arith.constant 0 : index
      %c0_71 = arith.constant 0 : index
      %105 = vector.load %arg14[%c0_70, %c0_71] : memref<16x64xf32, #tpu.memory_space<vmem>>, vector<16x64xf32>
      tpu.vector_store %arg14[%c0_70, %c0_71], %104 {strides = array<i32>} : memref<16x64xf32, #tpu.memory_space<vmem>>, vector<16x64xf32>,
      %cst_72 = arith.constant 0.000000e+00 : f32
      %106 = vector.broadcast %cst_72 : f32 to vector<16x64xf32>
      %c0_73 = arith.constant 0 : index
      %c0_74 = arith.constant 0 : index
      %107 = vector.load %arg15[%c0_73, %c0_74] : memref<16x64xf32, #tpu.memory_space<vmem>>, vector<16x64xf32>
      tpu.vector_store %arg15[%c0_73, %c0_74], %106 {strides = array<i32>} : memref<16x64xf32, #tpu.memory_space<vmem>>, vector<16x64xf32>,
      %cst_75 = arith.constant 0.000000e+00 : f32
      %108 = vector.broadcast %cst_75 : f32 to vector<8x64xf32>
      %c0_76 = arith.constant 0 : index
      %c0_77 = arith.constant 0 : index
      %109 = vector.load %arg16[%c0_76, %c0_77] : memref<16x64xf32, #tpu.memory_space<vmem>>, vector<8x64xf32>
      tpu.vector_store %arg16[%c0_76, %c0_77], %108 {strides = array<i32>} : memref<16x64xf32, #tpu.memory_space<vmem>>, vector<8x64xf32>,
    } else {
    }
    %c0 = arith.constant 0 : index
    %c0_1 = arith.constant 0 : index
    %c0_2 = arith.constant 0 : index
    %3 = vector.load %arg2[%c0, %c0_1, %c0_2] : memref<1x8x32xbf16, #tpu.memory_space<vmem>>, vector<1x8x32xbf16>
    %4 = vector.shape_cast %3 : vector<1x8x32xbf16> to vector<8x32xbf16>
    %c0_3 = arith.constant 0 : index
    %c0_4 = arith.constant 0 : index
    %5 = vector.load %arg3[%c0_3, %c0_4] : memref<32x128xbf16, #tpu.memory_space<vmem>>, vector<32x128xbf16>
    %cst = arith.constant dense<0.000000e+00> : vector<8x128xf32>
    %6 = tpu.matmul %4, %5, %cst {dimension_numbers = #tpu.dot_dimension_numbers<[1], [0], [0], [1], [0, 0, 1, 1], [], []>} : vector<8x32xbf16>, vector<32x128xbf16>, vector<8x128xf32> -> vector<8x128xf32>
    %7 = vector.extract_strided_slice %6 {offsets = [0, 0], sizes = [8, 64], strides = [1, 1]} : vector<8x128xf32> to vector<8x64xf32>
    %8 = vector.extract_strided_slice %6 {offsets = [0, 64], sizes = [8, 64], strides = [1, 1]} : vector<8x128xf32> to vector<8x64xf32>
    %c8 = arith.constant 8 : index
    %c0_5 = arith.constant 0 : index
    %9 = vector.load %arg16[%c8, %c0_5] : memref<16x64xf32, #tpu.memory_space<vmem>>, vector<8x64xf32>
    tpu.vector_store %arg16[%c8, %c0_5], %7 {strides = array<i32>} : memref<16x64xf32, #tpu.memory_space<vmem>>, vector<8x64xf32>,
    %c5 = arith.constant 5 : index
    %c0_6 = arith.constant 0 : index
    %10 = vector.load %arg16[%c5, %c0_6] : memref<16x64xf32, #tpu.memory_space<vmem>>, vector<8x64xf32>
    %c0_7 = arith.constant 0 : index
    %c0_8 = arith.constant 0 : index
    %11 = vector.load %arg4[%c0_7, %c0_8] : memref<4x64xf32, #tpu.memory_space<vmem>>, vector<1x64xf32>
    %12 = vector.broadcast %11 : vector<1x64xf32> to vector<8x64xf32>
    %13 = arith.mulf %10, %12 : vector<8x64xf32>
    %c6 = arith.constant 6 : index
    %c0_9 = arith.constant 0 : index
    %14 = vector.load %arg16[%c6, %c0_9] : memref<16x64xf32, #tpu.memory_space<vmem>>, vector<8x64xf32>
    %c1 = arith.constant 1 : index
    %c0_10 = arith.constant 0 : index
    %15 = vector.load %arg4[%c1, %c0_10] : memref<4x64xf32, #tpu.memory_space<vmem>>, vector<1x64xf32>
    %16 = vector.broadcast %15 : vector<1x64xf32> to vector<8x64xf32>
    %17 = arith.mulf %14, %16 : vector<8x64xf32>
    %18 = arith.addf %13, %17 : vector<8x64xf32>
    %c7 = arith.constant 7 : index
    %c0_11 = arith.constant 0 : index
    %19 = vector.load %arg16[%c7, %c0_11] : memref<16x64xf32, #tpu.memory_space<vmem>>, vector<8x64xf32>
    %c2 = arith.constant 2 : index
    %c0_12 = arith.constant 0 : index
    %20 = vector.load %arg4[%c2, %c0_12] : memref<4x64xf32, #tpu.memory_space<vmem>>, vector<1x64xf32>
    %21 = vector.broadcast %20 : vector<1x64xf32> to vector<8x64xf32>
    %22 = arith.mulf %19, %21 : vector<8x64xf32>
    %23 = arith.addf %18, %22 : vector<8x64xf32>
    %c8_13 = arith.constant 8 : index
    %c0_14 = arith.constant 0 : index
    %24 = vector.load %arg16[%c8_13, %c0_14] : memref<16x64xf32, #tpu.memory_space<vmem>>, vector<8x64xf32>
    %c3 = arith.constant 3 : index
    %c0_15 = arith.constant 0 : index
    %25 = vector.load %arg4[%c3, %c0_15] : memref<4x64xf32, #tpu.memory_space<vmem>>, vector<1x64xf32>
    %26 = vector.broadcast %25 : vector<1x64xf32> to vector<8x64xf32>
    %27 = arith.mulf %24, %26 : vector<8x64xf32>
    %28 = arith.addf %23, %27 : vector<8x64xf32>
    %c0_16 = arith.constant 0 : index
    %c0_17 = arith.constant 0 : index
    %29 = vector.load %arg5[%c0_16, %c0_17] : memref<1x64xf32, #tpu.memory_space<vmem>>, vector<1x64xf32>
    %30 = vector.broadcast %29 : vector<1x64xf32> to vector<8x64xf32>
    %31 = arith.addf %28, %30 : vector<8x64xf32>
    %c13 = arith.constant 13 : index
    %c0_18 = arith.constant 0 : index
    %32 = vector.load %arg16[%c13, %c0_18] : memref<16x64xf32, #tpu.memory_space<vmem>>, vector<3x64xf32>
    %c5_19 = arith.constant 5 : index
    %c0_20 = arith.constant 0 : index
    %33 = vector.load %arg16[%c5_19, %c0_20] : memref<16x64xf32, #tpu.memory_space<vmem>>, vector<3x64xf32>
    tpu.vector_store %arg16[%c5_19, %c0_20], %32 {strides = array<i32>} : memref<16x64xf32, #tpu.memory_space<vmem>>, vector<3x64xf32>,
    %cst_21 = arith.constant 0.000000e+00 : f32
    %34 = vector.broadcast %cst_21 : f32 to vector<8x64xf32>
    %35 = arith.subf %34, %31 : vector<8x64xf32>
    %36 = math.exp %35 : vector<8x64xf32>
    %cst_22 = arith.constant 1.000000e+00 : f32
    %37 = vector.broadcast %cst_22 : f32 to vector<8x64xf32>
    %38 = arith.addf %37, %36 : vector<8x64xf32>
    %39 = arith.divf %31, %38 : vector<8x64xf32>
    %cst_23 = arith.constant 0.000000e+00 : f32
    %40 = vector.broadcast %cst_23 : f32 to vector<8x64xf32>
    %41 = arith.subf %40, %8 : vector<8x64xf32>
    %42 = math.exp %41 : vector<8x64xf32>
    %cst_24 = arith.constant 1.000000e+00 : f32
    %43 = vector.broadcast %cst_24 : f32 to vector<8x64xf32>
    %44 = arith.addf %43, %42 : vector<8x64xf32>
    %45 = arith.divf %8, %44 : vector<8x64xf32>
    %46 = arith.truncf %39 : vector<8x64xf32> to vector<8x64xbf16>
    %c0_25 = arith.constant 0 : index
    %c0_26 = arith.constant 0 : index
    %47 = vector.load %arg6[%c0_25, %c0_26] : memref<64x192xbf16, #tpu.memory_space<vmem>>, vector<64x192xbf16>
    %cst_27 = arith.constant dense<0.000000e+00> : vector<8x192xf32>
    %48 = tpu.matmul %46, %47, %cst_27 {dimension_numbers = #tpu.dot_dimension_numbers<[1], [0], [0], [1], [0, 0, 1, 1], [], []>} : vector<8x64xbf16>, vector<64x192xbf16>, vector<8x192xf32> -> vector<8x192xf32>
    %49 = vector.extract_strided_slice %48 {offsets = [0, 0], sizes = [8, 64], strides = [1, 1]} : vector<8x192xf32> to vector<8x64xf32>
    %c0_28 = arith.constant 0 : index
    %c0_29 = arith.constant 0 : index
    %50 = vector.load %arg7[%c0_28, %c0_29] : memref<1x64xf32, #tpu.memory_space<vmem>>, vector<1x64xf32>
    %51 = vector.broadcast %50 : vector<1x64xf32> to vector<8x64xf32>
    %52 = arith.addf %49, %51 : vector<8x64xf32>
    %cst_30 = arith.constant 0.000000e+00 : f32
    %53 = vector.broadcast %cst_30 : f32 to vector<8x64xf32>
    %54 = arith.maximumf %52, %53 : vector<8x64xf32>
    %55 = math.absf %52 : vector<8x64xf32>
    %cst_31 = arith.constant 0.000000e+00 : f32
    %56 = vector.broadcast %cst_31 : f32 to vector<8x64xf32>
    %57 = arith.subf %56, %55 : vector<8x64xf32>
    %58 = math.exp %57 : vector<8x64xf32>
    %cst_32 = arith.constant 1.000000e+00 : f32
    %59 = vector.broadcast %cst_32 : f32 to vector<8x64xf32>
    %60 = arith.addf %59, %58 : vector<8x64xf32>
    %61 = math.log %60 : vector<8x64xf32>
    %62 = arith.addf %54, %61 : vector<8x64xf32>
    %63 = vector.extract_strided_slice %48 {offsets = [0, 64], sizes = [8, 64], strides = [1, 1]} : vector<8x192xf32> to vector<8x64xf32>
    %c0_33 = arith.constant 0 : index
    %c0_34 = arith.constant 0 : index
    %64 = vector.load %arg8[%c0_33, %c0_34] : memref<1x64xf32, #tpu.memory_space<vmem>>, vector<1x64xf32>
    %65 = vector.broadcast %64 : vector<1x64xf32> to vector<8x64xf32>
    %66 = arith.addf %63, %65 : vector<8x64xf32>
    %cst_35 = arith.constant 0.000000e+00 : f32
    %67 = vector.broadcast %cst_35 : f32 to vector<8x64xf32>
    %68 = arith.maximumf %66, %67 : vector<8x64xf32>
    %69 = math.absf %66 : vector<8x64xf32>
    %cst_36 = arith.constant 0.000000e+00 : f32
    %70 = vector.broadcast %cst_36 : f32 to vector<8x64xf32>
    %71 = arith.subf %70, %69 : vector<8x64xf32>
    %72 = math.exp %71 : vector<8x64xf32>
    %cst_37 = arith.constant 1.000000e+00 : f32
    %73 = vector.broadcast %cst_37 : f32 to vector<8x64xf32>
    %74 = arith.addf %73, %72 : vector<8x64xf32>
    %75 = math.log %74 : vector<8x64xf32>
    %76 = arith.addf %68, %75 : vector<8x64xf32>
    %c0_38 = arith.constant 0 : index
    %c0_39 = arith.constant 0 : index
    %77 = vector.load %arg17[%c0_38, %c0_39] : memref<8x64xf32, #tpu.memory_space<vmem>>, vector<8x64xf32>
    tpu.vector_store %arg17[%c0_38, %c0_39], %62 {strides = array<i32>} : memref<8x64xf32, #tpu.memory_space<vmem>>, vector<8x64xf32>,
    %c0_40 = arith.constant 0 : index
    %c0_41 = arith.constant 0 : index
    %78 = vector.load %arg18[%c0_40, %c0_41] : memref<8x64xf32, #tpu.memory_space<vmem>>, vector<8x64xf32>
    tpu.vector_store %arg18[%c0_40, %c0_41], %76 {strides = array<i32>} : memref<8x64xf32, #tpu.memory_space<vmem>>, vector<8x64xf32>,
    %79 = arith.mulf %62, %39 : vector<8x64xf32>
    %c0_42 = arith.constant 0 : index
    %c0_43 = arith.constant 0 : index
    %80 = vector.load %arg19[%c0_42, %c0_43] : memref<8x64xf32, #tpu.memory_space<vmem>>, vector<8x64xf32>
    tpu.vector_store %arg19[%c0_42, %c0_43], %79 {strides = array<i32>} : memref<8x64xf32, #tpu.memory_space<vmem>>, vector<8x64xf32>,
    %81 = arith.mulf %76, %39 : vector<8x64xf32>
    %c0_44 = arith.constant 0 : index
    %c0_45 = arith.constant 0 : index
    %82 = vector.load %arg20[%c0_44, %c0_45] : memref<8x64xf32, #tpu.memory_space<vmem>>, vector<8x64xf32>
    tpu.vector_store %arg20[%c0_44, %c0_45], %81 {strides = array<i32>} : memref<8x64xf32, #tpu.memory_space<vmem>>, vector<8x64xf32>,
    %83 = vector.extract_strided_slice %48 {offsets = [0, 128], sizes = [8, 64], strides = [1, 1]} : vector<8x192xf32> to vector<8x64xf32>
    %84 = vector.shape_cast %83 : vector<8x64xf32> to vector<8x64x1xf32>
    %c0_46 = arith.constant 0 : index
    %c0_47 = arith.constant 0 : index
    %c0_48 = arith.constant 0 : index
    %85 = vector.load %arg21[%c0_46, %c0_47, %c0_48] : memref<8x64x1xf32, #tpu.memory_space<vmem>>, vector<8x64x1xf32>
    tpu.vector_store %arg21[%c0_46, %c0_47, %c0_48], %84 {strides = array<i32>} : memref<8x64x1xf32, #tpu.memory_space<vmem>>, vector<8x64x1xf32>,
    %c0_49 = arith.constant 0 : index
    %c0_50 = arith.constant 0 : index
    %86 = vector.load %arg14[%c0_49, %c0_50] : memref<16x64xf32, #tpu.memory_space<vmem>>, vector<16x64xf32>
    %c0_51 = arith.constant 0 : index
    %c0_52 = arith.constant 0 : index
    %87 = vector.load %arg15[%c0_51, %c0_52] : memref<16x64xf32, #tpu.memory_space<vmem>>, vector<16x64xf32>
    %c0_i32_53 = arith.constant 0 : i32
    %c2_i32 = arith.constant 2 : i32
    %88 = arith.addi %c0_i32_53, %c2_i32 : i32
    %c1_i32 = arith.constant 1 : i32
    %89:2 = scf.for %arg23 = %c0_i32_53 to %88 step %c1_i32 iter_args(%arg24 = %86, %arg25 = %87) -> (vector<16x64xf32>, vector<16x64xf32>)  : i32 {
      %c4_i32 = arith.constant 4 : i32
      %104 = arith.muli %arg23, %c4_i32 : i32
      %c0_i32_69 = arith.constant 0 : i32
      %105 = arith.addi %104, %c0_i32_69 : i32
      %106 = arith.index_cast %105 : i32 to index
      %c0_70 = arith.constant 0 : index
      %107 = vector.load %arg17[%106, %c0_70] : memref<8x64xf32, #tpu.memory_space<vmem>>, vector<1x64xf32>
      %108 = arith.index_cast %105 : i32 to index
      %c0_71 = arith.constant 0 : index
      %109 = vector.load %arg18[%108, %c0_71] : memref<8x64xf32, #tpu.memory_space<vmem>>, vector<1x64xf32>
      %c0_72 = arith.constant 0 : index
      %c0_73 = arith.constant 0 : index
      %110 = vector.load %arg9[%c0_72, %c0_73] : memref<16x64xf32, #tpu.memory_space<vmem>>, vector<16x64xf32>
      %111 = vector.broadcast %107 : vector<1x64xf32> to vector<16x64xf32>
      %112 = arith.mulf %111, %110 : vector<16x64xf32>
      %113 = math.exp %112 : vector<16x64xf32>
      %c0_74 = arith.constant 0 : index
      %c0_75 = arith.constant 0 : index
      %114 = vector.load %arg10[%c0_74, %c0_75] : memref<16x64xf32, #tpu.memory_space<vmem>>, vector<16x64xf32>
      %115 = vector.broadcast %109 : vector<1x64xf32> to vector<16x64xf32>
      %116 = arith.mulf %115, %114 : vector<16x64xf32>
      %117 = math.exp %116 : vector<16x64xf32>
      %118 = arith.index_cast %105 : i32 to index
      %c0_76 = arith.constant 0 : index
      %c0_77 = arith.constant 0 : index
      %119 = vector.load %arg21[%118, %c0_76, %c0_77] : memref<8x64x1xf32, #tpu.memory_space<vmem>>, vector<1x64x1xf32>
      %120 = vector.shape_cast %119 : vector<1x64x1xf32> to vector<64x1xf32>
      %121 = arith.mulf %113, %arg24 : vector<16x64xf32>
      %122 = vector.extract_strided_slice %120 {offsets = [0, 0], sizes = [16, 1], strides = [1, 1]} : vector<64x1xf32> to vector<16x1xf32>
      %123 = arith.index_cast %105 : i32 to index
      %c0_78 = arith.constant 0 : index
      %124 = vector.load %arg19[%123, %c0_78] : memref<8x64xf32, #tpu.memory_space<vmem>>, vector<1x64xf32>
      %125 = vector.broadcast %122 : vector<16x1xf32> to vector<16x64xf32>
      %126 = vector.broadcast %124 : vector<1x64xf32> to vector<16x64xf32>
      %127 = arith.mulf %125, %126 : vector<16x64xf32>
      %128 = arith.addf %121, %127 : vector<16x64xf32>
      %129 = arith.mulf %117, %arg25 : vector<16x64xf32>
      %130 = vector.extract_strided_slice %120 {offsets = [32, 0], sizes = [16, 1], strides = [1, 1]} : vector<64x1xf32> to vector<16x1xf32>
      %131 = arith.index_cast %105 : i32 to index
      %c0_79 = arith.constant 0 : index
      %132 = vector.load %arg20[%131, %c0_79] : memref<8x64xf32, #tpu.memory_space<vmem>>, vector<1x64xf32>
      %133 = vector.broadcast %130 : vector<16x1xf32> to vector<16x64xf32>
      %134 = vector.broadcast %132 : vector<1x64xf32> to vector<16x64xf32>
      %135 = arith.mulf %133, %134 : vector<16x64xf32>
      %136 = arith.addf %129, %135 : vector<16x64xf32>
      %137 = vector.extract_strided_slice %120 {offsets = [16, 0], sizes = [16, 1], strides = [1, 1]} : vector<64x1xf32> to vector<16x1xf32>
      %138 = vector.broadcast %137 : vector<16x1xf32> to vector<16x64xf32>
      %139 = arith.mulf %138, %128 : vector<16x64xf32>
      %140 = vector.extract_strided_slice %120 {offsets = [48, 0], sizes = [16, 1], strides = [1, 1]} : vector<64x1xf32> to vector<16x1xf32>
      %141 = vector.broadcast %140 : vector<16x1xf32> to vector<16x64xf32>
      %142 = arith.mulf %141, %136 : vector<16x64xf32>
      %143 = arith.subf %139, %142 : vector<16x64xf32>
      %cst_80 = arith.constant dense<0.000000e+00> : vector<64xf32>
      %144 = vector.multi_reduction <add>, %143, %cst_80 [0] : vector<16x64xf32> to vector<64xf32>
      %145 = vector.shape_cast %144 : vector<64xf32> to vector<1x64xf32>
      %146 = arith.index_cast %105 : i32 to index
      %c0_81 = arith.constant 0 : index
      %147 = vector.load %arg22[%146, %c0_81] : memref<8x64xf32, #tpu.memory_space<vmem>>, vector<1x64xf32>
      tpu.vector_store %arg22[%146, %c0_81], %145 {strides = array<i32>} : memref<8x64xf32, #tpu.memory_space<vmem>>, vector<1x64xf32>,
      %c4_i32_82 = arith.constant 4 : i32
      %148 = arith.muli %arg23, %c4_i32_82 : i32
      %c1_i32_83 = arith.constant 1 : i32
      %149 = arith.addi %148, %c1_i32_83 : i32
      %150 = arith.index_cast %149 : i32 to index
      %c0_84 = arith.constant 0 : index
      %151 = vector.load %arg17[%150, %c0_84] : memref<8x64xf32, #tpu.memory_space<vmem>>, vector<1x64xf32>
      %152 = arith.index_cast %149 : i32 to index
      %c0_85 = arith.constant 0 : index
      %153 = vector.load %arg18[%152, %c0_85] : memref<8x64xf32, #tpu.memory_space<vmem>>, vector<1x64xf32>
      %c0_86 = arith.constant 0 : index
      %c0_87 = arith.constant 0 : index
      %154 = vector.load %arg9[%c0_86, %c0_87] : memref<16x64xf32, #tpu.memory_space<vmem>>, vector<16x64xf32>
      %155 = vector.broadcast %151 : vector<1x64xf32> to vector<16x64xf32>
      %156 = arith.mulf %155, %154 : vector<16x64xf32>
      %157 = math.exp %156 : vector<16x64xf32>
      %c0_88 = arith.constant 0 : index
      %c0_89 = arith.constant 0 : index
      %158 = vector.load %arg10[%c0_88, %c0_89] : memref<16x64xf32, #tpu.memory_space<vmem>>, vector<16x64xf32>
      %159 = vector.broadcast %153 : vector<1x64xf32> to vector<16x64xf32>
      %160 = arith.mulf %159, %158 : vector<16x64xf32>
      %161 = math.exp %160 : vector<16x64xf32>
      %162 = arith.index_cast %149 : i32 to index
      %c0_90 = arith.constant 0 : index
      %c0_91 = arith.constant 0 : index
      %163 = vector.load %arg21[%162, %c0_90, %c0_91] : memref<8x64x1xf32, #tpu.memory_space<vmem>>, vector<1x64x1xf32>
      %164 = vector.shape_cast %163 : vector<1x64x1xf32> to vector<64x1xf32>
      %165 = arith.mulf %157, %128 : vector<16x64xf32>
      %166 = vector.extract_strided_slice %164 {offsets = [0, 0], sizes = [16, 1], strides = [1, 1]} : vector<64x1xf32> to vector<16x1xf32>
      %167 = arith.index_cast %149 : i32 to index
      %c0_92 = arith.constant 0 : index
      %168 = vector.load %arg19[%167, %c0_92] : memref<8x64xf32, #tpu.memory_space<vmem>>, vector<1x64xf32>
      %169 = vector.broadcast %166 : vector<16x1xf32> to vector<16x64xf32>
      %170 = vector.broadcast %168 : vector<1x64xf32> to vector<16x64xf32>
      %171 = arith.mulf %169, %170 : vector<16x64xf32>
      %172 = arith.addf %165, %171 : vector<16x64xf32>
      %173 = arith.mulf %161, %136 : vector<16x64xf32>
      %174 = vector.extract_strided_slice %164 {offsets = [32, 0], sizes = [16, 1], strides = [1, 1]} : vector<64x1xf32> to vector<16x1xf32>
      %175 = arith.index_cast %149 : i32 to index
      %c0_93 = arith.constant 0 : index
      %176 = vector.load %arg20[%175, %c0_93] : memref<8x64xf32, #tpu.memory_space<vmem>>, vector<1x64xf32>
      %177 = vector.broadcast %174 : vector<16x1xf32> to vector<16x64xf32>
      %178 = vector.broadcast %176 : vector<1x64xf32> to vector<16x64xf32>
      %179 = arith.mulf %177, %178 : vector<16x64xf32>
      %180 = arith.addf %173, %179 : vector<16x64xf32>
      %181 = vector.extract_strided_slice %164 {offsets = [16, 0], sizes = [16, 1], strides = [1, 1]} : vector<64x1xf32> to vector<16x1xf32>
      %182 = vector.broadcast %181 : vector<16x1xf32> to vector<16x64xf32>
      %183 = arith.mulf %182, %172 : vector<16x64xf32>
      %184 = vector.extract_strided_slice %164 {offsets = [48, 0], sizes = [16, 1], strides = [1, 1]} : vector<64x1xf32> to vector<16x1xf32>
      %185 = vector.broadcast %184 : vector<16x1xf32> to vector<16x64xf32>
      %186 = arith.mulf %185, %180 : vector<16x64xf32>
      %187 = arith.subf %183, %186 : vector<16x64xf32>
      %cst_94 = arith.constant dense<0.000000e+00> : vector<64xf32>
      %188 = vector.multi_reduction <add>, %187, %cst_94 [0] : vector<16x64xf32> to vector<64xf32>
      %189 = vector.shape_cast %188 : vector<64xf32> to vector<1x64xf32>
      %190 = arith.index_cast %149 : i32 to index
      %c0_95 = arith.constant 0 : index
      %191 = vector.load %arg22[%190, %c0_95] : memref<8x64xf32, #tpu.memory_space<vmem>>, vector<1x64xf32>
      tpu.vector_store %arg22[%190, %c0_95], %189 {strides = array<i32>} : memref<8x64xf32, #tpu.memory_space<vmem>>, vector<1x64xf32>,
      %c4_i32_96 = arith.constant 4 : i32
      %192 = arith.muli %arg23, %c4_i32_96 : i32
      %c2_i32_97 = arith.constant 2 : i32
      %193 = arith.addi %192, %c2_i32_97 : i32
      %194 = arith.index_cast %193 : i32 to index
      %c0_98 = arith.constant 0 : index
      %195 = vector.load %arg17[%194, %c0_98] : memref<8x64xf32, #tpu.memory_space<vmem>>, vector<1x64xf32>
      %196 = arith.index_cast %193 : i32 to index
      %c0_99 = arith.constant 0 : index
      %197 = vector.load %arg18[%196, %c0_99] : memref<8x64xf32, #tpu.memory_space<vmem>>, vector<1x64xf32>
      %c0_100 = arith.constant 0 : index
      %c0_101 = arith.constant 0 : index
      %198 = vector.load %arg9[%c0_100, %c0_101] : memref<16x64xf32, #tpu.memory_space<vmem>>, vector<16x64xf32>
      %199 = vector.broadcast %195 : vector<1x64xf32> to vector<16x64xf32>
      %200 = arith.mulf %199, %198 : vector<16x64xf32>
      %201 = math.exp %200 : vector<16x64xf32>
      %c0_102 = arith.constant 0 : index
      %c0_103 = arith.constant 0 : index
      %202 = vector.load %arg10[%c0_102, %c0_103] : memref<16x64xf32, #tpu.memory_space<vmem>>, vector<16x64xf32>
      %203 = vector.broadcast %197 : vector<1x64xf32> to vector<16x64xf32>
      %204 = arith.mulf %203, %202 : vector<16x64xf32>
      %205 = math.exp %204 : vector<16x64xf32>
      %206 = arith.index_cast %193 : i32 to index
      %c0_104 = arith.constant 0 : index
      %c0_105 = arith.constant 0 : index
      %207 = vector.load %arg21[%206, %c0_104, %c0_105] : memref<8x64x1xf32, #tpu.memory_space<vmem>>, vector<1x64x1xf32>
      %208 = vector.shape_cast %207 : vector<1x64x1xf32> to vector<64x1xf32>
      %209 = arith.mulf %201, %172 : vector<16x64xf32>
      %210 = vector.extract_strided_slice %208 {offsets = [0, 0], sizes = [16, 1], strides = [1, 1]} : vector<64x1xf32> to vector<16x1xf32>
      %211 = arith.index_cast %193 : i32 to index
      %c0_106 = arith.constant 0 : index
      %212 = vector.load %arg19[%211, %c0_106] : memref<8x64xf32, #tpu.memory_space<vmem>>, vector<1x64xf32>
      %213 = vector.broadcast %210 : vector<16x1xf32> to vector<16x64xf32>
      %214 = vector.broadcast %212 : vector<1x64xf32> to vector<16x64xf32>
      %215 = arith.mulf %213, %214 : vector<16x64xf32>
      %216 = arith.addf %209, %215 : vector<16x64xf32>
      %217 = arith.mulf %205, %180 : vector<16x64xf32>
      %218 = vector.extract_strided_slice %208 {offsets = [32, 0], sizes = [16, 1], strides = [1, 1]} : vector<64x1xf32> to vector<16x1xf32>
      %219 = arith.index_cast %193 : i32 to index
      %c0_107 = arith.constant 0 : index
      %220 = vector.load %arg20[%219, %c0_107] : memref<8x64xf32, #tpu.memory_space<vmem>>, vector<1x64xf32>
      %221 = vector.broadcast %218 : vector<16x1xf32> to vector<16x64xf32>
      %222 = vector.broadcast %220 : vector<1x64xf32> to vector<16x64xf32>
      %223 = arith.mulf %221, %222 : vector<16x64xf32>
      %224 = arith.addf %217, %223 : vector<16x64xf32>
      %225 = vector.extract_strided_slice %208 {offsets = [16, 0], sizes = [16, 1], strides = [1, 1]} : vector<64x1xf32> to vector<16x1xf32>
      %226 = vector.broadcast %225 : vector<16x1xf32> to vector<16x64xf32>
      %227 = arith.mulf %226, %216 : vector<16x64xf32>
      %228 = vector.extract_strided_slice %208 {offsets = [48, 0], sizes = [16, 1], strides = [1, 1]} : vector<64x1xf32> to vector<16x1xf32>
      %229 = vector.broadcast %228 : vector<16x1xf32> to vector<16x64xf32>
      %230 = arith.mulf %229, %224 : vector<16x64xf32>
      %231 = arith.subf %227, %230 : vector<16x64xf32>
      %cst_108 = arith.constant dense<0.000000e+00> : vector<64xf32>
      %232 = vector.multi_reduction <add>, %231, %cst_108 [0] : vector<16x64xf32> to vector<64xf32>
      %233 = vector.shape_cast %232 : vector<64xf32> to vector<1x64xf32>
      %234 = arith.index_cast %193 : i32 to index
      %c0_109 = arith.constant 0 : index
      %235 = vector.load %arg22[%234, %c0_109] : memref<8x64xf32, #tpu.memory_space<vmem>>, vector<1x64xf32>
      tpu.vector_store %arg22[%234, %c0_109], %233 {strides = array<i32>} : memref<8x64xf32, #tpu.memory_space<vmem>>, vector<1x64xf32>,
      %c4_i32_110 = arith.constant 4 : i32
      %236 = arith.muli %arg23, %c4_i32_110 : i32
      %c3_i32 = arith.constant 3 : i32
      %237 = arith.addi %236, %c3_i32 : i32
      %238 = arith.index_cast %237 : i32 to index
      %c0_111 = arith.constant 0 : index
      %239 = vector.load %arg17[%238, %c0_111] : memref<8x64xf32, #tpu.memory_space<vmem>>, vector<1x64xf32>
      %240 = arith.index_cast %237 : i32 to index
      %c0_112 = arith.constant 0 : index
      %241 = vector.load %arg18[%240, %c0_112] : memref<8x64xf32, #tpu.memory_space<vmem>>, vector<1x64xf32>
      %c0_113 = arith.constant 0 : index
      %c0_114 = arith.constant 0 : index
      %242 = vector.load %arg9[%c0_113, %c0_114] : memref<16x64xf32, #tpu.memory_space<vmem>>, vector<16x64xf32>
      %243 = vector.broadcast %239 : vector<1x64xf32> to vector<16x64xf32>
      %244 = arith.mulf %243, %242 : vector<16x64xf32>
      %245 = math.exp %244 : vector<16x64xf32>
      %c0_115 = arith.constant 0 : index
      %c0_116 = arith.constant 0 : index
      %246 = vector.load %arg10[%c0_115, %c0_116] : memref<16x64xf32, #tpu.memory_space<vmem>>, vector<16x64xf32>
      %247 = vector.broadcast %241 : vector<1x64xf32> to vector<16x64xf32>
      %248 = arith.mulf %247, %246 : vector<16x64xf32>
      %249 = math.exp %248 : vector<16x64xf32>
      %250 = arith.index_cast %237 : i32 to index
      %c0_117 = arith.constant 0 : index
      %c0_118 = arith.constant 0 : index
      %251 = vector.load %arg21[%250, %c0_117, %c0_118] : memref<8x64x1xf32, #tpu.memory_space<vmem>>, vector<1x64x1xf32>
      %252 = vector.shape_cast %251 : vector<1x64x1xf32> to vector<64x1xf32>
      %253 = arith.mulf %245, %216 : vector<16x64xf32>
      %254 = vector.extract_strided_slice %252 {offsets = [0, 0], sizes = [16, 1], strides = [1, 1]} : vector<64x1xf32> to vector<16x1xf32>
      %255 = arith.index_cast %237 : i32 to index
      %c0_119 = arith.constant 0 : index
      %256 = vector.load %arg19[%255, %c0_119] : memref<8x64xf32, #tpu.memory_space<vmem>>, vector<1x64xf32>
      %257 = vector.broadcast %254 : vector<16x1xf32> to vector<16x64xf32>
      %258 = vector.broadcast %256 : vector<1x64xf32> to vector<16x64xf32>
      %259 = arith.mulf %257, %258 : vector<16x64xf32>
      %260 = arith.addf %253, %259 : vector<16x64xf32>
      %261 = arith.mulf %249, %224 : vector<16x64xf32>
      %262 = vector.extract_strided_slice %252 {offsets = [32, 0], sizes = [16, 1], strides = [1, 1]} : vector<64x1xf32> to vector<16x1xf32>
      %263 = arith.index_cast %237 : i32 to index
      %c0_120 = arith.constant 0 : index
      %264 = vector.load %arg20[%263, %c0_120] : memref<8x64xf32, #tpu.memory_space<vmem>>, vector<1x64xf32>
      %265 = vector.broadcast %262 : vector<16x1xf32> to vector<16x64xf32>
      %266 = vector.broadcast %264 : vector<1x64xf32> to vector<16x64xf32>
      %267 = arith.mulf %265, %266 : vector<16x64xf32>
      %268 = arith.addf %261, %267 : vector<16x64xf32>
      %269 = vector.extract_strided_slice %252 {offsets = [16, 0], sizes = [16, 1], strides = [1, 1]} : vector<64x1xf32> to vector<16x1xf32>
      %270 = vector.broadcast %269 : vector<16x1xf32> to vector<16x64xf32>
      %271 = arith.mulf %270, %260 : vector<16x64xf32>
      %272 = vector.extract_strided_slice %252 {offsets = [48, 0], sizes = [16, 1], strides = [1, 1]} : vector<64x1xf32> to vector<16x1xf32>
      %273 = vector.broadcast %272 : vector<16x1xf32> to vector<16x64xf32>
      %274 = arith.mulf %273, %268 : vector<16x64xf32>
      %275 = arith.subf %271, %274 : vector<16x64xf32>
      %cst_121 = arith.constant dense<0.000000e+00> : vector<64xf32>
      %276 = vector.multi_reduction <add>, %275, %cst_121 [0] : vector<16x64xf32> to vector<64xf32>
      %277 = vector.shape_cast %276 : vector<64xf32> to vector<1x64xf32>
      %278 = arith.index_cast %237 : i32 to index
      %c0_122 = arith.constant 0 : index
      %279 = vector.load %arg22[%278, %c0_122] : memref<8x64xf32, #tpu.memory_space<vmem>>, vector<1x64xf32>
      tpu.vector_store %arg22[%278, %c0_122], %277 {strides = array<i32>} : memref<8x64xf32, #tpu.memory_space<vmem>>, vector<1x64xf32>,
      scf.yield %260, %268 : vector<16x64xf32>, vector<16x64xf32>
    }
    %c2_i32_54 = arith.constant 2 : i32
    %c0_55 = arith.constant 0 : index
    %c0_56 = arith.constant 0 : index
    %90 = vector.load %arg14[%c0_55, %c0_56] : memref<16x64xf32, #tpu.memory_space<vmem>>, vector<16x64xf32>
    tpu.vector_store %arg14[%c0_55, %c0_56], %89#0 {strides = array<i32>} : memref<16x64xf32, #tpu.memory_space<vmem>>, vector<16x64xf32>,
    %c0_57 = arith.constant 0 : index
    %c0_58 = arith.constant 0 : index
    %91 = vector.load %arg15[%c0_57, %c0_58] : memref<16x64xf32, #tpu.memory_space<vmem>>, vector<16x64xf32>
    tpu.vector_store %arg15[%c0_57, %c0_58], %89#1 {strides = array<i32>} : memref<16x64xf32, #tpu.memory_space<vmem>>, vector<16x64xf32>,
    %c0_59 = arith.constant 0 : index
    %c0_60 = arith.constant 0 : index
    %92 = vector.load %arg22[%c0_59, %c0_60] : memref<8x64xf32, #tpu.memory_space<vmem>>, vector<8x64xf32>
    %c0_61 = arith.constant 0 : index
    %c0_62 = arith.constant 0 : index
    %93 = vector.load %arg11[%c0_61, %c0_62] : memref<1x64xf32, #tpu.memory_space<vmem>>, vector<1x64xf32>
    %94 = vector.broadcast %93 : vector<1x64xf32> to vector<8x64xf32>
    %95 = arith.mulf %39, %94 : vector<8x64xf32>
    %96 = arith.addf %92, %95 : vector<8x64xf32>
    %97 = arith.mulf %96, %45 : vector<8x64xf32>
    %98 = arith.truncf %97 : vector<8x64xf32> to vector<8x64xbf16>
    %c0_63 = arith.constant 0 : index
    %c0_64 = arith.constant 0 : index
    %99 = vector.load %arg12[%c0_63, %c0_64] : memref<64x32xbf16, #tpu.memory_space<vmem>>, vector<64x32xbf16>
    %cst_65 = arith.constant dense<0.000000e+00> : vector<8x32xf32>
    %100 = tpu.matmul %98, %99, %cst_65 {dimension_numbers = #tpu.dot_dimension_numbers<[1], [0], [0], [1], [0, 0, 1, 1], [], []>} : vector<8x64xbf16>, vector<64x32xbf16>, vector<8x32xf32> -> vector<8x32xf32>
    %c0_66 = arith.constant 0 : index
    %c0_67 = arith.constant 0 : index
    %c0_68 = arith.constant 0 : index
    %101 = vector.load %arg13[%c0_66, %c0_67, %c0_68] : memref<1x8x32xf32, #tpu.memory_space<vmem>>, vector<1x8x32xf32>
    %102 = vector.shape_cast %101 : vector<1x8x32xf32> to vector<8x32xf32>
    %103 = vector.shape_cast %100 : vector<8x32xf32> to vector<1x8x32xf32>
    tpu.vector_store %arg13[%c0_66, %c0_67, %c0_68], %103 {strides = array<i32>} : memref<1x8x32xf32, #tpu.memory_space<vmem>>, vector<1x8x32xf32>,
    return
  }
  func.func @transform_0(%arg0: i32, %arg1: i32) -> (i32, i32, i32) {
    %c0_i32 = arith.constant 0 : i32
    %c0_i32_0 = arith.constant 0 : i32
    return %arg0, %arg1, %c0_i32 : i32, i32, i32
  }
  func.func @transform_1(%arg0: i32, %arg1: i32) -> (i32, i32) {
    %c0_i32 = arith.constant 0 : i32
    %c0_i32_0 = arith.constant 0 : i32
    %c0_i32_1 = arith.constant 0 : i32
    return %c0_i32, %c0_i32_0 : i32, i32
  }
  func.func @transform_2(%arg0: i32, %arg1: i32) -> (i32, i32) {
    %c0_i32 = arith.constant 0 : i32
    %c0_i32_0 = arith.constant 0 : i32
    %c0_i32_1 = arith.constant 0 : i32
    return %c0_i32, %c0_i32_0 : i32, i32
  }
  func.func @transform_3(%arg0: i32, %arg1: i32) -> (i32, i32) {
    %c0_i32 = arith.constant 0 : i32
    %c0_i32_0 = arith.constant 0 : i32
    %c0_i32_1 = arith.constant 0 : i32
    return %c0_i32, %c0_i32_0 : i32, i32
  }
  func.func @transform_4(%arg0: i32, %arg1: i32) -> (i32, i32) {
    %c0_i32 = arith.constant 0 : i32
    %c0_i32_0 = arith.constant 0 : i32
    %c0_i32_1 = arith.constant 0 : i32
    return %c0_i32, %c0_i32_0 : i32, i32
  }
  func.func @transform_5(%arg0: i32, %arg1: i32) -> (i32, i32) {
    %c0_i32 = arith.constant 0 : i32
    %c0_i32_0 = arith.constant 0 : i32
    %c0_i32_1 = arith.constant 0 : i32
    return %c0_i32, %c0_i32_0 : i32, i32
  }
  func.func @transform_6(%arg0: i32, %arg1: i32) -> (i32, i32) {
    %c0_i32 = arith.constant 0 : i32
    %c0_i32_0 = arith.constant 0 : i32
    %c0_i32_1 = arith.constant 0 : i32
    return %c0_i32, %c0_i32_0 : i32, i32
  }
  func.func @transform_7(%arg0: i32, %arg1: i32) -> (i32, i32) {
    %c0_i32 = arith.constant 0 : i32
    %c0_i32_0 = arith.constant 0 : i32
    %c0_i32_1 = arith.constant 0 : i32
    return %c0_i32, %c0_i32_0 : i32, i32
  }
  func.func @transform_8(%arg0: i32, %arg1: i32) -> (i32, i32) {
    %c0_i32 = arith.constant 0 : i32
    %c0_i32_0 = arith.constant 0 : i32
    %c0_i32_1 = arith.constant 0 : i32
    return %c0_i32, %c0_i32_0 : i32, i32
  }
  func.func @transform_9(%arg0: i32, %arg1: i32) -> (i32, i32) {
    %c0_i32 = arith.constant 0 : i32
    %c0_i32_0 = arith.constant 0 : i32
    %c0_i32_1 = arith.constant 0 : i32
    return %c0_i32, %c0_i32_0 : i32, i32
  }
  func.func @transform_10(%arg0: i32, %arg1: i32) -> (i32, i32) {
    %c0_i32 = arith.constant 0 : i32
    %c0_i32_0 = arith.constant 0 : i32
    %c0_i32_1 = arith.constant 0 : i32
    return %c0_i32, %c0_i32_0 : i32, i32
  }
  func.func @transform_11(%arg0: i32, %arg1: i32) -> (i32, i32, i32) {
    %c0_i32 = arith.constant 0 : i32
    %c0_i32_0 = arith.constant 0 : i32
    return %arg0, %arg1, %c0_i32 : i32, i32, i32
  }
}

</mosaic_0001>

<bundles_post_ra>
// kernel: tpu_custom_call.1
= control target key start
LH: loop header
LB: loop body
LE: loop exit
PB: predicated region body
PF: predicated region fallthrough
CT: control target
= control target key end

     0   :  { %s3103_s0 = inlined_call_operand.vmem [shape: bf16[2,16,32], index: 0, kind: input, shape index: {}]   ;;  %s3104_s1 = inlined_call_operand.vmem [shape: bf16[32,128], index: 1, kind: input, shape index: {}]   ;;  %s3105_s2 = inlined_call_operand.vmem [shape: f32[4,64], index: 2, kind: input, shape index: {}]   ;;  %s3106_s3 = inlined_call_operand.vmem [shape: f32[1,64], index: 3, kind: input, shape index: {}]   ;;  %s3107_s4 = inlined_call_operand.hbm [shape: bf16[64,192], index: 4, kind: input, shape index: {}]   ;;  %s3108_s5 = inlined_call_operand.vmem [shape: f32[1,64], index: 5, kind: input, shape index: {}]   ;;  %s3109_s6 = inlined_call_operand.vmem [shape: f32[1,64], index: 6, kind: input, shape index: {}]   ;;  %s3110_s7 = inlined_call_operand.vmem [shape: f32[16,64], index: 7, kind: input, shape index: {}]   ;;  %s3111_s8 = inlined_call_operand.hbm [shape: f32[16,64], index: 8, kind: input, shape index: {}]   ;;  %s3112_s9 = inlined_call_operand.vmem [shape: f32[1,64], index: 9, kind: input, shape index: {}]   ;;  %s3113_s10 = inlined_call_operand.vmem [shape: bf16[64,32], index: 10, kind: input, shape index: {}]   ;;  %s3114_s11 = inlined_call_operand.hbm [shape: f32[2,16,32], index: 11, kind: output, shape index: {}]  }
   0x1   :  { %3131 = sst [smem:[#allocation30_spill]] %s3114_s11 }
   0x2   :  { %16 = vsyncpa [#allocation12], 0 }
   0x3   :  { %17 = vsyncpa [#allocation15], 0 }
   0x4   :  { %18 = vsyncpa [#allocation13], 0 }
   0x5   :  { %20 = vsyncpa [#allocation13 + $0x1], 0  ;;  %s2485_s17 = smov 0   ;;  %s2487_s18 = smov 0  }
   0x6   :  { %s2489_s19 = smov 0   ;;  %s2491_s20 = smov 0  }
   0x7   :  { %s2493_s21 = smov 0   ;;  %s2495_s22 = smov 0  }
   0x8   :  { %s2497_s23 = smov 0   ;;  %s2499_s24 = smov 0  }
   0x9 LB: > { %3132 = sst [smem:[#allocation20_spill]] %s2364_s17  ;;  %s1853_s25 = sadd.s32 4294967295, %s2392_s24   ;;  %s2392_s24 = sphi %s2499_s24, %s26_s24   ;;  %s2388_s23 = sphi %s2497_s23, %s3166_s23   ;;  %s2384_s22 = sphi %s2495_s22, %s3165_s22   ;;  %s2380_s21 = sphi %s2493_s21, %s3164_s21   ;;  %s2376_s20 = sphi %s2491_s20, %s3163_s20   ;;  %s2372_s19 = sphi %s2489_s19, %s3162_s19   ;;  %s2368_s18 = sphi %s2487_s18, %s3168_s18   ;;  %s2364_s17 = sphi %s2485_s17, %s3167_s17  }
   0xa   : > { %3133 = sst [smem:[#allocation21_spill]] %s2372_s19  ;;  %s1854_s26 = sadd.s32 4294967294, %s2392_s24  }
   0xb   : > { %3134 = sst [smem:[#allocation22_spill]] %s2384_s22  ;;  %s35_s27 = sadd.s32 1, %s2384_s22 }
   0xc   : > { %3135 = sst [smem:[#allocation23_spill]] %s2388_s23  ;;  %s38_s28 = sadd.s32 1, %s2388_s23 }
   0xd   : > { %3136 = sst [smem:[#allocation24_spill]] %s2392_s24  ;;  %p36_p0 = scmp.ge.s32.totalorder %s35_s27, 2 }
   0xe   : > { %s285_s29 = sadd.s32 1, %s2372_s19  ;;  %p295_p1 = scmp.ne.s32.totalorder %s2372_s19, %s2368_s18 }
   0xf   : > { %p296_p2 = scmp.eq.s32.totalorder %s1853_s25, 3  ;;  %s3170_s27 = smov (%p36_p0, %s35_s27), 0 }
  0x10   : > { %3137 = sst [smem:[#allocation25_spill]] %s3170_s27  ;;  %s3172_s28 = smov (!%p36_p0, %s38_s28), %s2388_s23 }
  0x11   : > { %s281_s30 = ssub.s32 %s2384_s22, %s3170_s27  ;;  %p2537_p3 = por %p296_p2, %p295_p1 }
  0x12   : > { %p40_p4 = scmp.ge.s32.totalorder %s3172_s28, 2  ;;  %p301_p5 = scmp.ne.s32.totalorder %s2368_s18, %s2364_s17 }
  0x13   : > { %s3138_s12 = scalar_select %p2537_p3, 1, 0 }
  0x14   : > { %p302_p6 = scmp.eq.s32.totalorder %s1854_s26, 3  ;;  %p1855_p7 = scmp.ge.s32.totalorder %s2392_s24, 1 }
  0x15   : > { %3139 = sst [smem:[#allocation26_spill]] %s3138_s12  ;;  %s3174_s28 = smov (%p40_p4, %s3172_s28), 0 }
  0x16   : > { %3140 = sst [smem:[#allocation27_spill]] %s3174_s28  ;;  %p2546_p8 = por %p302_p6, %p301_p5 }
  0x17   : > { %p309_p9 = scmp.lt.s32.totalorder %s2392_s24, 5  ;;  %s280_s14 = ssub.s32 %s2388_s23, %s3174_s28 }
  0x18   : > { %s3141_s13 = scalar_select %p2546_p8, 1, 0 }
  0x19   : > { %s282_s15 = sor.u32 %s281_s30, %s280_s14  ;;  %p2553_p10 = pnand %p1855_p7, %p309_p9 }
  0x1a   : > { %3142 = sst [smem:[#allocation28_spill]] %s3141_s13  ;;  %p283_p11 = scmp.eq.s32.totalorder %s282_s15, 0 }
  0x1b   : > { %s3143_s16 = scalar_select %p2553_p10, 1, 0 }
  0x1c   : > { %p2557_p12 = scmp.eq.s32.totalorder %s1853_s25, 0  ;;  %p2016_p13 = pneg %p2553_p10 }
  0x1d   : > { %s2564_s26 = scalar_select %p283_p11, %s2372_s19, %s285_s29  }
  0x1e   : > { %s3144_s27 = scalar_select %p2557_p12, 1, 0 }
  0x1f   : > { %3145 = sst [smem:[#allocation29_spill]] %s2564_s26  ;;  %s2414_s22 = smov [#allocation11]  }
  0x20   : > { %s330_s13 = sshll.u32 %s2414_s22, 4  ;;  %p2568_p0 = pnand %p2557_p12, %p2016_p13  ;;  %s331_s13 = int_to_ptr.vmem [resolvable:$true] %s330_s13 }
  0x21   : > { %s2214_s15 = scalar_lea.hbm %s3107_s4, 1024 }
  0x22   : > { %p2215_p1 = scmp.ne.s32.totalorder %s3107_s4, %s2214_s15  ;;  %p2216_p2 = pneg %p2568_p0 }
  0x23   : > { %p2221_p6 = scmp.lt.u32.totalorder %s2214_s15, %s3107_s4 }
  0x24   : > { %p2217_p4 = pnand %p2216_p2, %p2215_p1 }
  0x26   : > { %p2218_p5 = pneg %p2217_p4 }
  0x28   : > { %p2223_p7 = pnand %p2221_p6, %p2218_p5 }
  0x2a   : > { %2226 = shalt.err (!%p2223_p7)
}
  0x2b   : > { %s2227_s26 = scalar_lea.vmem %s331_s13, 1024  ;;  %p2235_p8 = scmp.lt.s32.totalorder %s331_s13, %s331_s13 }
  0x2c   : > { %p2228_p9 = scmp.ne.s32.totalorder %s331_s13, %s2227_s26  ;;  %p2236_p3 = scmp.lt.s32.totalorder %s2227_s26, %s2227_s26 }
  0x2e   : > { %p2230_p11 = pnand %p2228_p9, %p2216_p2  ;;  %p2237_p12 = por %p2236_p3, %p2235_p8 }
  0x30   : > { %p2231_p13 = pneg %p2230_p11 }
  0x32   : > { %p2238_p10 = pnand %p2237_p12, %p2231_p13 }
  0x34   : > { %2241 = shalt.err (!%p2238_p10)
}
  0x35   : > { %s2415_s23 = smov 128   ;;  %s2416_s28 = smov 8  }
  0x36   : > { %2019 = dma.hbm_to_vmem [thread:$0]  (!%p2568_p0), %s3107_s4, 1024, %s331_s13, [#allocation12], %s2415_s23, %s2415_s23, %s2416_s28  }
  0x37   : > { %s2417_s15 = smov [#allocation14]   ;;  %s2242_s17 = scalar_lea.hbm %s3111_s8, 256 }
  0x38   : > { %s352_s22 = sshll.u32 %s2417_s15, 4  ;;  %p2243_p3 = scmp.ne.s32.totalorder %s3111_s8, %s2242_s17  ;;  %s353_s22 = int_to_ptr.vmem [resolvable:$true] %s352_s22 }
  0x39   : > { %p2249_p12 = scmp.lt.u32.totalorder %s2242_s17, %s3111_s8 }
  0x3a   : > { %p2245_p8 = pnand %p2243_p3, %p2216_p2 }
  0x3c   : > { %p2246_p10 = pneg %p2245_p8 }
  0x3e   : > { %p2251_p1 = pnand %p2249_p12, %p2246_p10 }
  0x40   : > { %2254 = shalt.err (!%p2251_p1)
}
  0x41   : > { %s2255_s13 = scalar_lea.vmem %s353_s22, 256  ;;  %p2263_p7 = scmp.lt.s32.totalorder %s353_s22, %s353_s22 }
  0x42   : > { %p2256_p4 = scmp.ne.s32.totalorder %s353_s22, %s2255_s13  ;;  %p2264_p9 = scmp.lt.s32.totalorder %s2255_s13, %s2255_s13 }
  0x44   : > { %p2258_p5 = pnand %p2256_p4, %p2216_p2  ;;  %p2265_p11 = por %p2264_p9, %p2263_p7 }
  0x46   : > { %p2259_p6 = pneg %p2258_p5 }
  0x48   : > { %p2266_p13 = pnand %p2265_p11, %p2259_p6 }
  0x4a   : > { %2269 = shalt.err (!%p2266_p13)
}
  0x4b   : > { %2022 = dma.hbm_to_vmem [thread:$0]  (!%p2568_p0), %s3111_s8, 256, %s353_s22, [#allocation15], %s2415_s23, %s2415_s23, %s2416_s28  }
  0x4c   : > { %p3147_p3 = scmp.ne.s32.totalorder %s3143_s16, 0 }
  0x4d   : > { %p3148_p8 = scmp.ne.s32.totalorder (!%p3147_p3), %s3144_s27, 0 }
  0x4e   : > { %385 = sbr.rel (%p3147_p3) target bundleno = 1289 (0x509), region = 64 }
  0x55   : > { %2351 = dma.done.wait (%p3148_p8), [#allocation12], 1024  }
  0x56   : > { %2353 = vsyncadd (%p3148_p8), [#allocation12], 4294966272 }
  0x57   : > { %2355 = dma.done.wait (%p3148_p8), [#allocation15], 256  }
  0x58   : > { %2357 = vsyncadd (%p3148_p8), [#allocation15], 4294967040  ;;  %s429_s11 = sand.u32 1, %s2368_s18   ;;  %p432_p0 = scmp.lt.s32.totalorder %s2380_s21, 1 }
  0x59   : > { %s2628_s17 = sshll.u32 %s429_s11, 3  ;;  %p434_p2 = scmp.lt.s32.totalorder %s2376_s20, 1 }
  0x5a   : > { %s433_s12 = scalar_select %p432_p0, %s2380_s21, 1 }
  0x5b   : > { %s435_s16 = scalar_select %p434_p2, %s2376_s20, 1 }
  0x5c   : > { %s1863_s30 = sshll.u32 %s433_s12, 1  ;;  %s431_s15 = scalar_lea.vmem [#allocation16], %s2628_s17 }
  0x5d   : > { %s437_s23 = sadd.s32 %s1863_s30, %s435_s16  ;;  %p1865_p10 = scmp.ne.s32.totalorder %s2376_s20, 0 }
  0x5e   : > { %s1864_s28 = sshll.u32 %s437_s23, 2  ;;  %vm445_vm0 = vcmask (!%p1865_p10), 523264   ;;  %v2418_v0 = vmov (!%p1865_p10), 0.0  }
  0x5f   : > { %s439_s25 = scalar_lea.vmem %s3103_s0, %s1864_s28  ;;  %444 = sbr.rel (%p1865_p10) target bundleno = 102 (0x66), region = 76  ;;  %446 = vst.msk [vmem:[#allocation2] sm:$0xff] (!%p1865_p10), %vm445_vm0, %v2418_v0  ;;  %447 = vst.msk [vmem:[#allocation2 + $0x8] sm:$0xff] (!%p1865_p10), %vm445_vm0, %v2418_v0 }
  0x60   : > { %448 = vst.msk [vmem:[#allocation3] sm:$0xff] (!%p1865_p10), %vm445_vm0, %v2418_v0  ;;  %449 = vst.msk [vmem:[#allocation3 + $0x8] sm:$0xff] (!%p1865_p10), %vm445_vm0, %v2418_v0 }
  0x61   : > { %450 = vst.msk [vmem:[#allocation4] sm:$0xff] (!%p1865_p10), %vm445_vm0, %v2418_v0 }
  0x66 PF: > { %v2146_v1 = vld [vmem:[%s3104_s1] sm:$0xff]   ;;  %v2419_v2 = vmov 0.0   ;;  %v2147_v3 = vld [vmem:[%s3104_s1 + $0x8] sm:$0xff]   ;;  %vm2420_vm1 = vmmov 0   ;;  %vm468_vm2 = vcmask 261120   ;;  %v2421_v13 = vmov 0  }
  0x67   : > { %1986 = vmatprep.subr.bf16.mxu0 %v2419_v2  ;;  %1990 = vmatprep.mubr.msk.bf16.mxu0 %vm2420_vm1, %v2419_v2  ;;  %v451_v4 = vld [vmem:[%s439_s25] sm:$0xf]  ;;  %v2148_v5 = vld [vmem:[#allocation11 + $0x4] ss:$8 sps:$4 sm:$0xff]   ;;  %v2151_v7 = vld [vmem:[#allocation11 + $0x14] ss:$8 sps:$4 sm:$0xff]   ;;  %v715_v50 = vlaneseq }
  0x68   : > { %1987 = vmatpush3.bf16.msra.mxu0 %v2146_v1  ;;  %v2150_v6 = vld [vmem:[#allocation11] ss:$8 sps:$4 sm:$0xff]   ;;  %620 = vmatprep.subr.bf16.mxu1 %v2148_v5  ;;  %v2153_v8 = vld [vmem:[#allocation11 + $0x10] ss:$8 sps:$4 sm:$0xff]   ;;  %v2154_v9 = vld [vmem:[#allocation11 + $0x24] ss:$8 sps:$4 sm:$0xff]  }
  0x69   : > { %1988 = vmatprep.subr.bf16.mxu0 %v2419_v2  ;;  %621 = vmatpush1.bf16.msra.mxu1 %v2150_v6  ;;  %v2156_v10 = vld [vmem:[#allocation11 + $0x20] ss:$8 sps:$4 sm:$0xff]   ;;  %v2157_v11 = vld [vmem:[#allocation11 + $0x34] ss:$8 sps:$4 sm:$0xff]   ;;  %v2159_v12 = vld [vmem:[#allocation11 + $0x30] ss:$8 sps:$4 sm:$0xff]  }
  0x6a   : > { %622 = vmatprep.subr.bf16.mxu1 %v2151_v7  ;;  %652 = vmatprep.mubr.bf16.mxu1 %v2421_v13  ;;  %v1884_v14 = vld [vmem:[%s3109_s6] ss:$0 sm:$0xff]  ;;  %s2422_s12 = smov 64   ;;  %vm512_vm3 = vcmask 523264   ;;  %v1870_v22 = vld [vmem:[%s3105_s2 + $0x1] ss:$0 sm:$0xff] }
  0x6b   : > { %684 = vrot.lane.b32.xlu0 %v1884_v14, %s2422_s12  ;;  %v1869_v21 = vld [vmem:[%s3105_s2] ss:$0 sm:$0xff]  ;;  %v1871_v23 = vld [vmem:[%s3105_s2 + $0x2] ss:$0 sm:$0xff]  ;;  %vm554_vm4 = vcmask 518144   ;;  %v716_v51 = vshrl.u32 %v715_v50, 7 }
  0x6c   : > { %1989 = vmatpush3.bf16.msra.mxu0 %v2147_v3  ;;  %v1872_v31 = vld [vmem:[%s3105_s2 + $0x3] ss:$0 sm:$0xff]  ;;  %v1873_v36 = vld [vmem:[%s3106_s3] ss:$0 sm:$0xff]  ;;  %vm995_vm5 = vcmask 7168   ;;  %s2816_s24 = smov 0  }
  0x6d   : > { %623 = vmatpush1.bf16.msra.mxu1 %v2153_v8  ;;  %v1883_v52 = vld [vmem:[%s3108_s5] ss:$0 sm:$0xff]  ;;  %v717_v53 = vsub.s32 0, %v716_v51  ;;  %v857_v55 = vsub.s32 4, %v716_v51  ;;  %v892_v56 = vsub.s32 5, %v716_v51  ;;  %v927_v57 = vsub.s32 6, %v716_v51 }
  0x6e   : > { %624 = vmatprep.subr.bf16.mxu1 %v2154_v9  ;;  %v962_v58 = vsub.s32 7, %v716_v51  ;;  %v752_v8 = vsub.s32 1, %v716_v51 }
  0x6f   : > { %1991 = vmatmul.mubr.msk.bf16.vlgmr.msra.gmra.mrb[0].mxu0 %vm468_vm2, %v451_v4 }
  0x71   : > { %625 = vmatpush1.bf16.msra.mxu1 %v2156_v10 }
  0x72   : > { %626 = vmatprep.subr.bf16.mxu1 %v2157_v11 }
  0x75   : > { %627 = vmatpush1.bf16.msra.mxu1 %v2159_v12  ;;  %v787_v12 = vsub.s32 2, %v716_v51 }
 0x142   : > { %v506_v15 = vpop.f32.mrb[0].mxu0 }
 0x143   : > { %513 = vst.msk [vmem:[#allocation4 + $0x8] sm:$0xff] %vm512_vm3, %v506_v15  ;;  %v562_v16 = vsub.f32 0.0, %v506_v15  ;;  %v1992_v17 = vpop.f32.mrb[1].mxu0 }
 0x144   : > { %v509_v18 = vpop.f32.mrb[2].mxu0 }
 0x145   : > { %v563_v19 = vmul.f32 1.442695, %v562_v16  ;;  %v1993_v20 = vpop.f32.mrb[3].mxu0 }
 0x147   : > { %2160 = vpow2.f32 %v563_v19  ;;  %v822_v19 = vsub.s32 3, %v716_v51 }
 0x14a   : > { %v514_v24 = vld [vmem:[#allocation4 + $0x5] sm:$0xff]  ;;  %v553_v29 = vld [vmem:[#allocation4 + $0xd] sm:$0x7] }
 0x14b   : > { %v521_v25 = vld [vmem:[#allocation4 + $0x6] sm:$0xff]  ;;  %v520_v27 = vmul.f32 %v1869_v21, %v514_v24  ;;  %v685_v21 = vpop.permute.xlu0 %684 }
 0x14c   : > { %v529_v26 = vld [vmem:[#allocation4 + $0x7] sm:$0xff]  ;;  %v527_v28 = vmul.f32 %v1870_v22, %v521_v25 }
 0x14d   : > { %v537_v30 = vld [vmem:[#allocation4 + $0x8] sm:$0xff]  ;;  %555 = vst.msk [vmem:[#allocation4 + $0x5] sm:$0x7] %vm554_vm4, %v553_v29  ;;  %v535_v33 = vmul.f32 %v1871_v23, %v529_v26 }
 0x14e   : > { %v528_v32 = vadd.f32 %v527_v28, %v520_v27  ;;  %v543_v35 = vmul.f32 %v1872_v31, %v537_v30 }
 0x150   : > { %v536_v34 = vadd.f32 %v535_v33, %v528_v32 }
 0x151   : > { %v2161_v37 = vpop.eup %2160 }
 0x152   : > { %v544_v38 = vadd.f32 %v543_v35, %v536_v34  ;;  %v565_v39 = vadd.f32 1.0, %v2161_v37  ;;  %v2725_v34 = vld [vmem:[#allocation2] sm:$0xff]   ;;  %v2727_v35 = vld [vmem:[#allocation2 + $0x8] sm:$0xff]   ;;  %v2732_v37 = vld [vmem:[#allocation3 + $0x8] sm:$0xff]  }
 0x154   : > { %v552_v40 = vadd.f32 %v1873_v36, %v544_v38  ;;  %2162 = vrcp.f32 %v565_v39  ;;  %v2729_v36 = vld [vmem:[#allocation3] sm:$0xff]  }
 0x156   : > { %v556_v41 = vsub.f32 0.0, %v552_v40 }
 0x158   : > { %v557_v42 = vmul.f32 1.442695, %v556_v41 }
 0x15a   : > { %2164 = vpow2.f32 %v557_v42 }
 0x15e   : > { %v2163_v43 = vpop.eup %2162 }
 0x15f   : > { %v2669_v44 = vmul.f32 %v2163_v43, %v506_v15 }
 0x164   : > { %v2165_v45 = vpop.eup %2164 }
 0x165   : > { %v559_v46 = vadd.f32 1.0, %v2165_v45 }
 0x167   : > { %2166 = vrcp.f32 %v559_v46 }
 0x171   : > { %v2167_v47 = vpop.eup %2166 }
 0x172   : > { %v2671_v48 = vmul.f32 %v2167_v47, %v552_v40 }
 0x174   : > { %706 = vrot.lane.b32.xlu1 %v2671_v48, %s2422_s12  ;;  %v568_v49 = vpack.c.bf16 %v2671_v48, %v2671_v48 }
 0x176   : > { %1882 = vmatmul.mubr.msk.bf16.vlgmr.msra.gmra.mrb[0].mxu1 %vm512_vm3, %v568_v49 }
 0x1e6   : > { %v707_v28 = vpop.permute.xlu1 %706 }
 0x249   : > { %v2681_v54 = vpop.f32.mrb[0].mxu1 }
 0x24a   : > { %v668_v59 = vadd.f32 %v1883_v52, %v2681_v54  ;;  %v656_v60 = vpop.f32.mrb[1].mxu1  ;;  %v687_v22 = vadd.f32 %v685_v21, %v2681_v54 }
 0x24b   : > { %v718_v61 = vrot.slane %v656_v60, %v717_v53  ;;  %v658_v62 = vpop.f32.mrb[2].mxu1  ;;  %v2684_v0 = vrot.slane %v656_v60, %v857_v55  ;;  %v2686_v1 = vrot.slane %v656_v60, %v892_v56  ;;  %v2688_v3 = vrot.slane %v656_v60, %v927_v57 }
 0x24c   : > { %v670_v63 = vand.u32 2147483647, %v668_v59  ;;  %v2690_v4 = vrot.slane %v656_v60, %v962_v58  ;;  %v659_v5 = vpop.f32.mrb[3].mxu1  ;;  %v753_v9 = vrot.slane %v656_v60, %v752_v8  ;;  %v669_v14 = vmax.f32 %v668_v59, 0.0 }
 0x24d   : > { %724 = vbcast.lane.b32.xlu1 %v718_v61, 264  ;;  %720 = vbcast.lane.b32.xlu0 %v718_v61, 256  ;;  %v788_v16 = vrot.slane %v656_v60, %v787_v12  ;;  %v823_v20 = vrot.slane %v656_v60, %v822_v19  ;;  %v689_v23 = vand.u32 2147483647, %v687_v22  ;;  %v688_v33 = vmax.f32 %v687_v22, 0.0 }
 0x24e   : > { %v671_v6 = vsub.f32 0.0, %v670_v63 }
 0x24f   : > { %v690_v24 = vsub.f32 0.0, %v689_v23 }
 0x250   : > { %v672_v7 = vmul.f32 1.442695, %v671_v6 }
 0x251   : > { %732 = vbcast.lane.b32.xlu1 %v718_v61, 280  ;;  %728 = vbcast.lane.b32.xlu0 %v718_v61, 272  ;;  %v691_v25 = vmul.f32 1.442695, %v690_v24 }
 0x252   : > { %2168 = vpow2.f32 %v672_v7 }
 0x255   : > { %740 = vbcast.lane.b32.xlu1 %v718_v61, 296  ;;  %736 = vbcast.lane.b32.xlu0 %v718_v61, 288 }
 0x259   : > { %748 = vbcast.lane.b32.xlu1 %v718_v61, 312  ;;  %744 = vbcast.lane.b32.xlu0 %v718_v61, 304 }
 0x25c   : > { %v2169_v10 = vpop.eup %2168 }
 0x25d   : > { %v674_v11 = vadd.f32 1.0, %v2169_v10  ;;  %759 = vbcast.lane.b32.xlu1 %v753_v9, 264  ;;  %755 = vbcast.lane.b32.xlu0 %v753_v9, 256 }
 0x25f   : > { %2170 = vlog2.f32 %v674_v11 }
 0x260   : > { %2172 = vpow2.f32 %v691_v25 }
 0x261   : > { %767 = vbcast.lane.b32.xlu1 %v753_v9, 280  ;;  %763 = vbcast.lane.b32.xlu0 %v753_v9, 272 }
 0x265   : > { %775 = vbcast.lane.b32.xlu1 %v753_v9, 296  ;;  %771 = vbcast.lane.b32.xlu0 %v753_v9, 288 }
 0x269   : > { %v2171_v13 = vpop.eup %2170  ;;  %783 = vbcast.lane.b32.xlu1 %v753_v9, 312  ;;  %779 = vbcast.lane.b32.xlu0 %v753_v9, 304 }
 0x26a   : > { %v676_v15 = vmul.f32 0.6931472, %v2171_v13  ;;  %v2173_v26 = vpop.eup %2172 }
 0x26b   : > { %v693_v27 = vadd.f32 1.0, %v2173_v26 }
 0x26c   : > { %v677_v17 = vadd.f32 %v676_v15, %v669_v14 }
 0x26d   : > { %794 = vbcast.lane.b32.xlu1 %v788_v16, 264  ;;  %790 = vbcast.lane.b32.xlu0 %v788_v16, 256  ;;  %2174 = vlog2.f32 %v693_v27 }
 0x26e   : > { %697 = vst.msk [vmem:[#allocation5] sm:$0xff] %vm512_vm3, %v677_v17  ;;  %v703_v18 = vmul.f32 %v677_v17, %v2671_v48 }
 0x270   : > { %704 = vst.msk [vmem:[#allocation7] sm:$0xff] %vm512_vm3, %v703_v18 }
 0x271   : > { %802 = vbcast.lane.b32.xlu1 %v788_v16, 280  ;;  %798 = vbcast.lane.b32.xlu0 %v788_v16, 272 }
 0x275   : > { %810 = vbcast.lane.b32.xlu1 %v788_v16, 296  ;;  %806 = vbcast.lane.b32.xlu0 %v788_v16, 288 }
 0x277   : > { %v2175_v29 = vpop.eup %2174 }
 0x278   : > { %v695_v30 = vmul.f32 0.6931472, %v2175_v29 }
 0x279   : > { %818 = vbcast.lane.b32.xlu1 %v788_v16, 312  ;;  %814 = vbcast.lane.b32.xlu0 %v788_v16, 304 }
 0x27a   : > { %v696_v38 = vadd.f32 %v695_v30, %v688_v33 }
 0x27c   : > { %v709_v42 = vmul.f32 %v707_v28, %v696_v38 }
 0x27d   : > { %829 = vbcast.lane.b32.xlu1 %v823_v20, 264  ;;  %825 = vbcast.lane.b32.xlu0 %v823_v20, 256 }
 0x281   : > { %837 = vbcast.lane.b32.xlu1 %v823_v20, 280  ;;  %833 = vbcast.lane.b32.xlu0 %v823_v20, 272 }
 0x285   : > { %845 = vbcast.lane.b32.xlu1 %v823_v20, 296  ;;  %841 = vbcast.lane.b32.xlu0 %v823_v20, 288 }
 0x289   : > { %853 = vbcast.lane.b32.xlu1 %v823_v20, 312  ;;  %849 = vbcast.lane.b32.xlu0 %v823_v20, 304 }
 0x28d   : > { %864 = vbcast.lane.b32.xlu1 %v2684_v0, 264  ;;  %860 = vbcast.lane.b32.xlu0 %v2684_v0, 256 }
 0x291   : > { %872 = vbcast.lane.b32.xlu1 %v2684_v0, 280  ;;  %868 = vbcast.lane.b32.xlu0 %v2684_v0, 272 }
 0x295   : > { %880 = vbcast.lane.b32.xlu1 %v2684_v0, 296  ;;  %876 = vbcast.lane.b32.xlu0 %v2684_v0, 288 }
 0x299   : > { %888 = vbcast.lane.b32.xlu1 %v2684_v0, 312  ;;  %884 = vbcast.lane.b32.xlu0 %v2684_v0, 304 }
 0x29d   : > { %899 = vbcast.lane.b32.xlu1 %v2686_v1, 264  ;;  %895 = vbcast.lane.b32.xlu0 %v2686_v1, 256 }
 0x2a1   : > { %907 = vbcast.lane.b32.xlu1 %v2686_v1, 280  ;;  %903 = vbcast.lane.b32.xlu0 %v2686_v1, 272 }
 0x2a5   : > { %915 = vbcast.lane.b32.xlu1 %v2686_v1, 296  ;;  %911 = vbcast.lane.b32.xlu0 %v2686_v1, 288 }
 0x2a9   : > { %923 = vbcast.lane.b32.xlu1 %v2686_v1, 312  ;;  %919 = vbcast.lane.b32.xlu0 %v2686_v1, 304 }
 0x2ad   : > { %934 = vbcast.lane.b32.xlu1 %v2688_v3, 264  ;;  %930 = vbcast.lane.b32.xlu0 %v2688_v3, 256 }
 0x2b1   : > { %942 = vbcast.lane.b32.xlu1 %v2688_v3, 280  ;;  %938 = vbcast.lane.b32.xlu0 %v2688_v3, 272 }
 0x2b5   : > { %950 = vbcast.lane.b32.xlu1 %v2688_v3, 296  ;;  %946 = vbcast.lane.b32.xlu0 %v2688_v3, 288 }
 0x2b9   : > { %958 = vbcast.lane.b32.xlu1 %v2688_v3, 312  ;;  %954 = vbcast.lane.b32.xlu0 %v2688_v3, 304 }
 0x2bd   : > { %969 = vbcast.lane.b32.xlu1 %v2690_v4, 264  ;;  %965 = vbcast.lane.b32.xlu0 %v2690_v4, 256 }
 0x2bf   : > { %v725_v31 = vpop.permute.xlu1 %724  ;;  %v721_v32 = vpop.permute.xlu0 %720 }
 0x2c0   : > { %997 = vst.msk [vmem:[#allocation9 + $0x8] sm:$0xff] %vm995_vm5, %v725_v31  ;;  %996 = vst.msk [vmem:[#allocation9] sm:$0xff] %vm995_vm5, %v721_v32 }
 0x2c1   : > { %977 = vbcast.lane.b32.xlu1 %v2690_v4, 280  ;;  %973 = vbcast.lane.b32.xlu0 %v2690_v4, 272 }
 0x2c3   : > { %v733_v39 = vpop.permute.xlu1 %732  ;;  %v729_v40 = vpop.permute.xlu0 %728 }
 0x2c4   : > { %999 = vst.msk [vmem:[#allocation9 + $0x18] sm:$0xff] %vm995_vm5, %v733_v39  ;;  %998 = vst.msk [vmem:[#allocation9 + $0x10] sm:$0xff] %vm995_vm5, %v729_v40 }
 0x2c5   : > { %985 = vbcast.lane.b32.xlu1 %v2690_v4, 296  ;;  %981 = vbcast.lane.b32.xlu0 %v2690_v4, 288 }
 0x2c7   : > { %v741_v41 = vpop.permute.xlu1 %740  ;;  %v737_v43 = vpop.permute.xlu0 %736 }
 0x2c8   : > { %1001 = vst.msk [vmem:[#allocation9 + $0x28] sm:$0xff] %vm995_vm5, %v741_v41  ;;  %1000 = vst.msk [vmem:[#allocation9 + $0x20] sm:$0xff] %vm995_vm5, %v737_v43 }
 0x2c9   : > { %711 = vrot.lane.b32.xlu1 %v709_v42, %s2422_s12  ;;  %699 = vrot.lane.b32.xlu0 %v696_v38, %s2422_s12 }
 0x2cb   : > { %v749_v45 = vpop.permute.xlu1 %748  ;;  %v745_v46 = vpop.permute.xlu0 %744 }
 0x2cc   : > { %1003 = vst.msk [vmem:[#allocation9 + $0x38] sm:$0xff] %vm995_vm5, %v749_v45  ;;  %1002 = vst.msk [vmem:[#allocation9 + $0x30] sm:$0xff] %vm995_vm5, %v745_v46 }
 0x2cd   : > { %993 = vbcast.lane.b32.xlu1 %v2690_v4, 312  ;;  %989 = vbcast.lane.b32.xlu0 %v2690_v4, 304 }
 0x2cf   : > { %v760_v47 = vpop.permute.xlu1 %759  ;;  %v756_v49 = vpop.permute.xlu0 %755 }
 0x2d0   : > { %1005 = vst.msk [vmem:[#allocation9 + $0x48] sm:$0xff] %vm995_vm5, %v760_v47  ;;  %1004 = vst.msk [vmem:[#allocation9 + $0x40] sm:$0xff] %vm995_vm5, %v756_v49 }
 0x2d3   : > { %v768_v50 = vpop.permute.xlu1 %767  ;;  %v764_v51 = vpop.permute.xlu0 %763 }
 0x2d4   : > { %1007 = vst.msk [vmem:[#allocation9 + $0x58] sm:$0xff] %vm995_vm5, %v768_v50  ;;  %1006 = vst.msk [vmem:[#allocation9 + $0x50] sm:$0xff] %vm995_vm5, %v764_v51 }
 0x2d7   : > { %v776_v52 = vpop.permute.xlu1 %775  ;;  %v772_v53 = vpop.permute.xlu0 %771 }
 0x2d8   : > { %1009 = vst.msk [vmem:[#allocation9 + $0x68] sm:$0xff] %vm995_vm5, %v776_v52  ;;  %1008 = vst.msk [vmem:[#allocation9 + $0x60] sm:$0xff] %vm995_vm5, %v772_v53 }
 0x2db   : > { %v784_v54 = vpop.permute.xlu1 %783  ;;  %v780_v55 = vpop.permute.xlu0 %779 }
 0x2dc   : > { %1011 = vst.msk [vmem:[#allocation9 + $0x78] sm:$0xff] %vm995_vm5, %v784_v54  ;;  %1010 = vst.msk [vmem:[#allocation9 + $0x70] sm:$0xff] %vm995_vm5, %v780_v55 }
 0x2df   : > { %v795_v56 = vpop.permute.xlu1 %794  ;;  %v791_v57 = vpop.permute.xlu0 %790 }
 0x2e0   : > { %1013 = vst.msk [vmem:[#allocation9 + $0x88] sm:$0xff] %vm995_vm5, %v795_v56  ;;  %1012 = vst.msk [vmem:[#allocation9 + $0x80] sm:$0xff] %vm995_vm5, %v791_v57 }
 0x2e3   : > { %v803_v58 = vpop.permute.xlu1 %802  ;;  %v799_v59 = vpop.permute.xlu0 %798 }
 0x2e4   : > { %1015 = vst.msk [vmem:[#allocation9 + $0x98] sm:$0xff] %vm995_vm5, %v803_v58  ;;  %1014 = vst.msk [vmem:[#allocation9 + $0x90] sm:$0xff] %vm995_vm5, %v799_v59 }
 0x2e7   : > { %v811_v60 = vpop.permute.xlu1 %810  ;;  %v807_v61 = vpop.permute.xlu0 %806 }
 0x2e8   : > { %1017 = vst.msk [vmem:[#allocation9 + $0xa8] sm:$0xff] %vm995_vm5, %v811_v60  ;;  %1016 = vst.msk [vmem:[#allocation9 + $0xa0] sm:$0xff] %vm995_vm5, %v807_v61 }
 0x2eb   : > { %v819_v62 = vpop.permute.xlu1 %818  ;;  %v815_v63 = vpop.permute.xlu0 %814 }
 0x2ec   : > { %1019 = vst.msk [vmem:[#allocation9 + $0xb8] sm:$0xff] %vm995_vm5, %v819_v62  ;;  %1018 = vst.msk [vmem:[#allocation9 + $0xb0] sm:$0xff] %vm995_vm5, %v815_v63 }
 0x2ef   : > { %v830_v0 = vpop.permute.xlu1 %829  ;;  %v826_v1 = vpop.permute.xlu0 %825 }
 0x2f0   : > { %1021 = vst.msk [vmem:[#allocation9 + $0xc8] sm:$0xff] %vm995_vm5, %v830_v0  ;;  %1020 = vst.msk [vmem:[#allocation9 + $0xc0] sm:$0xff] %vm995_vm5, %v826_v1 }
 0x2f3   : > { %v838_v3 = vpop.permute.xlu1 %837  ;;  %v834_v4 = vpop.permute.xlu0 %833 }
 0x2f4   : > { %1023 = vst.msk [vmem:[#allocation9 + $0xd8] sm:$0xff] %vm995_vm5, %v838_v3  ;;  %1022 = vst.msk [vmem:[#allocation9 + $0xd0] sm:$0xff] %vm995_vm5, %v834_v4 }
 0x2f7   : > { %v846_v5 = vpop.permute.xlu1 %845  ;;  %v842_v6 = vpop.permute.xlu0 %841 }
 0x2f8   : > { %1025 = vst.msk [vmem:[#allocation9 + $0xe8] sm:$0xff] %vm995_vm5, %v846_v5  ;;  %1024 = vst.msk [vmem:[#allocation9 + $0xe0] sm:$0xff] %vm995_vm5, %v842_v6 }
 0x2fb   : > { %v854_v7 = vpop.permute.xlu1 %853  ;;  %v850_v8 = vpop.permute.xlu0 %849 }
 0x2fc   : > { %1027 = vst.msk [vmem:[#allocation9 + $0xf8] sm:$0xff] %vm995_vm5, %v854_v7  ;;  %1026 = vst.msk [vmem:[#allocation9 + $0xf0] sm:$0xff] %vm995_vm5, %v850_v8 }
 0x2ff   : > { %v865_v9 = vpop.permute.xlu1 %864  ;;  %v861_v10 = vpop.permute.xlu0 %860 }
 0x300   : > { %1029 = vst.msk [vmem:[#allocation9 + $0x108] sm:$0xff] %vm995_vm5, %v865_v9  ;;  %1028 = vst.msk [vmem:[#allocation9 + $0x100] sm:$0xff] %vm995_vm5, %v861_v10 }
 0x303   : > { %v873_v11 = vpop.permute.xlu1 %872  ;;  %v869_v12 = vpop.permute.xlu0 %868 }
 0x304   : > { %1031 = vst.msk [vmem:[#allocation9 + $0x118] sm:$0xff] %vm995_vm5, %v873_v11  ;;  %1030 = vst.msk [vmem:[#allocation9 + $0x110] sm:$0xff] %vm995_vm5, %v869_v12 }
 0x307   : > { %v881_v13 = vpop.permute.xlu1 %880  ;;  %v877_v14 = vpop.permute.xlu0 %876 }
 0x308   : > { %1033 = vst.msk [vmem:[#allocation9 + $0x128] sm:$0xff] %vm995_vm5, %v881_v13  ;;  %1032 = vst.msk [vmem:[#allocation9 + $0x120] sm:$0xff] %vm995_vm5, %v877_v14 }
 0x30b   : > { %v889_v15 = vpop.permute.xlu1 %888  ;;  %v885_v16 = vpop.permute.xlu0 %884 }
 0x30c   : > { %1035 = vst.msk [vmem:[#allocation9 + $0x138] sm:$0xff] %vm995_vm5, %v889_v15  ;;  %1034 = vst.msk [vmem:[#allocation9 + $0x130] sm:$0xff] %vm995_vm5, %v885_v16 }
 0x30f   : > { %v900_v17 = vpop.permute.xlu1 %899  ;;  %v896_v18 = vpop.permute.xlu0 %895 }
 0x310   : > { %1037 = vst.msk [vmem:[#allocation9 + $0x148] sm:$0xff] %vm995_vm5, %v900_v17  ;;  %1036 = vst.msk [vmem:[#allocation9 + $0x140] sm:$0xff] %vm995_vm5, %v896_v18 }
 0x313   : > { %v908_v19 = vpop.permute.xlu1 %907  ;;  %v904_v20 = vpop.permute.xlu0 %903 }
 0x314   : > { %1039 = vst.msk [vmem:[#allocation9 + $0x158] sm:$0xff] %vm995_vm5, %v908_v19  ;;  %1038 = vst.msk [vmem:[#allocation9 + $0x150] sm:$0xff] %vm995_vm5, %v904_v20 }
 0x317   : > { %v916_v21 = vpop.permute.xlu1 %915  ;;  %v912_v22 = vpop.permute.xlu0 %911 }
 0x318   : > { %1041 = vst.msk [vmem:[#allocation9 + $0x168] sm:$0xff] %vm995_vm5, %v916_v21  ;;  %1040 = vst.msk [vmem:[#allocation9 + $0x160] sm:$0xff] %vm995_vm5, %v912_v22 }
 0x31b   : > { %v924_v23 = vpop.permute.xlu1 %923  ;;  %v920_v24 = vpop.permute.xlu0 %919 }
 0x31c   : > { %1043 = vst.msk [vmem:[#allocation9 + $0x178] sm:$0xff] %vm995_vm5, %v924_v23  ;;  %1042 = vst.msk [vmem:[#allocation9 + $0x170] sm:$0xff] %vm995_vm5, %v920_v24 }
 0x31f   : > { %v935_v25 = vpop.permute.xlu1 %934  ;;  %v931_v26 = vpop.permute.xlu0 %930 }
 0x320   : > { %1045 = vst.msk [vmem:[#allocation9 + $0x188] sm:$0xff] %vm995_vm5, %v935_v25  ;;  %1044 = vst.msk [vmem:[#allocation9 + $0x180] sm:$0xff] %vm995_vm5, %v931_v26 }
 0x323   : > { %v943_v27 = vpop.permute.xlu1 %942  ;;  %v939_v28 = vpop.permute.xlu0 %938 }
 0x324   : > { %1047 = vst.msk [vmem:[#allocation9 + $0x198] sm:$0xff] %vm995_vm5, %v943_v27  ;;  %1046 = vst.msk [vmem:[#allocation9 + $0x190] sm:$0xff] %vm995_vm5, %v939_v28 }
 0x327   : > { %v951_v29 = vpop.permute.xlu1 %950  ;;  %v947_v30 = vpop.permute.xlu0 %946 }
 0x328   : > { %1049 = vst.msk [vmem:[#allocation9 + $0x1a8] sm:$0xff] %vm995_vm5, %v951_v29  ;;  %1048 = vst.msk [vmem:[#allocation9 + $0x1a0] sm:$0xff] %vm995_vm5, %v947_v30 }
 0x32b   : > { %v959_v31 = vpop.permute.xlu1 %958  ;;  %v955_v32 = vpop.permute.xlu0 %954 }
 0x32c   : > { %1051 = vst.msk [vmem:[#allocation9 + $0x1b8] sm:$0xff] %vm995_vm5, %v959_v31  ;;  %1050 = vst.msk [vmem:[#allocation9 + $0x1b0] sm:$0xff] %vm995_vm5, %v955_v32 }
 0x32f   : > { %v970_v33 = vpop.permute.xlu1 %969  ;;  %v966_v38 = vpop.permute.xlu0 %965 }
 0x330   : > { %1053 = vst.msk [vmem:[#allocation9 + $0x1c8] sm:$0xff] %vm995_vm5, %v970_v33  ;;  %1052 = vst.msk [vmem:[#allocation9 + $0x1c0] sm:$0xff] %vm995_vm5, %v966_v38 }
 0x333   : > { %v978_v39 = vpop.permute.xlu1 %977  ;;  %v974_v40 = vpop.permute.xlu0 %973 }
 0x334   : > { %1055 = vst.msk [vmem:[#allocation9 + $0x1d8] sm:$0xff] %vm995_vm5, %v978_v39  ;;  %1054 = vst.msk [vmem:[#allocation9 + $0x1d0] sm:$0xff] %vm995_vm5, %v974_v40 }
 0x337   : > { %v986_v41 = vpop.permute.xlu1 %985  ;;  %v982_v42 = vpop.permute.xlu0 %981 }
 0x338   : > { %1057 = vst.msk [vmem:[#allocation9 + $0x1e8] sm:$0xff] %vm995_vm5, %v986_v41  ;;  %1056 = vst.msk [vmem:[#allocation9 + $0x1e0] sm:$0xff] %vm995_vm5, %v982_v42 }
 0x33b   : > { %v712_v43 = vpop.permute.xlu1 %711  ;;  %v700_v45 = vpop.permute.xlu0 %699 }
 0x33c   : > { %714 = vst.msk [vmem:[#allocation8] sm:$0xff] %vm512_vm3, %v712_v43  ;;  %702 = vst.msk [vmem:[#allocation6] sm:$0xff] %vm512_vm3, %v700_v45 }
 0x33f   : > { %v994_v46 = vpop.permute.xlu1 %993  ;;  %v990_v47 = vpop.permute.xlu0 %989 }
 0x340   : > { %1059 = vst.msk [vmem:[#allocation9 + $0x1f8] sm:$0xff] %vm995_vm5, %v994_v46  ;;  %1058 = vst.msk [vmem:[#allocation9 + $0x1f0] sm:$0xff] %vm995_vm5, %v990_v47 }
 0x341 LB: >> { %v2423_v49 = vmov 0   ;;  %s1974_s16 = sshll.u32 %s2412_s24, 8  ;;  %s2869_s23 = sshll.u32 %s2412_s24, 2  ;;  %v2874_v19 = vld [vmem:[%s3110_s7 + $0x8] sm:$0xff]  ;;  %v2883_v21 = vld [vmem:[%s3110_s7] sm:$0xff]  ;;  %v2892_v25 = vld [vmem:[#allocation14] sm:$0xff]  ;;  %s2412_s24 = sphi %s2816_s24, %s1069_s24   ;;  %v2408_v34 = vphi %v2725_v34, %v3152_v34   ;;  %v2404_v35 = vphi %v2727_v35, %v3151_v35   ;;  %v2400_v36 = vphi %v2729_v36, %v3150_v36   ;;  %v2396_v37 = vphi %v2732_v37, %v3149_v37  }
 0x342   : >> { %2177 = vset.pattern.permute.xlu1 %v2423_v49  ;;  %2176 = vset.pattern.permute.xlu0 %v2423_v49  ;;  %s2834_s30 = scalar_lea.vmem [#allocation9], %s1974_s16  ;;  %s2877_s14 = scalar_lea.vmem [#allocation5], %s2869_s23  ;;  %v2885_v22 = vld [vmem:[#allocation14 + $0x8] sm:$0xff]  ;;  %vm1193_vm6 = vcmask 516096  }
 0x343   : >> { %v1886_v20 = vld [vmem:[%s2877_s14] ss:$0 sm:$0xff]  ;;  %s2889_s29 = scalar_lea.vmem [#allocation6], %s2869_s23  ;;  %s2898_s26 = scalar_lea.vmem [#allocation8], %s2869_s23 }
 0x344   : >> { %v1086_v23 = vmul.f32 %v1886_v20, %v2874_v19  ;;  %v1887_v24 = vld [vmem:[%s2889_s29] ss:$0 sm:$0xff]  ;;  %v1085_v26 = vmul.f32 %v1886_v20, %v2883_v21  ;;  %s2902_s13 = scalar_lea.vmem [#allocation7], %s2869_s23  ;;  %s2951_s19 = scalar_lea.vmem [#allocation10], %s2869_s23 }
 0x345   : >> { %v1098_v27 = vmul.f32 %v1887_v24, %v2885_v22  ;;  %v1097_v28 = vmul.f32 %v1887_v24, %v2892_v25  ;;  %v1890_v43 = vld [vmem:[%s2898_s26] ss:$0 sm:$0xff]  ;;  %v1919_v24 = vld [vmem:[%s2877_s14 + $0x2] ss:$0 sm:$0xff]  ;;  %s1069_s24 = sadd.s32 1, %s2412_s24  }
 0x346   : >> { %v1089_v29 = vmul.f32 1.442695, %v1086_v23  ;;  %v1087_v30 = vmul.f32 1.442695, %v1085_v26  ;;  %v1889_v45 = vld [vmem:[%s2902_s13] ss:$0 sm:$0xff] }
 0x347   : >> { %v1109_v50 = vld [vmem:[%s2834_s30 + $0x20] sm:$0xff]  ;;  %v1110_v52 = vld [vmem:[%s2834_s30 + $0x28] sm:$0xff]  ;;  %v1108_v54 = vld [vmem:[%s2834_s30 + $0x18] sm:$0xff]  ;;  %v1101_v31 = vmul.f32 1.442695, %v1098_v27  ;;  %p1066_p12 = scmp.ge.s32.totalorder %s1069_s24, 2  }
 0x348   : >> { %v1105_v51 = vld [vmem:[%s2834_s30] sm:$0xff]  ;;  %1141 = vperm.xlu1 %2177, %v1109_v50   ;;  %v1106_v53 = vld [vmem:[%s2834_s30 + $0x8] sm:$0xff]  ;;  %v1107_v55 = vld [vmem:[%s2834_s30 + $0x10] sm:$0xff]  ;;  %v1099_v32 = vmul.f32 1.442695, %v1097_v28  ;;  %2178 = vpow2.f32 %v1089_v29  ;;  %1994 = vmatprep.subr.bf16.mxu0 (%p1066_p12), %v2419_v2  ;;  %s1667_s16 = sshll.u32 (%p1066_p12), %s431_s15, 4  ;;  %s3047_s16 = int_to_ptr.vmem [resolvable:$true] %s1667_s16 }
 0x349   : >> { %1119 = vperm.xlu0 %2176, %v1105_v51   ;;  %v1112_v56 = vld [vmem:[%s2834_s30 + $0x38] sm:$0xff]  ;;  %v1111_v57 = vld [vmem:[%s2834_s30 + $0x30] sm:$0xff]  ;;  %v1900_v58 = vld [vmem:[%s2834_s30 + $0x48] sm:$0xff]  ;;  %2180 = vpow2.f32 %v1087_v30  ;;  %2002 = vmatprep.mubr.msk.bf16.mxu0 (%p1066_p12), %vm2420_vm1, %v2419_v2  ;;  %s3154_s23 = sld [smem:[#allocation30_spill]] (%p1066_p12)  ;;  %s2424_s27 = smov (%p1066_p12), [#allocation16]  }
 0x34a   : >> { %v1899_v59 = vld [vmem:[%s2834_s30 + $0x40] sm:$0xff]  ;;  %v1904_v60 = vld [vmem:[%s2834_s30 + $0x68] sm:$0xff]  ;;  %v1902_v7 = vld [vmem:[%s2834_s30 + $0x58] sm:$0xff]  ;;  %2182 = vpow2.f32 %v1101_v31 }
 0x34b   : >> { %v1903_v61 = vld [vmem:[%s2834_s30 + $0x60] sm:$0xff]  ;;  %v1924_v62 = vld [vmem:[%s2834_s30 + $0x88] sm:$0xff]  ;;  %v1901_v8 = vld [vmem:[%s2834_s30 + $0x50] sm:$0xff]  ;;  %2184 = vpow2.f32 %v1099_v32  ;;  %v1327_v32 = vmul.f32 %v1919_v24, %v2874_v19 }
 0x34c   : >> { %1146 = vperm.xlu1 %2177, %v1110_v52   ;;  %v1923_v63 = vld [vmem:[%s2834_s30 + $0x80] sm:$0xff]  ;;  %v1928_v0 = vld [vmem:[%s2834_s30 + $0xa8] sm:$0xff]  ;;  %v1906_v9 = vld [vmem:[%s2834_s30 + $0x78] sm:$0xff] }
 0x34d   : >> { %1124 = vperm.xlu0 %2176, %v1106_v53   ;;  %v1927_v1 = vld [vmem:[%s2834_s30 + $0xa0] sm:$0xff]  ;;  %v1948_v3 = vld [vmem:[%s2834_s30 + $0xc8] sm:$0xff]  ;;  %v1905_v10 = vld [vmem:[%s2834_s30 + $0x70] sm:$0xff] }
 0x34e   : >> { %v1947_v4 = vld [vmem:[%s2834_s30 + $0xc0] sm:$0xff]  ;;  %v1952_v5 = vld [vmem:[%s2834_s30 + $0xe8] sm:$0xff]  ;;  %v1926_v11 = vld [vmem:[%s2834_s30 + $0x98] sm:$0xff] }
 0x34f   : >> { %v1951_v6 = vld [vmem:[%s2834_s30 + $0xe0] sm:$0xff]  ;;  %v1925_v12 = vld [vmem:[%s2834_s30 + $0x90] sm:$0xff]  ;;  %v1930_v13 = vld [vmem:[%s2834_s30 + $0xb8] sm:$0xff]  ;;  %s3155_s28 = smov (%p1066_p12), %s3154_s23 }
 0x350   : >> { %1164 = vperm.xlu1 %2177, %v1108_v54   ;;  %v1929_v14 = vld [vmem:[%s2834_s30 + $0xb0] sm:$0xff]  ;;  %v1950_v15 = vld [vmem:[%s2834_s30 + $0xd8] sm:$0xff]  ;;  %v1920_v31 = vld [vmem:[%s2889_s29 + $0x2] ss:$0 sm:$0xff] }
 0x351   : >> { %1159 = vperm.xlu0 %2176, %v1107_v55   ;;  %v1949_v16 = vld [vmem:[%s2834_s30 + $0xd0] sm:$0xff]  ;;  %v1954_v17 = vld [vmem:[%s2834_s30 + $0xf8] sm:$0xff] }
 0x352   : >> { %v1953_v18 = vld [vmem:[%s2834_s30 + $0xf0] sm:$0xff]  ;;  %v2179_v39 = vpop.eup %2178 }
 0x353   : >> { %v2181_v40 = vpop.eup %2180  ;;  %v1114_v50 = vmul.f32 %v2404_v35, %v2179_v39  ;;  %v1339_v39 = vmul.f32 %v1920_v31, %v2885_v22 }
 0x354   : >> { %1176 = vperm.xlu1 %2177, %v1112_v56   ;;  %v2183_v41 = vpop.eup %2182  ;;  %v1113_v51 = vmul.f32 %v2408_v34, %v2181_v40  ;;  %v1943_v40 = vld [vmem:[%s2877_s14 + $0x3] ss:$0 sm:$0xff] }
 0x355   : >> { %1171 = vperm.xlu0 %2176, %v1111_v57   ;;  %v2185_v42 = vpop.eup %2184  ;;  %v1136_v52 = vmul.f32 %v2396_v37, %v2183_v41 }
 0x356   : >> { %v1135_v56 = vmul.f32 %v2400_v36, %v2185_v42 }
 0x358   : >> { %1245 = vperm.xlu1 %2177, %v1900_v58  }
 0x359   : >> { %1240 = vperm.xlu0 %2176, %v1899_v59  }
 0x35c   : >> { %1267 = vperm.xlu1 %2177, %v1904_v60  }
 0x35d   : >> { %1262 = vperm.xlu0 %2176, %v1903_v61  }
 0x360   : >> { %1365 = vperm.xlu1 %2177, %v1924_v62  }
 0x361   : >> { %1360 = vperm.xlu0 %2176, %v1923_v63  }
 0x364   : >> { %1387 = vperm.xlu1 %2177, %v1928_v0  }
 0x365   : >> { %1382 = vperm.xlu0 %2176, %v1927_v1  }
 0x368   : >> { %1485 = vperm.xlu1 %2177, %v1948_v3  }
 0x369   : >> { %1480 = vperm.xlu0 %2176, %v1947_v4   ;;  %v1895_v4 = vld [vmem:[%s2877_s14 + $0x1] ss:$0 sm:$0xff]  ;;  %s2274_s14 = sshll.u32 (%p1066_p12), %s2424_s27, 4  ;;  %s2275_s14 = int_to_ptr.vmem [resolvable:$false] %s2274_s14 }
 0x36a   : > { %s2276_s25 = scalar_lea.vmem (%p1066_p12), %s2275_s14, 256  ;;  %p2277_p7 = scmp.lt.s32.totalorder (%p1066_p12), %s3047_s16, %s2275_s14 }
 0x36c   : >> { %1507 = vperm.xlu1 %2177, %v1952_v5  }
 0x36d   : >> { %1502 = vperm.xlu0 %2176, %v1951_v6  }
 0x370   : >> { %1285 = vperm.xlu1 %2177, %v1902_v7  }
 0x371   : >> { %1280 = vperm.xlu0 %2176, %v1901_v8  }
 0x374   : >> { %1297 = vperm.xlu1 %2177, %v1906_v9   ;;  %v1207_v9 = vmul.f32 %v1895_v4, %v2874_v19 }
 0x375   : >> { %1292 = vperm.xlu0 %2176, %v1905_v10   ;;  %v1896_v10 = vld [vmem:[%s2889_s29 + $0x1] ss:$0 sm:$0xff] }
 0x378   : >> { %1405 = vperm.xlu1 %2177, %v1926_v11  }
 0x379   : >> { %1400 = vperm.xlu0 %2176, %v1925_v12   ;;  %v1206_v12 = vmul.f32 %v1895_v4, %v2883_v21 }
 0x37b   : >> { %v1208_v23 = vmul.f32 1.442695, %v1206_v12 }
 0x37c   : >> { %1417 = vperm.xlu1 %2177, %v1930_v13   ;;  %v1219_v13 = vmul.f32 %v1896_v10, %v2885_v22 }
 0x37d   : >> { %1412 = vperm.xlu0 %2176, %v1929_v14  }
 0x37e   : >> { %v1222_v26 = vmul.f32 1.442695, %v1219_v13 }
 0x380   : >> { %1525 = vperm.xlu1 %2177, %v1950_v15  }
 0x381   : >> { %1520 = vperm.xlu0 %2176, %v1949_v16  }
 0x384   : >> { %1537 = vperm.xlu1 %2177, %v1954_v17   ;;  %v1218_v17 = vmul.f32 %v1896_v10, %v2892_v25 }
 0x385   : >> { %1532 = vperm.xlu0 %2176, %v1953_v18   ;;  %v1210_v18 = vmul.f32 1.442695, %v1207_v9 }
 0x386   : >> { %v1220_v30 = vmul.f32 1.442695, %v1218_v17 }
 0x387   : >> { %2186 = vpow2.f32 %v1210_v18 }
 0x388   : >> { %2188 = vpow2.f32 %v1208_v23 }
 0x389   : >> { %2190 = vpow2.f32 %v1222_v26  ;;  %1570 = vrot.lane.b32.xlu0 (%p1066_p12), %v2669_v44, %s2422_s12  ;;  %v2212_v44 = vld [vmem:[%s3113_s10 + $0x10] sm:$0xff] (%p1066_p12)  }
 0x38a   : >> { %2192 = vpow2.f32 %v1220_v30 }
 0x3c7   : >> { %v1142_v33 = vpop.permute.xlu1 %1141 }
 0x3c8   : >> { %v1120_v38 = vpop.permute.xlu0 %1119  ;;  %v1153_v53 = vmul.f32 %v1890_v43, %v1142_v33 }
 0x3c9   : >> { %v1131_v54 = vmul.f32 %v1889_v45, %v1120_v38  ;;  %v1326_v38 = vmul.f32 %v1919_v24, %v2883_v21  ;;  %v1936_v24 = vld [vmem:[%s2898_s26 + $0x2] ss:$0 sm:$0xff] }
 0x3ca   : >> { %v2915_v35 = vadd.f32 %v1153_v53, %v1135_v56  ;;  %v1446_v56 = vmul.f32 %v1943_v40, %v2883_v21 }
 0x3cb   : >> { %v1147_v46 = vpop.permute.xlu1 %1146  ;;  %v2911_v60 = vadd.f32 %v1131_v54, %v1113_v51  ;;  %v1342_v51 = vmul.f32 1.442695, %v1339_v39 }
 0x3cc   : >> { %v1125_v47 = vpop.permute.xlu0 %1124  ;;  %v1154_v55 = vmul.f32 %v1890_v43, %v1147_v46  ;;  %v1330_v46 = vmul.f32 1.442695, %v1327_v32 }
 0x3cd   : >> { %v1132_v49 = vmul.f32 %v1889_v45, %v1125_v47  ;;  %v1338_v45 = vmul.f32 %v1920_v31, %v2892_v25 }
 0x3ce   : >> { %v2913_v61 = vadd.f32 %v1154_v55, %v1136_v52  ;;  %v1944_v52 = vld [vmem:[%s2889_s29 + $0x3] ss:$0 sm:$0xff]  ;;  %2194 = vpow2.f32 %v1330_v46  ;;  %s3153_s29 = sld [smem:[#allocation26_spill]] (%p1066_p12) }
 0x3cf   : >> { %v1165_v57 = vpop.permute.xlu1 %1164  ;;  %v2909_v59 = vadd.f32 %v1132_v49, %v1114_v50  ;;  %v1328_v49 = vmul.f32 1.442695, %v1326_v38  ;;  %v1447_v50 = vmul.f32 %v1943_v40, %v2874_v19  ;;  %v1340_v55 = vmul.f32 1.442695, %v1338_v45 }
 0x3d0   : >> { %v1160_v58 = vpop.permute.xlu0 %1159  ;;  %v1459_v19 = vmul.f32 %v1944_v52, %v2885_v22 }
 0x3d1   : >> { %v1168_v37 = vmul.f32 %v1165_v57, %v2909_v59  ;;  %v1167_v63 = vmul.f32 %v1160_v58, %v2911_v60  ;;  %2196 = vpow2.f32 %v1328_v49  ;;  %v1450_v57 = vmul.f32 1.442695, %v1447_v50  ;;  %v2187_v58 = vpop.eup %2186 }
 0x3d2   : >> { %2198 = vpow2.f32 %v1342_v51  ;;  %v1462_v4 = vmul.f32 1.442695, %v1459_v19  ;;  %v1235_v13 = vmul.f32 %v2187_v58, %v2909_v59 }
 0x3d3   : >> { %v1177_v34 = vpop.permute.xlu1 %1176  ;;  %2200 = vpow2.f32 %v1340_v55 }
 0x3d4   : >> { %v1172_v62 = vpop.permute.xlu0 %1171  ;;  %v1180_v0 = vmul.f32 %v1177_v34, %v2913_v61  ;;  %v2189_v34 = vpop.eup %2188  ;;  %2202 = vpow2.f32 %v1450_v57  ;;  %v1957_v57 = vld [vmem:[%s2902_s13 + $0x3] ss:$0 sm:$0xff]  ;;  %p3156_p4 = scmp.ne.s32.totalorder (%p1066_p12), %s3153_s29, 0 }
 0x3d5   : >> { %v1179_v36 = vmul.f32 %v1172_v62, %v2915_v35  ;;  %v1909_v62 = vld [vmem:[%s2902_s13 + $0x1] ss:$0 sm:$0xff] }
 0x3d6   : >> { %v1182_v1 = vsub.f32 %v1168_v37, %v1180_v0  ;;  %v1912_v37 = vld [vmem:[%s2898_s26 + $0x1] ss:$0 sm:$0xff] }
 0x3d7   : >> { %v1181_v3 = vsub.f32 %v1167_v63, %v1179_v36  ;;  %v2922_v5 = vpop.permute.xlu1 %1245  ;;  %v1448_v36 = vmul.f32 1.442695, %v1446_v56 }
 0x3d8   : >> { %v2924_v6 = vpop.permute.xlu0 %1240  ;;  %v1184_v7 = vsel %vm512_vm3, %v1182_v1, 0.0  ;;  %v1458_v1 = vmul.f32 %v1944_v52, %v2892_v25  ;;  %v1253_v22 = vmul.f32 %v1909_v62, %v2922_v5  ;;  %v1234_v25 = vmul.f32 %v2189_v34, %v2911_v60  ;;  %v1933_v5 = vld [vmem:[%s2902_s13 + $0x2] ss:$0 sm:$0xff] }
 0x3d9   : >> { %v1183_v8 = vsel %vm512_vm3, %v1181_v3, 0.0  ;;  %v2191_v3 = vpop.eup %2190  ;;  %2204 = vpow2.f32 %v1448_v36 }
 0x3da   : >> { %v1185_v11 = vadd.f32 %v1184_v7, %v1183_v8  ;;  %v2193_v21 = vpop.eup %2192  ;;  %v1252_v7 = vmul.f32 %v1909_v62, %v2924_v6  ;;  %v1460_v12 = vmul.f32 1.442695, %v1458_v1  ;;  %2206 = vpow2.f32 %v1462_v4  ;;  %v1960_v62 = vld [vmem:[%s2898_s26 + $0x3] ss:$0 sm:$0xff]  ;;  %s1970_s26 = sshll.u32 (%p1066_p12), %s2380_s21, 1  ;;  %s2270_s21 = scalar_lea.vmem (%p1066_p12), %s3047_s16, 128 }
 0x3db   : >> { %v1268_v15 = vpop.permute.xlu1 %1267  ;;  %v1256_v17 = vmul.f32 %v2193_v21, %v2915_v35  ;;  %v2195_v18 = vpop.eup %2194  ;;  %s1663_s13 = sadd.s32 (%p1066_p12), %s2376_s20, %s1970_s26  ;;  %s1652_s20 = scalar_lea.sflag (%p1066_p12), [#allocation13], %s429_s11 }
 0x3dc   : >> { %v1186_v14 = vrot.slane %v1185_v11, 4  ;;  %v1263_v16 = vpop.permute.xlu0 %1262  ;;  %v1275_v8 = vmul.f32 %v1912_v37, %v1268_v15  ;;  %v1254_v6 = vadd.f32 %v1252_v7, %v1234_v25  ;;  %v2197_v23 = vpop.eup %2196  ;;  %2208 = vpow2.f32 %v1460_v12  ;;  %p2271_p1 = scmp.ne.s32.totalorder (%p1066_p12), %s3047_s16, %s2270_s21  ;;  %p2278_p9 = scmp.lt.s32.totalorder (%p1066_p12), %s2276_s25, %s2270_s21 }
 0x3dd   : >> { %v1274_v9 = vmul.f32 %v1912_v37, %v1263_v16  ;;  %v2199_v30 = vpop.eup %2198 }
 0x3de   : >> { %v1187_v20 = vadd.f32 %v1186_v14, %v1185_v11  ;;  %v1257_v14 = vmul.f32 %v2191_v3, %v2913_v61  ;;  %v2201_v61 = vpop.eup %2200  ;;  %v1354_v50 = vmul.f32 %v2197_v23, %v1254_v6  ;;  %p2272_p5 = pnand (%p1066_p12), %p2271_p1, %p3156_p4  ;;  %p2279_p11 = por (%p1066_p12), %p2278_p9, %p2277_p7 }
 0x3df   : >> { %v2934_v28 = vpop.permute.xlu1 %1365  ;;  %v1276_v16 = vadd.f32 %v1274_v9, %v1256_v17  ;;  %v2203_v45 = vpop.eup %2202 }
 0x3e0   : >> { %v1188_v27 = vrot.slane %v1187_v20, 2  ;;  %v2936_v29 = vpop.permute.xlu0 %1360  ;;  %v1277_v15 = vadd.f32 %v1275_v8, %v1257_v14  ;;  %v1373_v35 = vmul.f32 %v1933_v5, %v2934_v28  ;;  %p2273_p6 = pneg (%p1066_p12), %p2272_p5 }
 0x3e1   : >> { %v1376_v55 = vmul.f32 %v2201_v61, %v1276_v16 }
 0x3e2   : >> { %v1189_v33 = vadd.f32 %v1188_v27, %v1187_v20  ;;  %v1255_v20 = vadd.f32 %v1253_v22, %v1235_v13  ;;  %v1377_v28 = vmul.f32 %v2199_v30, %v1277_v15  ;;  %p2280_p13 = pnand (%p1066_p12), %p2279_p11, %p2273_p6 }
 0x3e3   : >> { %v2943_v42 = vpop.permute.xlu1 %1387 }
 0x3e4   : >> { %v1190_v41 = vrot.slane %v1189_v33, 1  ;;  %v2945_v43 = vpop.permute.xlu0 %1382  ;;  %v1395_v38 = vmul.f32 %v1936_v24, %v2943_v42 }
 0x3e5   : >> { %v1394_v39 = vmul.f32 %v1936_v24, %v2945_v43 }
 0x3e6   : >> { %v1191_v47 = vadd.f32 %v1190_v41, %v1189_v33  ;;  %v1372_v33 = vmul.f32 %v1933_v5, %v2936_v29  ;;  %v2205_v29 = vpop.eup %2204  ;;  %v1397_v43 = vadd.f32 %v1395_v38, %v1377_v28 }
 0x3e7   : >> { %v2955_v53 = vpop.permute.xlu1 %1485  ;;  %v1396_v58 = vadd.f32 %v1394_v39, %v1376_v55  ;;  %v2207_v34 = vpop.eup %2206 }
 0x3e8   : >> { %1194 = vst.msk [vmem:[%s2951_s19] sm:$0x1] %vm1193_vm6, %v1191_v47  ;;  %v2957_v54 = vpop.permute.xlu0 %1480  ;;  %v1355_v47 = vmul.f32 %v2195_v18, %v1255_v20  ;;  %v1374_v19 = vadd.f32 %v1372_v33, %v1354_v50  ;;  %v2209_v7 = vpop.eup %2208  ;;  %v1493_v8 = vmul.f32 %v1957_v57, %v2955_v53 }
 0x3e9   : >> { %v1492_v9 = vmul.f32 %v1957_v57, %v2957_v54  ;;  %v1496_v53 = vmul.f32 %v2209_v7, %v1396_v58 }
 0x3ea   : >> { %v1375_v42 = vadd.f32 %v1373_v35, %v1355_v47 }
 0x3eb   : >> { %v2963_v63 = vpop.permute.xlu1 %1507 }
 0x3ec   : >> { %v2965_v0 = vpop.permute.xlu0 %1502  ;;  %v1475_v18 = vmul.f32 %v2203_v45, %v1375_v42 }
 0x3ed   : >> { %v1514_v12 = vmul.f32 %v1960_v62, %v2965_v0 }
 0x3ee   : >> { %v1495_v24 = vadd.f32 %v1493_v8, %v1475_v18  }
 0x3ef   : >> { %v1286_v10 = vpop.permute.xlu1 %1285  ;;  %v1516_v0 = vadd.f32 %v1514_v12, %v1496_v53  }
 0x3f0   : >> { %v1281_v11 = vpop.permute.xlu0 %1280  ;;  %v1289_v59 = vmul.f32 %v1286_v10, %v1255_v20  ;;  %v1474_v20 = vmul.f32 %v2205_v29, %v1374_v19  ;;  %1556 = vst.msk [vmem:[#allocation2 + $0x8] sm:$0xff] (%p1066_p12), %vm512_vm3, %v1495_v24 }
 0x3f1   : >> { %v1288_v31 = vmul.f32 %v1281_v11, %v1254_v6  ;;  %v1515_v11 = vmul.f32 %v1960_v62, %v2963_v63  ;;  %1557 = vst.msk [vmem:[#allocation3] sm:$0xff] (%p1066_p12), %vm512_vm3, %v1516_v0 }
 0x3f2   : >> { %v1494_v63 = vadd.f32 %v1492_v9, %v1474_v20  }
 0x3f3   : >> { %v1298_v26 = vpop.permute.xlu1 %1297 }
 0x3f4   : >> { %v1293_v27 = vpop.permute.xlu0 %1292  ;;  %v1301_v60 = vmul.f32 %v1298_v26, %v1277_v15  ;;  %1555 = vst.msk [vmem:[#allocation2] sm:$0xff] (%p1066_p12), %vm512_vm3, %v1494_v63 }
 0x3f5   : >> { %v1300_v32 = vmul.f32 %v1293_v27, %v1276_v16  ;;  %v1497_v16 = vmul.f32 %v2207_v34, %v1397_v43  ;;  %v3152_v34 = vmov %v1494_v63 }
 0x3f6   : >> { %v1303_v40 = vsub.f32 %v1289_v59, %v1301_v60 }
 0x3f7   : >> { %v1302_v41 = vsub.f32 %v1288_v31, %v1300_v32  ;;  %v1406_v46 = vpop.permute.xlu1 %1405  ;;  %v1517_v26 = vadd.f32 %v1515_v11, %v1497_v16  }
 0x3f8   : >> { %v1401_v49 = vpop.permute.xlu0 %1400  ;;  %v1305_v51 = vsel %vm512_vm3, %v1303_v40, 0.0  ;;  %v1409_v3 = vmul.f32 %v1406_v46, %v1375_v42  ;;  %v2210_v42 = vld [vmem:[%s3113_s10] sm:$0xff] (%p1066_p12)  }
 0x3f9   : >> { %v1304_v52 = vsel %vm512_vm3, %v1302_v41, 0.0  ;;  %v1408_v21 = vmul.f32 %v1401_v49, %v1374_v19  ;;  %1558 = vst.msk [vmem:[#allocation3 + $0x8] sm:$0xff] (%p1066_p12), %vm512_vm3, %v1517_v26  ;;  %1995 = vmatpush3.bf16.msra.mxu0 (%p1066_p12), %v2210_v42  ;;  %v2211_v19 = vld [vmem:[%s3113_s10 + $0x8] sm:$0xff] (%p1066_p12)  }
 0x3fa   : >> { %v1306_v56 = vadd.f32 %v1305_v51, %v1304_v52  ;;  %1996 = vmatprep.subr.bf16.mxu0 (%p1066_p12), %v2419_v2 }
 0x3fb   : >> { %v1418_v36 = vpop.permute.xlu1 %1417 }
 0x3fc   : >> { %v1307_v37 = vrot.slane %v1306_v56, 4  ;;  %v1413_v1 = vpop.permute.xlu0 %1412  ;;  %v1421_v4 = vmul.f32 %v1418_v36, %v1397_v43  ;;  %v3150_v36 = vmov %v1516_v0  ;;  %v2213_v43 = vld [vmem:[%s3113_s10 + $0x18] sm:$0xff] (%p1066_p12)  }
 0x3fd   : >> { %v1420_v22 = vmul.f32 %v1413_v1, %v1396_v58  ;;  %1997 = vmatpush3.bf16.msra.mxu0 (%p1066_p12), %v2211_v19  ;;  %v1963_v58 = vld [vmem:[%s3112_s9] ss:$0 sm:$0xff] (%p1066_p12) }
 0x3fe   : >> { %v1308_v10 = vadd.f32 %v1307_v37, %v1306_v56  ;;  %v1423_v13 = vsub.f32 %v1409_v3, %v1421_v4  ;;  %v3149_v37 = vmov %v1517_v26  ;;  %1998 = vmatprep.subr.bf16.mxu0 (%p1066_p12), %v2419_v2  ;;  %v1567_v34 = vmul.f32 (%p1066_p12), %v1963_v58, %v2671_v48 }
 0x3ff   : >> { %v1422_v25 = vsub.f32 %v1408_v21, %v1420_v22  ;;  %v1526_v17 = vpop.permute.xlu1 %1525 }
 0x400   : >> { %v1309_v14 = vrot.slane %v1308_v10, 2  ;;  %v1521_v5 = vpop.permute.xlu0 %1520  ;;  %v1425_v6 = vsel %vm512_vm3, %v1423_v13, 0.0  ;;  %v1529_v60 = vmul.f32 %v1526_v17, %v1495_v24 }
 0x401   : >> { %v1424_v15 = vsel %vm512_vm3, %v1422_v25, 0.0  ;;  %v1528_v32 = vmul.f32 %v1521_v5, %v1494_v63  ;;  %1999 = vmatpush3.bf16.msra.mxu0 (%p1066_p12), %v2212_v44 }
 0x402   : >> { %v1310_v23 = vadd.f32 %v1309_v14, %v1308_v10  ;;  %v1426_v54 = vadd.f32 %v1425_v6, %v1424_v15  ;;  %2000 = vmatprep.subr.bf16.mxu0 (%p1066_p12), %v2419_v2 }
 0x403   : >> { %v1538_v59 = vpop.permute.xlu1 %1537 }
 0x404   : >> { %v1311_v27 = vrot.slane %v1310_v23, 1  ;;  %v1427_v30 = vrot.slane %v1426_v54, 4  ;;  %v1533_v31 = vpop.permute.xlu0 %1532  ;;  %v1541_v61 = vmul.f32 %v1538_v59, %v1517_v26 }
 0x405   : >> { %v1540_v35 = vmul.f32 %v1533_v31, %v1516_v0  ;;  %2001 = vmatpush3.bf16.msra.mxu0 (%p1066_p12), %v2213_v43 }
 0x406   : >> { %v1312_v33 = vadd.f32 %v1311_v27, %v1310_v23  ;;  %v1428_v38 = vadd.f32 %v1427_v30, %v1426_v54  ;;  %v1543_v39 = vsub.f32 %v1529_v60, %v1541_v61 }
 0x407   : >> { %v1542_v40 = vsub.f32 %v1528_v32, %v1540_v35  ;;  %v3151_v35 = vmov %v1495_v24 }
 0x408   : >> { %1914 = vst.msk [vmem:[%s2951_s19 + $0x1] sm:$0x1] %vm1193_vm6, %v1312_v33  ;;  %v1429_v41 = vrot.slane %v1428_v38, 2  ;;  %v1545_v45 = vsel %vm512_vm3, %v1543_v39, 0.0  ;;  %v1571_v36 = vpop.permute.xlu0 (%p1066_p12), %1570 }
 0x409   : >> { %v1544_v46 = vsel %vm512_vm3, %v1542_v40, 0.0 }
 0x40a   : >> { %v1430_v47 = vadd.f32 %v1429_v41, %v1428_v38  ;;  %v1546_v49 = vadd.f32 %v1545_v45, %v1544_v46 }
 0x40c   : >> { %v1431_v50 = vrot.slane %v1430_v47, 1  ;;  %v1547_v51 = vrot.slane %v1546_v49, 4 }
 0x40e   : >> { %v1432_v52 = vadd.f32 %v1431_v50, %v1430_v47  ;;  %v1548_v28 = vadd.f32 %v1547_v51, %v1546_v49 }
 0x410   : >> { %1938 = vst.msk [vmem:[%s2951_s19 + $0x2] sm:$0x1] %vm1193_vm6, %v1432_v52  ;;  %v1549_v55 = vrot.slane %v1548_v28, 2 }
 0x412   : >> { %v1550_v29 = vadd.f32 %v1549_v55, %v1548_v28  ;;  %1068 = sbr.rel (!%p1066_p12) target bundleno = 833 (0x341), region = 143 }
 0x414   : >> { %v1551_v56 = vrot.slane %v1550_v29, 1 }
 0x416   : >> { %v1552_v57 = vadd.f32 %v1551_v56, %v1550_v29 }
 0x418   : >> { %1962 = vst.msk [vmem:[%s2951_s19 + $0x3] sm:$0x1] %vm1193_vm6, %v1552_v57  ;;  %s1971_s19 = sshll.u32 (%p1066_p12), %s1663_s13, 7 }
 0x419   : > { %s3045_s12 = scalar_lea.hbm %s3154_s23, %s1971_s19 }
 0x41f   : > { %v1559_v62 = vld [vmem:[#allocation10] sm:$0xff] }
 0x420   : > { %v1568_v37 = vadd.f32 %v1567_v34, %v1559_v62 }
 0x422   : > { %v1573_v1 = vmul.f32 %v1571_v36, %v1568_v37 }
 0x424   : > { %v1574_v3 = vpack.c.bf16 %v1573_v1, %v1573_v1 }
 0x426   : > { %2003 = vmatmul.mubr.msk.bf16.vlgmr.msra.gmra.mrb[4].mxu0 %vm512_vm3, %v1574_v3 }
 0x4f9   : > { %v1644_v2 = vpop.f32.mrb[4].mxu0 }
 0x4fa   : > { %1650 = vst.msk [vmem:[%s431_s15] sm:$0xff] %vm468_vm2, %v1644_v2  ;;  %v2004_v48 = vpop.f32.mrb[5].mxu0 }
 0x4fb   : > { %v1647_v21 = vpop.f32.mrb[6].mxu0 }
 0x4fc   : > { %2283 = shalt.err (!%p2280_p13)
}
 0x4fd   : > { %s2284_s11 = scalar_lea.hbm %s3045_s12, 128  ;;  %s2288_s22 = scalar_lea.hbm %s3155_s28, 512 }
 0x4fe   : > { %p2285_p3 = scmp.ne.s32.totalorder %s3045_s12, %s2284_s11  ;;  %p2289_p2 = scmp.lt.u32.totalorder %s3045_s12, %s3155_s28 }
 0x4ff   : > { %p2290_p10 = scmp.lt.u32.totalorder %s2288_s22, %s2284_s11  ;;  %p2292_p1 = scmp.lt.u32.totalorder %s2284_s11, %s3045_s12 }
 0x500   : > { %p2286_p8 = pnand %p2285_p3, %p3156_p4 }
 0x501   : > { %p2291_p12 = por %p2290_p10, %p2289_p2 }
 0x502   : > { %p2287_p0 = pneg %p2286_p8 }
 0x503   : > { %p2293_p5 = por %p2292_p1, %p2291_p12 }
 0x505   : > { %p2294_p6 = pnand %p2293_p5, %p2287_p0 }
 0x507   : > { %2297 = shalt.err (!%p2294_p6)
}
 0x508   : > { %2014 = dma.vmem_to_hbm [thread:$0]  (%p3156_p4), %s3047_s16, 128, %s3045_s12, %s1652_s20   ;;  %v2005_v4 = vpop.f32.mrb[7].mxu0 }
 0x509 PF: > { %s3157_s19 = sld [smem:[#allocation24_spill]]  ;;  %s3158_s30 = sld [smem:[#allocation20_spill]] }
 0x50a   : > { %s3159_s24 = sld [smem:[#allocation28_spill]] }
 0x50f   : > { %p2031_p7 = scmp.ge.s32.totalorder %s3157_s19, 2  ;;  %s1679_s23 = sand.u32 1, %s3158_s30  }
 0x510   : > { %p3160_p9 = scmp.ne.s32.totalorder %s3159_s24, 0  ;;  %s1680_s21 = scalar_lea.sflag [#allocation13], %s1679_s23 }
 0x512   : > { %p2024_p11 = pnand %p2031_p7, %p3160_p9 }
 0x514   : > { %2359 = dma.done.wait (!%p2024_p11), %s1680_s21, 128  }
 0x515   : > { %2361 = vsyncadd (!%p2024_p11), %s1680_s21, 4294967168  ;;  %s26_s24 = sadd.s32 1, %s3157_s19   ;;  %s3161_s29 = sld [smem:[#allocation21_spill]] }
 0x516   : > { %p23_p13 = scmp.ge.s32.totalorder %s26_s24, 6   ;;  %s3162_s19 = sld [smem:[#allocation29_spill]] }
 0x517   : > { %s3163_s20 = sld [smem:[#allocation22_spill]]  ;;  %s3164_s21 = sld [smem:[#allocation23_spill]] }
 0x518   : > { %s3165_s22 = sld [smem:[#allocation25_spill]]  ;;  %s3166_s23 = sld [smem:[#allocation27_spill]] }
 0x519   : > { %s3167_s17 = smov %s2368_s18  ;;  %25 = sbr.rel (!%p23_p13) target bundleno = 9 (0x9), region = 154 }
 0x51b   : > { %s3168_s18 = smov %s3161_s29 }
 0x520   :  { %1685 = vsyncpa [#allocation12], 1 }
 0x521   :  { %1687 = vsyncpa [#allocation12 + $0x1], 1 }
 0x522   :  { %1688 = vsyncpa [#allocation15], 1 }
 0x523   :  { %1689 = vsyncpa [#allocation13], 1 }
 0x524   :  { %1691 = vsyncpa [#allocation13 + $0x1], 1 }

// kernel: tpu_custom_call.1
= control target key start
LH: loop header
LB: loop body
LE: loop exit
PB: predicated region body
PF: predicated region fallthrough
CT: control target
= control target key end

     0   :  { %s3103_s0 = inlined_call_operand.vmem [shape: bf16[2,16,32], index: 0, kind: input, shape index: {}]   ;;  %s3104_s1 = inlined_call_operand.vmem [shape: bf16[32,128], index: 1, kind: input, shape index: {}]   ;;  %s3105_s2 = inlined_call_operand.vmem [shape: f32[4,64], index: 2, kind: input, shape index: {}]   ;;  %s3106_s3 = inlined_call_operand.vmem [shape: f32[1,64], index: 3, kind: input, shape index: {}]   ;;  %s3107_s4 = inlined_call_operand.hbm [shape: bf16[64,192], index: 4, kind: input, shape index: {}]   ;;  %s3108_s5 = inlined_call_operand.vmem [shape: f32[1,64], index: 5, kind: input, shape index: {}]   ;;  %s3109_s6 = inlined_call_operand.vmem [shape: f32[1,64], index: 6, kind: input, shape index: {}]   ;;  %s3110_s7 = inlined_call_operand.vmem [shape: f32[16,64], index: 7, kind: input, shape index: {}]   ;;  %s3111_s8 = inlined_call_operand.hbm [shape: f32[16,64], index: 8, kind: input, shape index: {}]   ;;  %s3112_s9 = inlined_call_operand.vmem [shape: f32[1,64], index: 9, kind: input, shape index: {}]   ;;  %s3113_s10 = inlined_call_operand.vmem [shape: bf16[64,32], index: 10, kind: input, shape index: {}]   ;;  %s3114_s11 = inlined_call_operand.hbm [shape: f32[2,16,32], index: 11, kind: output, shape index: {}]  }
   0x1   :  { %3131 = sst [smem:[#allocation30_spill]] %s3114_s11 }
   0x2   :  { %16 = vsyncpa [#allocation12], 0 }
   0x3   :  { %17 = vsyncpa [#allocation15], 0 }
   0x4   :  { %18 = vsyncpa [#allocation13], 0 }
   0x5   :  { %20 = vsyncpa [#allocation13 + $0x1], 0  ;;  %s2485_s17 = smov 0   ;;  %s2487_s18 = smov 0  }
   0x6   :  { %s2489_s19 = smov 0   ;;  %s2491_s20 = smov 0  }
   0x7   :  { %s2493_s21 = smov 0   ;;  %s2495_s22 = smov 0  }
   0x8   :  { %s2497_s23 = smov 0   ;;  %s2499_s24 = smov 0  }
   0x9 LB: > { %3132 = sst [smem:[#allocation20_spill]] %s2364_s17  ;;  %s1853_s25 = sadd.s32 4294967295, %s2392_s24   ;;  %s2392_s24 = sphi %s2499_s24, %s26_s24   ;;  %s2388_s23 = sphi %s2497_s23, %s3166_s23   ;;  %s2384_s22 = sphi %s2495_s22, %s3165_s22   ;;  %s2380_s21 = sphi %s2493_s21, %s3164_s21   ;;  %s2376_s20 = sphi %s2491_s20, %s3163_s20   ;;  %s2372_s19 = sphi %s2489_s19, %s3162_s19   ;;  %s2368_s18 = sphi %s2487_s18, %s3168_s18   ;;  %s2364_s17 = sphi %s2485_s17, %s3167_s17  }
   0xa   : > { %3133 = sst [smem:[#allocation21_spill]] %s2372_s19  ;;  %s1854_s26 = sadd.s32 4294967294, %s2392_s24  }
   0xb   : > { %3134 = sst [smem:[#allocation22_spill]] %s2384_s22  ;;  %s35_s27 = sadd.s32 1, %s2384_s22 }
   0xc   : > { %3135 = sst [smem:[#allocation23_spill]] %s2388_s23  ;;  %s38_s28 = sadd.s32 1, %s2388_s23 }
   0xd   : > { %3136 = sst [smem:[#allocation24_spill]] %s2392_s24  ;;  %p36_p0 = scmp.ge.s32.totalorder %s35_s27, 2 }
   0xe   : > { %s285_s29 = sadd.s32 1, %s2372_s19  ;;  %p295_p1 = scmp.ne.s32.totalorder %s2372_s19, %s2368_s18 }
   0xf   : > { %p296_p2 = scmp.eq.s32.totalorder %s1853_s25, 3  ;;  %s3170_s27 = smov (%p36_p0, %s35_s27), 0 }
  0x10   : > { %3137 = sst [smem:[#allocation25_spill]] %s3170_s27  ;;  %s3172_s28 = smov (!%p36_p0, %s38_s28), %s2388_s23 }
  0x11   : > { %s281_s30 = ssub.s32 %s2384_s22, %s3170_s27  ;;  %p2537_p3 = por %p296_p2, %p295_p1 }
  0x12   : > { %p40_p4 = scmp.ge.s32.totalorder %s3172_s28, 2  ;;  %p301_p5 = scmp.ne.s32.totalorder %s2368_s18, %s2364_s17 }
  0x13   : > { %s3138_s12 = scalar_select %p2537_p3, 1, 0 }
  0x14   : > { %p302_p6 = scmp.eq.s32.totalorder %s1854_s26, 3  ;;  %p1855_p7 = scmp.ge.s32.totalorder %s2392_s24, 1 }
  0x15   : > { %3139 = sst [smem:[#allocation26_spill]] %s3138_s12  ;;  %s3174_s28 = smov (%p40_p4, %s3172_s28), 0 }
  0x16   : > { %3140 = sst [smem:[#allocation27_spill]] %s3174_s28  ;;  %p2546_p8 = por %p302_p6, %p301_p5 }
  0x17   : > { %p309_p9 = scmp.lt.s32.totalorder %s2392_s24, 5  ;;  %s280_s14 = ssub.s32 %s2388_s23, %s3174_s28 }
  0x18   : > { %s3141_s13 = scalar_select %p2546_p8, 1, 0 }
  0x19   : > { %s282_s15 = sor.u32 %s281_s30, %s280_s14  ;;  %p2553_p10 = pnand %p1855_p7, %p309_p9 }
  0x1a   : > { %3142 = sst [smem:[#allocation28_spill]] %s3141_s13  ;;  %p283_p11 = scmp.eq.s32.totalorder %s282_s15, 0 }
  0x1b   : > { %s3143_s16 = scalar_select %p2553_p10, 1, 0 }
  0x1c   : > { %p2557_p12 = scmp.eq.s32.totalorder %s1853_s25, 0  ;;  %p2016_p13 = pneg %p2553_p10 }
  0x1d   : > { %s2564_s26 = scalar_select %p283_p11, %s2372_s19, %s285_s29  }
  0x1e   : > { %s3144_s27 = scalar_select %p2557_p12, 1, 0 }
  0x1f   : > { %3145 = sst [smem:[#allocation29_spill]] %s2564_s26  ;;  %s2414_s22 = smov [#allocation11]  }
  0x20   : > { %s330_s13 = sshll.u32 %s2414_s22, 4  ;;  %p2568_p0 = pnand %p2557_p12, %p2016_p13  ;;  %s331_s13 = int_to_ptr.vmem [resolvable:$true] %s330_s13 }
  0x21   : > { %s2214_s15 = scalar_lea.hbm %s3107_s4, 1024 }
  0x22   : > { %p2215_p1 = scmp.ne.s32.totalorder %s3107_s4, %s2214_s15  ;;  %p2216_p2 = pneg %p2568_p0 }
  0x23   : > { %p2221_p6 = scmp.lt.u32.totalorder %s2214_s15, %s3107_s4 }
  0x24   : > { %p2217_p4 = pnand %p2216_p2, %p2215_p1 }
  0x26   : > { %p2218_p5 = pneg %p2217_p4 }
  0x28   : > { %p2223_p7 = pnand %p2221_p6, %p2218_p5 }
  0x2a   : > { %2226 = shalt.err (!%p2223_p7)
}
  0x2b   : > { %s2227_s26 = scalar_lea.vmem %s331_s13, 1024  ;;  %p2235_p8 = scmp.lt.s32.totalorder %s331_s13, %s331_s13 }
  0x2c   : > { %p2228_p9 = scmp.ne.s32.totalorder %s331_s13, %s2227_s26  ;;  %p2236_p3 = scmp.lt.s32.totalorder %s2227_s26, %s2227_s26 }
  0x2e   : > { %p2230_p11 = pnand %p2228_p9, %p2216_p2  ;;  %p2237_p12 = por %p2236_p3, %p2235_p8 }
  0x30   : > { %p2231_p13 = pneg %p2230_p11 }
  0x32   : > { %p2238_p10 = pnand %p2237_p12, %p2231_p13 }
  0x34   : > { %2241 = shalt.err (!%p2238_p10)
}
  0x35   : > { %s2415_s23 = smov 128   ;;  %s2416_s28 = smov 8  }
  0x36   : > { %2019 = dma.hbm_to_vmem [thread:$0]  (!%p2568_p0), %s3107_s4, 1024, %s331_s13, [#allocation12], %s2415_s23, %s2415_s23, %s2416_s28  }
  0x37   : > { %s2417_s15 = smov [#allocation14]   ;;  %s2242_s17 = scalar_lea.hbm %s3111_s8, 256 }
  0x38   : > { %s352_s22 = sshll.u32 %s2417_s15, 4  ;;  %p2243_p3 = scmp.ne.s32.totalorder %s3111_s8, %s2242_s17  ;;  %s353_s22 = int_to_ptr.vmem [resolvable:$true] %s352_s22 }
  0x39   : > { %p2249_p12 = scmp.lt.u32.totalorder %s2242_s17, %s3111_s8 }
  0x3a   : > { %p2245_p8 = pnand %p2243_p3, %p2216_p2 }
  0x3c   : > { %p2246_p10 = pneg %p2245_p8 }
  0x3e   : > { %p2251_p1 = pnand %p2249_p12, %p2246_p10 }
  0x40   : > { %2254 = shalt.err (!%p2251_p1)
}
  0x41   : > { %s2255_s13 = scalar_lea.vmem %s353_s22, 256  ;;  %p2263_p7 = scmp.lt.s32.totalorder %s353_s22, %s353_s22 }
  0x42   : > { %p2256_p4 = scmp.ne.s32.totalorder %s353_s22, %s2255_s13  ;;  %p2264_p9 = scmp.lt.s32.totalorder %s2255_s13, %s2255_s13 }
  0x44   : > { %p2258_p5 = pnand %p2256_p4, %p2216_p2  ;;  %p2265_p11 = por %p2264_p9, %p2263_p7 }
  0x46   : > { %p2259_p6 = pneg %p2258_p5 }
  0x48   : > { %p2266_p13 = pnand %p2265_p11, %p2259_p6 }
  0x4a   : > { %2269 = shalt.err (!%p2266_p13)
}
  0x4b   : > { %2022 = dma.hbm_to_vmem [thread:$0]  (!%p2568_p0), %s3111_s8, 256, %s353_s22, [#allocation15], %s2415_s23, %s2415_s23, %s2416_s28  }
  0x4c   : > { %p3147_p3 = scmp.ne.s32.totalorder %s3143_s16, 0 }
  0x4d   : > { %p3148_p8 = scmp.ne.s32.totalorder (!%p3147_p3), %s3144_s27, 0 }
  0x4e   : > { %385 = sbr.rel (%p3147_p3) target bundleno = 1289 (0x509), region = 64 }
  0x55   : > { %2351 = dma.done.wait (%p3148_p8), [#allocation12], 1024  }
  0x56   : > { %2353 = vsyncadd (%p3148_p8), [#allocation12], 4294966272 }
  0x57   : > { %2355 = dma.done.wait (%p3148_p8), [#allocation15], 256  }
  0x58   : > { %2357 = vsyncadd (%p3148_p8), [#allocation15], 4294967040  ;;  %s429_s11 = sand.u32 1, %s2368_s18   ;;  %p432_p0 = scmp.lt.s32.totalorder %s2380_s21, 1 }
  0x59   : > { %s2628_s17 = sshll.u32 %s429_s11, 3  ;;  %p434_p2 = scmp.lt.s32.totalorder %s2376_s20, 1 }
  0x5a   : > { %s433_s12 = scalar_select %p432_p0, %s2380_s21, 1 }
  0x5b   : > { %s435_s16 = scalar_select %p434_p2, %s2376_s20, 1 }
  0x5c   : > { %s1863_s30 = sshll.u32 %s433_s12, 1  ;;  %s431_s15 = scalar_lea.vmem [#allocation16], %s2628_s17 }
  0x5d   : > { %s437_s23 = sadd.s32 %s1863_s30, %s435_s16  ;;  %p1865_p10 = scmp.ne.s32.totalorder %s2376_s20, 0 }
  0x5e   : > { %s1864_s28 = sshll.u32 %s437_s23, 2  ;;  %vm445_vm0 = vcmask (!%p1865_p10), 523264   ;;  %v2418_v0 = vmov (!%p1865_p10), 0.0  }
  0x5f   : > { %s439_s25 = scalar_lea.vmem %s3103_s0, %s1864_s28  ;;  %444 = sbr.rel (%p1865_p10) target bundleno = 102 (0x66), region = 76  ;;  %446 = vst.msk [vmem:[#allocation2] sm:$0xff] (!%p1865_p10), %vm445_vm0, %v2418_v0  ;;  %447 = vst.msk [vmem:[#allocation2 + $0x8] sm:$0xff] (!%p1865_p10), %vm445_vm0, %v2418_v0 }
  0x60   : > { %448 = vst.msk [vmem:[#allocation3] sm:$0xff] (!%p1865_p10), %vm445_vm0, %v2418_v0  ;;  %449 = vst.msk [vmem:[#allocation3 + $0x8] sm:$0xff] (!%p1865_p10), %vm445_vm0, %v2418_v0 }
  0x61   : > { %450 = vst.msk [vmem:[#allocation4] sm:$0xff] (!%p1865_p10), %vm445_vm0, %v2418_v0 }
  0x66 PF: > { %v2146_v1 = vld [vmem:[%s3104_s1] sm:$0xff]   ;;  %v2419_v2 = vmov 0.0   ;;  %v2147_v3 = vld [vmem:[%s3104_s1 + $0x8] sm:$0xff]   ;;  %vm2420_vm1 = vmmov 0   ;;  %vm468_vm2 = vcmask 261120   ;;  %v2421_v13 = vmov 0  }
  0x67   : > { %1986 = vmatprep.subr.bf16.mxu0 %v2419_v2  ;;  %1990 = vmatprep.mubr.msk.bf16.mxu0 %vm2420_vm1, %v2419_v2  ;;  %v451_v4 = vld [vmem:[%s439_s25] sm:$0xf]  ;;  %v2148_v5 = vld [vmem:[#allocation11 + $0x4] ss:$8 sps:$4 sm:$0xff]   ;;  %v2151_v7 = vld [vmem:[#allocation11 + $0x14] ss:$8 sps:$4 sm:$0xff]   ;;  %v715_v50 = vlaneseq }
  0x68   : > { %1987 = vmatpush3.bf16.msra.mxu0 %v2146_v1  ;;  %v2150_v6 = vld [vmem:[#allocation11] ss:$8 sps:$4 sm:$0xff]   ;;  %620 = vmatprep.subr.bf16.mxu1 %v2148_v5  ;;  %v2153_v8 = vld [vmem:[#allocation11 + $0x10] ss:$8 sps:$4 sm:$0xff]   ;;  %v2154_v9 = vld [vmem:[#allocation11 + $0x24] ss:$8 sps:$4 sm:$0xff]  }
  0x69   : > { %1988 = vmatprep.subr.bf16.mxu0 %v2419_v2  ;;  %621 = vmatpush1.bf16.msra.mxu1 %v2150_v6  ;;  %v2156_v10 = vld [vmem:[#allocation11 + $0x20] ss:$8 sps:$4 sm:$0xff]   ;;  %v2157_v11 = vld [vmem:[#allocation11 + $0x34] ss:$8 sps:$4 sm:$0xff]   ;;  %v2159_v12 = vld [vmem:[#allocation11 + $0x30] ss:$8 sps:$4 sm:$0xff]  }
  0x6a   : > { %622 = vmatprep.subr.bf16.mxu1 %v2151_v7  ;;  %652 = vmatprep.mubr.bf16.mxu1 %v2421_v13  ;;  %v1884_v14 = vld [vmem:[%s3109_s6] ss:$0 sm:$0xff]  ;;  %s2422_s12 = smov 64   ;;  %vm512_vm3 = vcmask 523264   ;;  %v1870_v22 = vld [vmem:[%s3105_s2 + $0x1] ss:$0 sm:$0xff] }
  0x6b   : > { %684 = vrot.lane.b32.xlu0 %v1884_v14, %s2422_s12  ;;  %v1869_v21 = vld [vmem:[%s3105_s2] ss:$0 sm:$0xff]  ;;  %v1871_v23 = vld [vmem:[%s3105_s2 + $0x2] ss:$0 sm:$0xff]  ;;  %vm554_vm4 = vcmask 518144   ;;  %v716_v51 = vshrl.u32 %v715_v50, 7 }
  0x6c   : > { %1989 = vmatpush3.bf16.msra.mxu0 %v2147_v3  ;;  %v1872_v31 = vld [vmem:[%s3105_s2 + $0x3] ss:$0 sm:$0xff]  ;;  %v1873_v36 = vld [vmem:[%s3106_s3] ss:$0 sm:$0xff]  ;;  %vm995_vm5 = vcmask 7168   ;;  %s2816_s24 = smov 0  }
  0x6d   : > { %623 = vmatpush1.bf16.msra.mxu1 %v2153_v8  ;;  %v1883_v52 = vld [vmem:[%s3108_s5] ss:$0 sm:$0xff]  ;;  %v717_v53 = vsub.s32 0, %v716_v51  ;;  %v857_v55 = vsub.s32 4, %v716_v51  ;;  %v892_v56 = vsub.s32 5, %v716_v51  ;;  %v927_v57 = vsub.s32 6, %v716_v51 }
  0x6e   : > { %624 = vmatprep.subr.bf16.mxu1 %v2154_v9  ;;  %v962_v58 = vsub.s32 7, %v716_v51  ;;  %v752_v8 = vsub.s32 1, %v716_v51 }
  0x6f   : > { %1991 = vmatmul.mubr.msk.bf16.vlgmr.msra.gmra.mrb[0].mxu0 %vm468_vm2, %v451_v4 }
  0x71   : > { %625 = vmatpush1.bf16.msra.mxu1 %v2156_v10 }
  0x72   : > { %626 = vmatprep.subr.bf16.mxu1 %v2157_v11 }
  0x75   : > { %627 = vmatpush1.bf16.msra.mxu1 %v2159_v12  ;;  %v787_v12 = vsub.s32 2, %v716_v51 }
 0x142   : > { %v506_v15 = vpop.f32.mrb[0].mxu0 }
 0x143   : > { %513 = vst.msk [vmem:[#allocation4 + $0x8] sm:$0xff] %vm512_vm3, %v506_v15  ;;  %v562_v16 = vsub.f32 0.0, %v506_v15  ;;  %v1992_v17 = vpop.f32.mrb[1].mxu0 }
 0x144   : > { %v509_v18 = vpop.f32.mrb[2].mxu0 }
 0x145   : > { %v563_v19 = vmul.f32 1.442695, %v562_v16  ;;  %v1993_v20 = vpop.f32.mrb[3].mxu0 }
 0x147   : > { %2160 = vpow2.f32 %v563_v19  ;;  %v822_v19 = vsub.s32 3, %v716_v51 }
 0x14a   : > { %v514_v24 = vld [vmem:[#allocation4 + $0x5] sm:$0xff]  ;;  %v553_v29 = vld [vmem:[#allocation4 + $0xd] sm:$0x7] }
 0x14b   : > { %v521_v25 = vld [vmem:[#allocation4 + $0x6] sm:$0xff]  ;;  %v520_v27 = vmul.f32 %v1869_v21, %v514_v24  ;;  %v685_v21 = vpop.permute.xlu0 %684 }
 0x14c   : > { %v529_v26 = vld [vmem:[#allocation4 + $0x7] sm:$0xff]  ;;  %v527_v28 = vmul.f32 %v1870_v22, %v521_v25 }
 0x14d   : > { %v537_v30 = vld [vmem:[#allocation4 + $0x8] sm:$0xff]  ;;  %555 = vst.msk [vmem:[#allocation4 + $0x5] sm:$0x7] %vm554_vm4, %v553_v29  ;;  %v535_v33 = vmul.f32 %v1871_v23, %v529_v26 }
 0x14e   : > { %v528_v32 = vadd.f32 %v527_v28, %v520_v27  ;;  %v543_v35 = vmul.f32 %v1872_v31, %v537_v30 }
 0x150   : > { %v536_v34 = vadd.f32 %v535_v33, %v528_v32 }
 0x151   : > { %v2161_v37 = vpop.eup %2160 }
 0x152   : > { %v544_v38 = vadd.f32 %v543_v35, %v536_v34  ;;  %v565_v39 = vadd.f32 1.0, %v2161_v37  ;;  %v2725_v34 = vld [vmem:[#allocation2] sm:$0xff]   ;;  %v2727_v35 = vld [vmem:[#allocation2 + $0x8] sm:$0xff]   ;;  %v2732_v37 = vld [vmem:[#allocation3 + $0x8] sm:$0xff]  }
 0x154   : > { %v552_v40 = vadd.f32 %v1873_v36, %v544_v38  ;;  %2162 = vrcp.f32 %v565_v39  ;;  %v2729_v36 = vld [vmem:[#allocation3] sm:$0xff]  }
 0x156   : > { %v556_v41 = vsub.f32 0.0, %v552_v40 }
 0x158   : > { %v557_v42 = vmul.f32 1.442695, %v556_v41 }
 0x15a   : > { %2164 = vpow2.f32 %v557_v42 }
 0x15e   : > { %v2163_v43 = vpop.eup %2162 }
 0x15f   : > { %v2669_v44 = vmul.f32 %v2163_v43, %v506_v15 }
 0x164   : > { %v2165_v45 = vpop.eup %2164 }
 0x165   : > { %v559_v46 = vadd.f32 1.0, %v2165_v45 }
 0x167   : > { %2166 = vrcp.f32 %v559_v46 }
 0x171   : > { %v2167_v47 = vpop.eup %2166 }
 0x172   : > { %v2671_v48 = vmul.f32 %v2167_v47, %v552_v40 }
 0x174   : > { %706 = vrot.lane.b32.xlu1 %v2671_v48, %s2422_s12  ;;  %v568_v49 = vpack.c.bf16 %v2671_v48, %v2671_v48 }
 0x176   : > { %1882 = vmatmul.mubr.msk.bf16.vlgmr.msra.gmra.mrb[0].mxu1 %vm512_vm3, %v568_v49 }
 0x1e6   : > { %v707_v28 = vpop.permute.xlu1 %706 }
 0x249   : > { %v2681_v54 = vpop.f32.mrb[0].mxu1 }
 0x24a   : > { %v668_v59 = vadd.f32 %v1883_v52, %v2681_v54  ;;  %v656_v60 = vpop.f32.mrb[1].mxu1  ;;  %v687_v22 = vadd.f32 %v685_v21, %v2681_v54 }
 0x24b   : > { %v718_v61 = vrot.slane %v656_v60, %v717_v53  ;;  %v658_v62 = vpop.f32.mrb[2].mxu1  ;;  %v2684_v0 = vrot.slane %v656_v60, %v857_v55  ;;  %v2686_v1 = vrot.slane %v656_v60, %v892_v56  ;;  %v2688_v3 = vrot.slane %v656_v60, %v927_v57 }
 0x24c   : > { %v670_v63 = vand.u32 2147483647, %v668_v59  ;;  %v2690_v4 = vrot.slane %v656_v60, %v962_v58  ;;  %v659_v5 = vpop.f32.mrb[3].mxu1  ;;  %v753_v9 = vrot.slane %v656_v60, %v752_v8  ;;  %v669_v14 = vmax.f32 %v668_v59, 0.0 }
 0x24d   : > { %724 = vbcast.lane.b32.xlu1 %v718_v61, 264  ;;  %720 = vbcast.lane.b32.xlu0 %v718_v61, 256  ;;  %v788_v16 = vrot.slane %v656_v60, %v787_v12  ;;  %v823_v20 = vrot.slane %v656_v60, %v822_v19  ;;  %v689_v23 = vand.u32 2147483647, %v687_v22  ;;  %v688_v33 = vmax.f32 %v687_v22, 0.0 }
 0x24e   : > { %v671_v6 = vsub.f32 0.0, %v670_v63 }
 0x24f   : > { %v690_v24 = vsub.f32 0.0, %v689_v23 }
 0x250   : > { %v672_v7 = vmul.f32 1.442695, %v671_v6 }
 0x251   : > { %732 = vbcast.lane.b32.xlu1 %v718_v61, 280  ;;  %728 = vbcast.lane.b32.xlu0 %v718_v61, 272  ;;  %v691_v25 = vmul.f32 1.442695, %v690_v24 }
 0x252   : > { %2168 = vpow2.f32 %v672_v7 }
 0x255   : > { %740 = vbcast.lane.b32.xlu1 %v718_v61, 296  ;;  %736 = vbcast.lane.b32.xlu0 %v718_v61, 288 }
 0x259   : > { %748 = vbcast.lane.b32.xlu1 %v718_v61, 312  ;;  %744 = vbcast.lane.b32.xlu0 %v718_v61, 304 }
 0x25c   : > { %v2169_v10 = vpop.eup %2168 }
 0x25d   : > { %v674_v11 = vadd.f32 1.0, %v2169_v10  ;;  %759 = vbcast.lane.b32.xlu1 %v753_v9, 264  ;;  %755 = vbcast.lane.b32.xlu0 %v753_v9, 256 }
 0x25f   : > { %2170 = vlog2.f32 %v674_v11 }
 0x260   : > { %2172 = vpow2.f32 %v691_v25 }
 0x261   : > { %767 = vbcast.lane.b32.xlu1 %v753_v9, 280  ;;  %763 = vbcast.lane.b32.xlu0 %v753_v9, 272 }
 0x265   : > { %775 = vbcast.lane.b32.xlu1 %v753_v9, 296  ;;  %771 = vbcast.lane.b32.xlu0 %v753_v9, 288 }
 0x269   : > { %v2171_v13 = vpop.eup %2170  ;;  %783 = vbcast.lane.b32.xlu1 %v753_v9, 312  ;;  %779 = vbcast.lane.b32.xlu0 %v753_v9, 304 }
 0x26a   : > { %v676_v15 = vmul.f32 0.6931472, %v2171_v13  ;;  %v2173_v26 = vpop.eup %2172 }
 0x26b   : > { %v693_v27 = vadd.f32 1.0, %v2173_v26 }
 0x26c   : > { %v677_v17 = vadd.f32 %v676_v15, %v669_v14 }
 0x26d   : > { %794 = vbcast.lane.b32.xlu1 %v788_v16, 264  ;;  %790 = vbcast.lane.b32.xlu0 %v788_v16, 256  ;;  %2174 = vlog2.f32 %v693_v27 }
 0x26e   : > { %697 = vst.msk [vmem:[#allocation5] sm:$0xff] %vm512_vm3, %v677_v17  ;;  %v703_v18 = vmul.f32 %v677_v17, %v2671_v48 }
 0x270   : > { %704 = vst.msk [vmem:[#allocation7] sm:$0xff] %vm512_vm3, %v703_v18 }
 0x271   : > { %802 = vbcast.lane.b32.xlu1 %v788_v16, 280  ;;  %798 = vbcast.lane.b32.xlu0 %v788_v16, 272 }
 0x275   : > { %810 = vbcast.lane.b32.xlu1 %v788_v16, 296  ;;  %806 = vbcast.lane.b32.xlu0 %v788_v16, 288 }
 0x277   : > { %v2175_v29 = vpop.eup %2174 }
 0x278   : > { %v695_v30 = vmul.f32 0.6931472, %v2175_v29 }
 0x279   : > { %818 = vbcast.lane.b32.xlu1 %v788_v16, 312  ;;  %814 = vbcast.lane.b32.xlu0 %v788_v16, 304 }
 0x27a   : > { %v696_v38 = vadd.f32 %v695_v30, %v688_v33 }
 0x27c   : > { %v709_v42 = vmul.f32 %v707_v28, %v696_v38 }
 0x27d   : > { %829 = vbcast.lane.b32.xlu1 %v823_v20, 264  ;;  %825 = vbcast.lane.b32.xlu0 %v823_v20, 256 }
 0x281   : > { %837 = vbcast.lane.b32.xlu1 %v823_v20, 280  ;;  %833 = vbcast.lane.b32.xlu0 %v823_v20, 272 }
 0x285   : > { %845 = vbcast.lane.b32.xlu1 %v823_v20, 296  ;;  %841 = vbcast.lane.b32.xlu0 %v823_v20, 288 }
 0x289   : > { %853 = vbcast.lane.b32.xlu1 %v823_v20, 312  ;;  %849 = vbcast.lane.b32.xlu0 %v823_v20, 304 }
 0x28d   : > { %864 = vbcast.lane.b32.xlu1 %v2684_v0, 264  ;;  %860 = vbcast.lane.b32.xlu0 %v2684_v0, 256 }
 0x291   : > { %872 = vbcast.lane.b32.xlu1 %v2684_v0, 280  ;;  %868 = vbcast.lane.b32.xlu0 %v2684_v0, 272 }
 0x295   : > { %880 = vbcast.lane.b32.xlu1 %v2684_v0, 296  ;;  %876 = vbcast.lane.b32.xlu0 %v2684_v0, 288 }
 0x299   : > { %888 = vbcast.lane.b32.xlu1 %v2684_v0, 312  ;;  %884 = vbcast.lane.b32.xlu0 %v2684_v0, 304 }
 0x29d   : > { %899 = vbcast.lane.b32.xlu1 %v2686_v1, 264  ;;  %895 = vbcast.lane.b32.xlu0 %v2686_v1, 256 }
 0x2a1   : > { %907 = vbcast.lane.b32.xlu1 %v2686_v1, 280  ;;  %903 = vbcast.lane.b32.xlu0 %v2686_v1, 272 }
 0x2a5   : > { %915 = vbcast.lane.b32.xlu1 %v2686_v1, 296  ;;  %911 = vbcast.lane.b32.xlu0 %v2686_v1, 288 }
 0x2a9   : > { %923 = vbcast.lane.b32.xlu1 %v2686_v1, 312  ;;  %919 = vbcast.lane.b32.xlu0 %v2686_v1, 304 }
 0x2ad   : > { %934 = vbcast.lane.b32.xlu1 %v2688_v3, 264  ;;  %930 = vbcast.lane.b32.xlu0 %v2688_v3, 256 }
 0x2b1   : > { %942 = vbcast.lane.b32.xlu1 %v2688_v3, 280  ;;  %938 = vbcast.lane.b32.xlu0 %v2688_v3, 272 }
 0x2b5   : > { %950 = vbcast.lane.b32.xlu1 %v2688_v3, 296  ;;  %946 = vbcast.lane.b32.xlu0 %v2688_v3, 288 }
 0x2b9   : > { %958 = vbcast.lane.b32.xlu1 %v2688_v3, 312  ;;  %954 = vbcast.lane.b32.xlu0 %v2688_v3, 304 }
 0x2bd   : > { %969 = vbcast.lane.b32.xlu1 %v2690_v4, 264  ;;  %965 = vbcast.lane.b32.xlu0 %v2690_v4, 256 }
 0x2bf   : > { %v725_v31 = vpop.permute.xlu1 %724  ;;  %v721_v32 = vpop.permute.xlu0 %720 }
 0x2c0   : > { %997 = vst.msk [vmem:[#allocation9 + $0x8] sm:$0xff] %vm995_vm5, %v725_v31  ;;  %996 = vst.msk [vmem:[#allocation9] sm:$0xff] %vm995_vm5, %v721_v32 }
 0x2c1   : > { %977 = vbcast.lane.b32.xlu1 %v2690_v4, 280  ;;  %973 = vbcast.lane.b32.xlu0 %v2690_v4, 272 }
 0x2c3   : > { %v733_v39 = vpop.permute.xlu1 %732  ;;  %v729_v40 = vpop.permute.xlu0 %728 }
 0x2c4   : > { %999 = vst.msk [vmem:[#allocation9 + $0x18] sm:$0xff] %vm995_vm5, %v733_v39  ;;  %998 = vst.msk [vmem:[#allocation9 + $0x10] sm:$0xff] %vm995_vm5, %v729_v40 }
 0x2c5   : > { %985 = vbcast.lane.b32.xlu1 %v2690_v4, 296  ;;  %981 = vbcast.lane.b32.xlu0 %v2690_v4, 288 }
 0x2c7   : > { %v741_v41 = vpop.permute.xlu1 %740  ;;  %v737_v43 = vpop.permute.xlu0 %736 }
 0x2c8   : > { %1001 = vst.msk [vmem:[#allocation9 + $0x28] sm:$0xff] %vm995_vm5, %v741_v41  ;;  %1000 = vst.msk [vmem:[#allocation9 + $0x20] sm:$0xff] %vm995_vm5, %v737_v43 }
 0x2c9   : > { %711 = vrot.lane.b32.xlu1 %v709_v42, %s2422_s12  ;;  %699 = vrot.lane.b32.xlu0 %v696_v38, %s2422_s12 }
 0x2cb   : > { %v749_v45 = vpop.permute.xlu1 %748  ;;  %v745_v46 = vpop.permute.xlu0 %744 }
 0x2cc   : > { %1003 = vst.msk [vmem:[#allocation9 + $0x38] sm:$0xff] %vm995_vm5, %v749_v45  ;;  %1002 = vst.msk [vmem:[#allocation9 + $0x30] sm:$0xff] %vm995_vm5, %v745_v46 }
 0x2cd   : > { %993 = vbcast.lane.b32.xlu1 %v2690_v4, 312  ;;  %989 = vbcast.lane.b32.xlu0 %v2690_v4, 304 }
 0x2cf   : > { %v760_v47 = vpop.permute.xlu1 %759  ;;  %v756_v49 = vpop.permute.xlu0 %755 }
 0x2d0   : > { %1005 = vst.msk [vmem:[#allocation9 + $0x48] sm:$0xff] %vm995_vm5, %v760_v47  ;;  %1004 = vst.msk [vmem:[#allocation9 + $0x40] sm:$0xff] %vm995_vm5, %v756_v49 }
 0x2d3   : > { %v768_v50 = vpop.permute.xlu1 %767  ;;  %v764_v51 = vpop.permute.xlu0 %763 }
 0x2d4   : > { %1007 = vst.msk [vmem:[#allocation9 + $0x58] sm:$0xff] %vm995_vm5, %v768_v50  ;;  %1006 = vst.msk [vmem:[#allocation9 + $0x50] sm:$0xff] %vm995_vm5, %v764_v51 }
 0x2d7   : > { %v776_v52 = vpop.permute.xlu1 %775  ;;  %v772_v53 = vpop.permute.xlu0 %771 }
 0x2d8   : > { %1009 = vst.msk [vmem:[#allocation9 + $0x68] sm:$0xff] %vm995_vm5, %v776_v52  ;;  %1008 = vst.msk [vmem:[#allocation9 + $0x60] sm:$0xff] %vm995_vm5, %v772_v53 }
 0x2db   : > { %v784_v54 = vpop.permute.xlu1 %783  ;;  %v780_v55 = vpop.permute.xlu0 %779 }
 0x2dc   : > { %1011 = vst.msk [vmem:[#allocation9 + $0x78] sm:$0xff] %vm995_vm5, %v784_v54  ;;  %1010 = vst.msk [vmem:[#allocation9 + $0x70] sm:$0xff] %vm995_vm5, %v780_v55 }
 0x2df   : > { %v795_v56 = vpop.permute.xlu1 %794  ;;  %v791_v57 = vpop.permute.xlu0 %790 }
 0x2e0   : > { %1013 = vst.msk [vmem:[#allocation9 + $0x88] sm:$0xff] %vm995_vm5, %v795_v56  ;;  %1012 = vst.msk [vmem:[#allocation9 + $0x80] sm:$0xff] %vm995_vm5, %v791_v57 }
 0x2e3   : > { %v803_v58 = vpop.permute.xlu1 %802  ;;  %v799_v59 = vpop.permute.xlu0 %798 }
 0x2e4   : > { %1015 = vst.msk [vmem:[#allocation9 + $0x98] sm:$0xff] %vm995_vm5, %v803_v58  ;;  %1014 = vst.msk [vmem:[#allocation9 + $0x90] sm:$0xff] %vm995_vm5, %v799_v59 }
 0x2e7   : > { %v811_v60 = vpop.permute.xlu1 %810  ;;  %v807_v61 = vpop.permute.xlu0 %806 }
 0x2e8   : > { %1017 = vst.msk [vmem:[#allocation9 + $0xa8] sm:$0xff] %vm995_vm5, %v811_v60  ;;  %1016 = vst.msk [vmem:[#allocation9 + $0xa0] sm:$0xff] %vm995_vm5, %v807_v61 }
 0x2eb   : > { %v819_v62 = vpop.permute.xlu1 %818  ;;  %v815_v63 = vpop.permute.xlu0 %814 }
 0x2ec   : > { %1019 = vst.msk [vmem:[#allocation9 + $0xb8] sm:$0xff] %vm995_vm5, %v819_v62  ;;  %1018 = vst.msk [vmem:[#allocation9 + $0xb0] sm:$0xff] %vm995_vm5, %v815_v63 }
 0x2ef   : > { %v830_v0 = vpop.permute.xlu1 %829  ;;  %v826_v1 = vpop.permute.xlu0 %825 }
 0x2f0   : > { %1021 = vst.msk [vmem:[#allocation9 + $0xc8] sm:$0xff] %vm995_vm5, %v830_v0  ;;  %1020 = vst.msk [vmem:[#allocation9 + $0xc0] sm:$0xff] %vm995_vm5, %v826_v1 }
 0x2f3   : > { %v838_v3 = vpop.permute.xlu1 %837  ;;  %v834_v4 = vpop.permute.xlu0 %833 }
 0x2f4   : > { %1023 = vst.msk [vmem:[#allocation9 + $0xd8] sm:$0xff] %vm995_vm5, %v838_v3  ;;  %1022 = vst.msk [vmem:[#allocation9 + $0xd0] sm:$0xff] %vm995_vm5, %v834_v4 }
 0x2f7   : > { %v846_v5 = vpop.permute.xlu1 %845  ;;  %v842_v6 = vpop.permute.xlu0 %841 }
 0x2f8   : > { %1025 = vst.msk [vmem:[#allocation9 + $0xe8] sm:$0xff] %vm995_vm5, %v846_v5  ;;  %1024 = vst.msk [vmem:[#allocation9 + $0xe0] sm:$0xff] %vm995_vm5, %v842_v6 }
 0x2fb   : > { %v854_v7 = vpop.permute.xlu1 %853  ;;  %v850_v8 = vpop.permute.xlu0 %849 }
 0x2fc   : > { %1027 = vst.msk [vmem:[#allocation9 + $0xf8] sm:$0xff] %vm995_vm5, %v854_v7  ;;  %1026 = vst.msk [vmem:[#allocation9 + $0xf0] sm:$0xff] %vm995_vm5, %v850_v8 }
 0x2ff   : > { %v865_v9 = vpop.permute.xlu1 %864  ;;  %v861_v10 = vpop.permute.xlu0 %860 }
 0x300   : > { %1029 = vst.msk [vmem:[#allocation9 + $0x108] sm:$0xff] %vm995_vm5, %v865_v9  ;;  %1028 = vst.msk [vmem:[#allocation9 + $0x100] sm:$0xff] %vm995_vm5, %v861_v10 }
 0x303   : > { %v873_v11 = vpop.permute.xlu1 %872  ;;  %v869_v12 = vpop.permute.xlu0 %868 }
 0x304   : > { %1031 = vst.msk [vmem:[#allocation9 + $0x118] sm:$0xff] %vm995_vm5, %v873_v11  ;;  %1030 = vst.msk [vmem:[#allocation9 + $0x110] sm:$0xff] %vm995_vm5, %v869_v12 }
 0x307   : > { %v881_v13 = vpop.permute.xlu1 %880  ;;  %v877_v14 = vpop.permute.xlu0 %876 }
 0x308   : > { %1033 = vst.msk [vmem:[#allocation9 + $0x128] sm:$0xff] %vm995_vm5, %v881_v13  ;;  %1032 = vst.msk [vmem:[#allocation9 + $0x120] sm:$0xff] %vm995_vm5, %v877_v14 }
 0x30b   : > { %v889_v15 = vpop.permute.xlu1 %888  ;;  %v885_v16 = vpop.permute.xlu0 %884 }
 0x30c   : > { %1035 = vst.msk [vmem:[#allocation9 + $0x138] sm:$0xff] %vm995_vm5, %v889_v15  ;;  %1034 = vst.msk [vmem:[#allocation9 + $0x130] sm:$0xff] %vm995_vm5, %v885_v16 }
 0x30f   : > { %v900_v17 = vpop.permute.xlu1 %899  ;;  %v896_v18 = vpop.permute.xlu0 %895 }
 0x310   : > { %1037 = vst.msk [vmem:[#allocation9 + $0x148] sm:$0xff] %vm995_vm5, %v900_v17  ;;  %1036 = vst.msk [vmem:[#allocation9 + $0x140] sm:$0xff] %vm995_vm5, %v896_v18 }
 0x313   : > { %v908_v19 = vpop.permute.xlu1 %907  ;;  %v904_v20 = vpop.permute.xlu0 %903 }
 0x314   : > { %1039 = vst.msk [vmem:[#allocation9 + $0x158] sm:$0xff] %vm995_vm5, %v908_v19  ;;  %1038 = vst.msk [vmem:[#allocation9 + $0x150] sm:$0xff] %vm995_vm5, %v904_v20 }
 0x317   : > { %v916_v21 = vpop.permute.xlu1 %915  ;;  %v912_v22 = vpop.permute.xlu0 %911 }
 0x318   : > { %1041 = vst.msk [vmem:[#allocation9 + $0x168] sm:$0xff] %vm995_vm5, %v916_v21  ;;  %1040 = vst.msk [vmem:[#allocation9 + $0x160] sm:$0xff] %vm995_vm5, %v912_v22 }
 0x31b   : > { %v924_v23 = vpop.permute.xlu1 %923  ;;  %v920_v24 = vpop.permute.xlu0 %919 }
 0x31c   : > { %1043 = vst.msk [vmem:[#allocation9 + $0x178] sm:$0xff] %vm995_vm5, %v924_v23  ;;  %1042 = vst.msk [vmem:[#allocation9 + $0x170] sm:$0xff] %vm995_vm5, %v920_v24 }
 0x31f   : > { %v935_v25 = vpop.permute.xlu1 %934  ;;  %v931_v26 = vpop.permute.xlu0 %930 }
 0x320   : > { %1045 = vst.msk [vmem:[#allocation9 + $0x188] sm:$0xff] %vm995_vm5, %v935_v25  ;;  %1044 = vst.msk [vmem:[#allocation9 + $0x180] sm:$0xff] %vm995_vm5, %v931_v26 }
 0x323   : > { %v943_v27 = vpop.permute.xlu1 %942  ;;  %v939_v28 = vpop.permute.xlu0 %938 }
 0x324   : > { %1047 = vst.msk [vmem:[#allocation9 + $0x198] sm:$0xff] %vm995_vm5, %v943_v27  ;;  %1046 = vst.msk [vmem:[#allocation9 + $0x190] sm:$0xff] %vm995_vm5, %v939_v28 }
 0x327   : > { %v951_v29 = vpop.permute.xlu1 %950  ;;  %v947_v30 = vpop.permute.xlu0 %946 }
 0x328   : > { %1049 = vst.msk [vmem:[#allocation9 + $0x1a8] sm:$0xff] %vm995_vm5, %v951_v29  ;;  %1048 = vst.msk [vmem:[#allocation9 + $0x1a0] sm:$0xff] %vm995_vm5, %v947_v30 }
 0x32b   : > { %v959_v31 = vpop.permute.xlu1 %958  ;;  %v955_v32 = vpop.permute.xlu0 %954 }
 0x32c   : > { %1051 = vst.msk [vmem:[#allocation9 + $0x1b8] sm:$0xff] %vm995_vm5, %v959_v31  ;;  %1050 = vst.msk [vmem:[#allocation9 + $0x1b0] sm:$0xff] %vm995_vm5, %v955_v32 }
 0x32f   : > { %v970_v33 = vpop.permute.xlu1 %969  ;;  %v966_v38 = vpop.permute.xlu0 %965 }
 0x330   : > { %1053 = vst.msk [vmem:[#allocation9 + $0x1c8] sm:$0xff] %vm995_vm5, %v970_v33  ;;  %1052 = vst.msk [vmem:[#allocation9 + $0x1c0] sm:$0xff] %vm995_vm5, %v966_v38 }
 0x333   : > { %v978_v39 = vpop.permute.xlu1 %977  ;;  %v974_v40 = vpop.permute.xlu0 %973 }
 0x334   : > { %1055 = vst.msk [vmem:[#allocation9 + $0x1d8] sm:$0xff] %vm995_vm5, %v978_v39  ;;  %1054 = vst.msk [vmem:[#allocation9 + $0x1d0] sm:$0xff] %vm995_vm5, %v974_v40 }
 0x337   : > { %v986_v41 = vpop.permute.xlu1 %985  ;;  %v982_v42 = vpop.permute.xlu0 %981 }
 0x338   : > { %1057 = vst.msk [vmem:[#allocation9 + $0x1e8] sm:$0xff] %vm995_vm5, %v986_v41  ;;  %1056 = vst.msk [vmem:[#allocation9 + $0x1e0] sm:$0xff] %vm995_vm5, %v982_v42 }
 0x33b   : > { %v712_v43 = vpop.permute.xlu1 %711  ;;  %v700_v45 = vpop.permute.xlu0 %699 }
 0x33c   : > { %714 = vst.msk [vmem:[#allocation8] sm:$0xff] %vm512_vm3, %v712_v43  ;;  %702 = vst.msk [vmem:[#allocation6] sm:$0xff] %vm512_vm3, %v700_v45 }
 0x33f   : > { %v994_v46 = vpop.permute.xlu1 %993  ;;  %v990_v47 = vpop.permute.xlu0 %989 }
 0x340   : > { %1059 = vst.msk [vmem:[#allocation9 + $0x1f8] sm:$0xff] %vm995_vm5, %v994_v46  ;;  %1058 = vst.msk [vmem:[#allocation9 + $0x1f0] sm:$0xff] %vm995_vm5, %v990_v47 }
 0x341 LB: >> { %v2423_v49 = vmov 0   ;;  %s1974_s16 = sshll.u32 %s2412_s24, 8  ;;  %s2869_s23 = sshll.u32 %s2412_s24, 2  ;;  %v2874_v19 = vld [vmem:[%s3110_s7 + $0x8] sm:$0xff]  ;;  %v2883_v21 = vld [vmem:[%s3110_s7] sm:$0xff]  ;;  %v2892_v25 = vld [vmem:[#allocation14] sm:$0xff]  ;;  %s2412_s24 = sphi %s2816_s24, %s1069_s24   ;;  %v2408_v34 = vphi %v2725_v34, %v3152_v34   ;;  %v2404_v35 = vphi %v2727_v35, %v3151_v35   ;;  %v2400_v36 = vphi %v2729_v36, %v3150_v36   ;;  %v2396_v37 = vphi %v2732_v37, %v3149_v37  }
 0x342   : >> { %2177 = vset.pattern.permute.xlu1 %v2423_v49  ;;  %2176 = vset.pattern.permute.xlu0 %v2423_v49  ;;  %s2834_s30 = scalar_lea.vmem [#allocation9], %s1974_s16  ;;  %s2877_s14 = scalar_lea.vmem [#allocation5], %s2869_s23  ;;  %v2885_v22 = vld [vmem:[#allocation14 + $0x8] sm:$0xff]  ;;  %vm1193_vm6 = vcmask 516096  }
 0x343   : >> { %v1886_v20 = vld [vmem:[%s2877_s14] ss:$0 sm:$0xff]  ;;  %s2889_s29 = scalar_lea.vmem [#allocation6], %s2869_s23  ;;  %s2898_s26 = scalar_lea.vmem [#allocation8], %s2869_s23 }
 0x344   : >> { %v1086_v23 = vmul.f32 %v1886_v20, %v2874_v19  ;;  %v1887_v24 = vld [vmem:[%s2889_s29] ss:$0 sm:$0xff]  ;;  %v1085_v26 = vmul.f32 %v1886_v20, %v2883_v21  ;;  %s2902_s13 = scalar_lea.vmem [#allocation7], %s2869_s23  ;;  %s2951_s19 = scalar_lea.vmem [#allocation10], %s2869_s23 }
 0x345   : >> { %v1098_v27 = vmul.f32 %v1887_v24, %v2885_v22  ;;  %v1097_v28 = vmul.f32 %v1887_v24, %v2892_v25  ;;  %v1890_v43 = vld [vmem:[%s2898_s26] ss:$0 sm:$0xff]  ;;  %v1919_v24 = vld [vmem:[%s2877_s14 + $0x2] ss:$0 sm:$0xff]  ;;  %s1069_s24 = sadd.s32 1, %s2412_s24  }
 0x346   : >> { %v1089_v29 = vmul.f32 1.442695, %v1086_v23  ;;  %v1087_v30 = vmul.f32 1.442695, %v1085_v26  ;;  %v1889_v45 = vld [vmem:[%s2902_s13] ss:$0 sm:$0xff] }
 0x347   : >> { %v1109_v50 = vld [vmem:[%s2834_s30 + $0x20] sm:$0xff]  ;;  %v1110_v52 = vld [vmem:[%s2834_s30 + $0x28] sm:$0xff]  ;;  %v1108_v54 = vld [vmem:[%s2834_s30 + $0x18] sm:$0xff]  ;;  %v1101_v31 = vmul.f32 1.442695, %v1098_v27  ;;  %p1066_p12 = scmp.ge.s32.totalorder %s1069_s24, 2  }
 0x348   : >> { %v1105_v51 = vld [vmem:[%s2834_s30] sm:$0xff]  ;;  %1141 = vperm.xlu1 %2177, %v1109_v50   ;;  %v1106_v53 = vld [vmem:[%s2834_s30 + $0x8] sm:$0xff]  ;;  %v1107_v55 = vld [vmem:[%s2834_s30 + $0x10] sm:$0xff]  ;;  %v1099_v32 = vmul.f32 1.442695, %v1097_v28  ;;  %2178 = vpow2.f32 %v1089_v29  ;;  %1994 = vmatprep.subr.bf16.mxu0 (%p1066_p12), %v2419_v2  ;;  %s1667_s16 = sshll.u32 (%p1066_p12), %s431_s15, 4  ;;  %s3047_s16 = int_to_ptr.vmem [resolvable:$true] %s1667_s16 }
 0x349   : >> { %1119 = vperm.xlu0 %2176, %v1105_v51   ;;  %v1112_v56 = vld [vmem:[%s2834_s30 + $0x38] sm:$0xff]  ;;  %v1111_v57 = vld [vmem:[%s2834_s30 + $0x30] sm:$0xff]  ;;  %v1900_v58 = vld [vmem:[%s2834_s30 + $0x48] sm:$0xff]  ;;  %2180 = vpow2.f32 %v1087_v30  ;;  %2002 = vmatprep.mubr.msk.bf16.mxu0 (%p1066_p12), %vm2420_vm1, %v2419_v2  ;;  %s3154_s23 = sld [smem:[#allocation30_spill]] (%p1066_p12)  ;;  %s2424_s27 = smov (%p1066_p12), [#allocation16]  }
 0x34a   : >> { %v1899_v59 = vld [vmem:[%s2834_s30 + $0x40] sm:$0xff]  ;;  %v1904_v60 = vld [vmem:[%s2834_s30 + $0x68] sm:$0xff]  ;;  %v1902_v7 = vld [vmem:[%s2834_s30 + $0x58] sm:$0xff]  ;;  %2182 = vpow2.f32 %v1101_v31 }
 0x34b   : >> { %v1903_v61 = vld [vmem:[%s2834_s30 + $0x60] sm:$0xff]  ;;  %v1924_v62 = vld [vmem:[%s2834_s30 + $0x88] sm:$0xff]  ;;  %v1901_v8 = vld [vmem:[%s2834_s30 + $0x50] sm:$0xff]  ;;  %2184 = vpow2.f32 %v1099_v32  ;;  %v1327_v32 = vmul.f32 %v1919_v24, %v2874_v19 }
 0x34c   : >> { %1146 = vperm.xlu1 %2177, %v1110_v52   ;;  %v1923_v63 = vld [vmem:[%s2834_s30 + $0x80] sm:$0xff]  ;;  %v1928_v0 = vld [vmem:[%s2834_s30 + $0xa8] sm:$0xff]  ;;  %v1906_v9 = vld [vmem:[%s2834_s30 + $0x78] sm:$0xff] }
 0x34d   : >> { %1124 = vperm.xlu0 %2176, %v1106_v53   ;;  %v1927_v1 = vld [vmem:[%s2834_s30 + $0xa0] sm:$0xff]  ;;  %v1948_v3 = vld [vmem:[%s2834_s30 + $0xc8] sm:$0xff]  ;;  %v1905_v10 = vld [vmem:[%s2834_s30 + $0x70] sm:$0xff] }
 0x34e   : >> { %v1947_v4 = vld [vmem:[%s2834_s30 + $0xc0] sm:$0xff]  ;;  %v1952_v5 = vld [vmem:[%s2834_s30 + $0xe8] sm:$0xff]  ;;  %v1926_v11 = vld [vmem:[%s2834_s30 + $0x98] sm:$0xff] }
 0x34f   : >> { %v1951_v6 = vld [vmem:[%s2834_s30 + $0xe0] sm:$0xff]  ;;  %v1925_v12 = vld [vmem:[%s2834_s30 + $0x90] sm:$0xff]  ;;  %v1930_v13 = vld [vmem:[%s2834_s30 + $0xb8] sm:$0xff]  ;;  %s3155_s28 = smov (%p1066_p12), %s3154_s23 }
 0x350   : >> { %1164 = vperm.xlu1 %2177, %v1108_v54   ;;  %v1929_v14 = vld [vmem:[%s2834_s30 + $0xb0] sm:$0xff]  ;;  %v1950_v15 = vld [vmem:[%s2834_s30 + $0xd8] sm:$0xff]  ;;  %v1920_v31 = vld [vmem:[%s2889_s29 + $0x2] ss:$0 sm:$0xff] }
 0x351   : >> { %1159 = vperm.xlu0 %2176, %v1107_v55   ;;  %v1949_v16 = vld [vmem:[%s2834_s30 + $0xd0] sm:$0xff]  ;;  %v1954_v17 = vld [vmem:[%s2834_s30 + $0xf8] sm:$0xff] }
 0x352   : >> { %v1953_v18 = vld [vmem:[%s2834_s30 + $0xf0] sm:$0xff]  ;;  %v2179_v39 = vpop.eup %2178 }
 0x353   : >> { %v2181_v40 = vpop.eup %2180  ;;  %v1114_v50 = vmul.f32 %v2404_v35, %v2179_v39  ;;  %v1339_v39 = vmul.f32 %v1920_v31, %v2885_v22 }
 0x354   : >> { %1176 = vperm.xlu1 %2177, %v1112_v56   ;;  %v2183_v41 = vpop.eup %2182  ;;  %v1113_v51 = vmul.f32 %v2408_v34, %v2181_v40  ;;  %v1943_v40 = vld [vmem:[%s2877_s14 + $0x3] ss:$0 sm:$0xff] }
 0x355   : >> { %1171 = vperm.xlu0 %2176, %v1111_v57   ;;  %v2185_v42 = vpop.eup %2184  ;;  %v1136_v52 = vmul.f32 %v2396_v37, %v2183_v41 }
 0x356   : >> { %v1135_v56 = vmul.f32 %v2400_v36, %v2185_v42 }
 0x358   : >> { %1245 = vperm.xlu1 %2177, %v1900_v58  }
 0x359   : >> { %1240 = vperm.xlu0 %2176, %v1899_v59  }
 0x35c   : >> { %1267 = vperm.xlu1 %2177, %v1904_v60  }
 0x35d   : >> { %1262 = vperm.xlu0 %2176, %v1903_v61  }
 0x360   : >> { %1365 = vperm.xlu1 %2177, %v1924_v62  }
 0x361   : >> { %1360 = vperm.xlu0 %2176, %v1923_v63  }
 0x364   : >> { %1387 = vperm.xlu1 %2177, %v1928_v0  }
 0x365   : >> { %1382 = vperm.xlu0 %2176, %v1927_v1  }
 0x368   : >> { %1485 = vperm.xlu1 %2177, %v1948_v3  }
 0x369   : >> { %1480 = vperm.xlu0 %2176, %v1947_v4   ;;  %v1895_v4 = vld [vmem:[%s2877_s14 + $0x1] ss:$0 sm:$0xff]  ;;  %s2274_s14 = sshll.u32 (%p1066_p12), %s2424_s27, 4  ;;  %s2275_s14 = int_to_ptr.vmem [resolvable:$false] %s2274_s14 }
 0x36a   : > { %s2276_s25 = scalar_lea.vmem (%p1066_p12), %s2275_s14, 256  ;;  %p2277_p7 = scmp.lt.s32.totalorder (%p1066_p12), %s3047_s16, %s2275_s14 }
 0x36c   : >> { %1507 = vperm.xlu1 %2177, %v1952_v5  }
 0x36d   : >> { %1502 = vperm.xlu0 %2176, %v1951_v6  }
 0x370   : >> { %1285 = vperm.xlu1 %2177, %v1902_v7  }
 0x371   : >> { %1280 = vperm.xlu0 %2176, %v1901_v8  }
 0x374   : >> { %1297 = vperm.xlu1 %2177, %v1906_v9   ;;  %v1207_v9 = vmul.f32 %v1895_v4, %v2874_v19 }
 0x375   : >> { %1292 = vperm.xlu0 %2176, %v1905_v10   ;;  %v1896_v10 = vld [vmem:[%s2889_s29 + $0x1] ss:$0 sm:$0xff] }
 0x378   : >> { %1405 = vperm.xlu1 %2177, %v1926_v11  }
 0x379   : >> { %1400 = vperm.xlu0 %2176, %v1925_v12   ;;  %v1206_v12 = vmul.f32 %v1895_v4, %v2883_v21 }
 0x37b   : >> { %v1208_v23 = vmul.f32 1.442695, %v1206_v12 }
 0x37c   : >> { %1417 = vperm.xlu1 %2177, %v1930_v13   ;;  %v1219_v13 = vmul.f32 %v1896_v10, %v2885_v22 }
 0x37d   : >> { %1412 = vperm.xlu0 %2176, %v1929_v14  }
 0x37e   : >> { %v1222_v26 = vmul.f32 1.442695, %v1219_v13 }
 0x380   : >> { %1525 = vperm.xlu1 %2177, %v1950_v15  }
 0x381   : >> { %1520 = vperm.xlu0 %2176, %v1949_v16  }
 0x384   : >> { %1537 = vperm.xlu1 %2177, %v1954_v17   ;;  %v1218_v17 = vmul.f32 %v1896_v10, %v2892_v25 }
 0x385   : >> { %1532 = vperm.xlu0 %2176, %v1953_v18   ;;  %v1210_v18 = vmul.f32 1.442695, %v1207_v9 }
 0x386   : >> { %v1220_v30 = vmul.f32 1.442695, %v1218_v17 }
 0x387   : >> { %2186 = vpow2.f32 %v1210_v18 }
 0x388   : >> { %2188 = vpow2.f32 %v1208_v23 }
 0x389   : >> { %2190 = vpow2.f32 %v1222_v26  ;;  %1570 = vrot.lane.b32.xlu0 (%p1066_p12), %v2669_v44, %s2422_s12  ;;  %v2212_v44 = vld [vmem:[%s3113_s10 + $0x10] sm:$0xff] (%p1066_p12)  }
 0x38a   : >> { %2192 = vpow2.f32 %v1220_v30 }
 0x3c7   : >> { %v1142_v33 = vpop.permute.xlu1 %1141 }
 0x3c8   : >> { %v1120_v38 = vpop.permute.xlu0 %1119  ;;  %v1153_v53 = vmul.f32 %v1890_v43, %v1142_v33 }
 0x3c9   : >> { %v1131_v54 = vmul.f32 %v1889_v45, %v1120_v38  ;;  %v1326_v38 = vmul.f32 %v1919_v24, %v2883_v21  ;;  %v1936_v24 = vld [vmem:[%s2898_s26 + $0x2] ss:$0 sm:$0xff] }
 0x3ca   : >> { %v2915_v35 = vadd.f32 %v1153_v53, %v1135_v56  ;;  %v1446_v56 = vmul.f32 %v1943_v40, %v2883_v21 }
 0x3cb   : >> { %v1147_v46 = vpop.permute.xlu1 %1146  ;;  %v2911_v60 = vadd.f32 %v1131_v54, %v1113_v51  ;;  %v1342_v51 = vmul.f32 1.442695, %v1339_v39 }
 0x3cc   : >> { %v1125_v47 = vpop.permute.xlu0 %1124  ;;  %v1154_v55 = vmul.f32 %v1890_v43, %v1147_v46  ;;  %v1330_v46 = vmul.f32 1.442695, %v1327_v32 }
 0x3cd   : >> { %v1132_v49 = vmul.f32 %v1889_v45, %v1125_v47  ;;  %v1338_v45 = vmul.f32 %v1920_v31, %v2892_v25 }
 0x3ce   : >> { %v2913_v61 = vadd.f32 %v1154_v55, %v1136_v52  ;;  %v1944_v52 = vld [vmem:[%s2889_s29 + $0x3] ss:$0 sm:$0xff]  ;;  %2194 = vpow2.f32 %v1330_v46  ;;  %s3153_s29 = sld [smem:[#allocation26_spill]] (%p1066_p12) }
 0x3cf   : >> { %v1165_v57 = vpop.permute.xlu1 %1164  ;;  %v2909_v59 = vadd.f32 %v1132_v49, %v1114_v50  ;;  %v1328_v49 = vmul.f32 1.442695, %v1326_v38  ;;  %v1447_v50 = vmul.f32 %v1943_v40, %v2874_v19  ;;  %v1340_v55 = vmul.f32 1.442695, %v1338_v45 }
 0x3d0   : >> { %v1160_v58 = vpop.permute.xlu0 %1159  ;;  %v1459_v19 = vmul.f32 %v1944_v52, %v2885_v22 }
 0x3d1   : >> { %v1168_v37 = vmul.f32 %v1165_v57, %v2909_v59  ;;  %v1167_v63 = vmul.f32 %v1160_v58, %v2911_v60  ;;  %2196 = vpow2.f32 %v1328_v49  ;;  %v1450_v57 = vmul.f32 1.442695, %v1447_v50  ;;  %v2187_v58 = vpop.eup %2186 }
 0x3d2   : >> { %2198 = vpow2.f32 %v1342_v51  ;;  %v1462_v4 = vmul.f32 1.442695, %v1459_v19  ;;  %v1235_v13 = vmul.f32 %v2187_v58, %v2909_v59 }
 0x3d3   : >> { %v1177_v34 = vpop.permute.xlu1 %1176  ;;  %2200 = vpow2.f32 %v1340_v55 }
 0x3d4   : >> { %v1172_v62 = vpop.permute.xlu0 %1171  ;;  %v1180_v0 = vmul.f32 %v1177_v34, %v2913_v61  ;;  %v2189_v34 = vpop.eup %2188  ;;  %2202 = vpow2.f32 %v1450_v57  ;;  %v1957_v57 = vld [vmem:[%s2902_s13 + $0x3] ss:$0 sm:$0xff]  ;;  %p3156_p4 = scmp.ne.s32.totalorder (%p1066_p12), %s3153_s29, 0 }
 0x3d5   : >> { %v1179_v36 = vmul.f32 %v1172_v62, %v2915_v35  ;;  %v1909_v62 = vld [vmem:[%s2902_s13 + $0x1] ss:$0 sm:$0xff] }
 0x3d6   : >> { %v1182_v1 = vsub.f32 %v1168_v37, %v1180_v0  ;;  %v1912_v37 = vld [vmem:[%s2898_s26 + $0x1] ss:$0 sm:$0xff] }
 0x3d7   : >> { %v1181_v3 = vsub.f32 %v1167_v63, %v1179_v36  ;;  %v2922_v5 = vpop.permute.xlu1 %1245  ;;  %v1448_v36 = vmul.f32 1.442695, %v1446_v56 }
 0x3d8   : >> { %v2924_v6 = vpop.permute.xlu0 %1240  ;;  %v1184_v7 = vsel %vm512_vm3, %v1182_v1, 0.0  ;;  %v1458_v1 = vmul.f32 %v1944_v52, %v2892_v25  ;;  %v1253_v22 = vmul.f32 %v1909_v62, %v2922_v5  ;;  %v1234_v25 = vmul.f32 %v2189_v34, %v2911_v60  ;;  %v1933_v5 = vld [vmem:[%s2902_s13 + $0x2] ss:$0 sm:$0xff] }
 0x3d9   : >> { %v1183_v8 = vsel %vm512_vm3, %v1181_v3, 0.0  ;;  %v2191_v3 = vpop.eup %2190  ;;  %2204 = vpow2.f32 %v1448_v36 }
 0x3da   : >> { %v1185_v11 = vadd.f32 %v1184_v7, %v1183_v8  ;;  %v2193_v21 = vpop.eup %2192  ;;  %v1252_v7 = vmul.f32 %v1909_v62, %v2924_v6  ;;  %v1460_v12 = vmul.f32 1.442695, %v1458_v1  ;;  %2206 = vpow2.f32 %v1462_v4  ;;  %v1960_v62 = vld [vmem:[%s2898_s26 + $0x3] ss:$0 sm:$0xff]  ;;  %s1970_s26 = sshll.u32 (%p1066_p12), %s2380_s21, 1  ;;  %s2270_s21 = scalar_lea.vmem (%p1066_p12), %s3047_s16, 128 }
 0x3db   : >> { %v1268_v15 = vpop.permute.xlu1 %1267  ;;  %v1256_v17 = vmul.f32 %v2193_v21, %v2915_v35  ;;  %v2195_v18 = vpop.eup %2194  ;;  %s1663_s13 = sadd.s32 (%p1066_p12), %s2376_s20, %s1970_s26  ;;  %s1652_s20 = scalar_lea.sflag (%p1066_p12), [#allocation13], %s429_s11 }
 0x3dc   : >> { %v1186_v14 = vrot.slane %v1185_v11, 4  ;;  %v1263_v16 = vpop.permute.xlu0 %1262  ;;  %v1275_v8 = vmul.f32 %v1912_v37, %v1268_v15  ;;  %v1254_v6 = vadd.f32 %v1252_v7, %v1234_v25  ;;  %v2197_v23 = vpop.eup %2196  ;;  %2208 = vpow2.f32 %v1460_v12  ;;  %p2271_p1 = scmp.ne.s32.totalorder (%p1066_p12), %s3047_s16, %s2270_s21  ;;  %p2278_p9 = scmp.lt.s32.totalorder (%p1066_p12), %s2276_s25, %s2270_s21 }
 0x3dd   : >> { %v1274_v9 = vmul.f32 %v1912_v37, %v1263_v16  ;;  %v2199_v30 = vpop.eup %2198 }
 0x3de   : >> { %v1187_v20 = vadd.f32 %v1186_v14, %v1185_v11  ;;  %v1257_v14 = vmul.f32 %v2191_v3, %v2913_v61  ;;  %v2201_v61 = vpop.eup %2200  ;;  %v1354_v50 = vmul.f32 %v2197_v23, %v1254_v6  ;;  %p2272_p5 = pnand (%p1066_p12), %p2271_p1, %p3156_p4  ;;  %p2279_p11 = por (%p1066_p12), %p2278_p9, %p2277_p7 }
 0x3df   : >> { %v2934_v28 = vpop.permute.xlu1 %1365  ;;  %v1276_v16 = vadd.f32 %v1274_v9, %v1256_v17  ;;  %v2203_v45 = vpop.eup %2202 }
 0x3e0   : >> { %v1188_v27 = vrot.slane %v1187_v20, 2  ;;  %v2936_v29 = vpop.permute.xlu0 %1360  ;;  %v1277_v15 = vadd.f32 %v1275_v8, %v1257_v14  ;;  %v1373_v35 = vmul.f32 %v1933_v5, %v2934_v28  ;;  %p2273_p6 = pneg (%p1066_p12), %p2272_p5 }
 0x3e1   : >> { %v1376_v55 = vmul.f32 %v2201_v61, %v1276_v16 }
 0x3e2   : >> { %v1189_v33 = vadd.f32 %v1188_v27, %v1187_v20  ;;  %v1255_v20 = vadd.f32 %v1253_v22, %v1235_v13  ;;  %v1377_v28 = vmul.f32 %v2199_v30, %v1277_v15  ;;  %p2280_p13 = pnand (%p1066_p12), %p2279_p11, %p2273_p6 }
 0x3e3   : >> { %v2943_v42 = vpop.permute.xlu1 %1387 }
 0x3e4   : >> { %v1190_v41 = vrot.slane %v1189_v33, 1  ;;  %v2945_v43 = vpop.permute.xlu0 %1382  ;;  %v1395_v38 = vmul.f32 %v1936_v24, %v2943_v42 }
 0x3e5   : >> { %v1394_v39 = vmul.f32 %v1936_v24, %v2945_v43 }
 0x3e6   : >> { %v1191_v47 = vadd.f32 %v1190_v41, %v1189_v33  ;;  %v1372_v33 = vmul.f32 %v1933_v5, %v2936_v29  ;;  %v2205_v29 = vpop.eup %2204  ;;  %v1397_v43 = vadd.f32 %v1395_v38, %v1377_v28 }
 0x3e7   : >> { %v2955_v53 = vpop.permute.xlu1 %1485  ;;  %v1396_v58 = vadd.f32 %v1394_v39, %v1376_v55  ;;  %v2207_v34 = vpop.eup %2206 }
 0x3e8   : >> { %1194 = vst.msk [vmem:[%s2951_s19] sm:$0x1] %vm1193_vm6, %v1191_v47  ;;  %v2957_v54 = vpop.permute.xlu0 %1480  ;;  %v1355_v47 = vmul.f32 %v2195_v18, %v1255_v20  ;;  %v1374_v19 = vadd.f32 %v1372_v33, %v1354_v50  ;;  %v2209_v7 = vpop.eup %2208  ;;  %v1493_v8 = vmul.f32 %v1957_v57, %v2955_v53 }
 0x3e9   : >> { %v1492_v9 = vmul.f32 %v1957_v57, %v2957_v54  ;;  %v1496_v53 = vmul.f32 %v2209_v7, %v1396_v58 }
 0x3ea   : >> { %v1375_v42 = vadd.f32 %v1373_v35, %v1355_v47 }
 0x3eb   : >> { %v2963_v63 = vpop.permute.xlu1 %1507 }
 0x3ec   : >> { %v2965_v0 = vpop.permute.xlu0 %1502  ;;  %v1475_v18 = vmul.f32 %v2203_v45, %v1375_v42 }
 0x3ed   : >> { %v1514_v12 = vmul.f32 %v1960_v62, %v2965_v0 }
 0x3ee   : >> { %v1495_v24 = vadd.f32 %v1493_v8, %v1475_v18  }
 0x3ef   : >> { %v1286_v10 = vpop.permute.xlu1 %1285  ;;  %v1516_v0 = vadd.f32 %v1514_v12, %v1496_v53  }
 0x3f0   : >> { %v1281_v11 = vpop.permute.xlu0 %1280  ;;  %v1289_v59 = vmul.f32 %v1286_v10, %v1255_v20  ;;  %v1474_v20 = vmul.f32 %v2205_v29, %v1374_v19  ;;  %1556 = vst.msk [vmem:[#allocation2 + $0x8] sm:$0xff] (%p1066_p12), %vm512_vm3, %v1495_v24 }
 0x3f1   : >> { %v1288_v31 = vmul.f32 %v1281_v11, %v1254_v6  ;;  %v1515_v11 = vmul.f32 %v1960_v62, %v2963_v63  ;;  %1557 = vst.msk [vmem:[#allocation3] sm:$0xff] (%p1066_p12), %vm512_vm3, %v1516_v0 }
 0x3f2   : >> { %v1494_v63 = vadd.f32 %v1492_v9, %v1474_v20  }
 0x3f3   : >> { %v1298_v26 = vpop.permute.xlu1 %1297 }
 0x3f4   : >> { %v1293_v27 = vpop.permute.xlu0 %1292  ;;  %v1301_v60 = vmul.f32 %v1298_v26, %v1277_v15  ;;  %1555 = vst.msk [vmem:[#allocation2] sm:$0xff] (%p1066_p12), %vm512_vm3, %v1494_v63 }
 0x3f5   : >> { %v1300_v32 = vmul.f32 %v1293_v27, %v1276_v16  ;;  %v1497_v16 = vmul.f32 %v2207_v34, %v1397_v43  ;;  %v3152_v34 = vmov %v1494_v63 }
 0x3f6   : >> { %v1303_v40 = vsub.f32 %v1289_v59, %v1301_v60 }
 0x3f7   : >> { %v1302_v41 = vsub.f32 %v1288_v31, %v1300_v32  ;;  %v1406_v46 = vpop.permute.xlu1 %1405  ;;  %v1517_v26 = vadd.f32 %v1515_v11, %v1497_v16  }
 0x3f8   : >> { %v1401_v49 = vpop.permute.xlu0 %1400  ;;  %v1305_v51 = vsel %vm512_vm3, %v1303_v40, 0.0  ;;  %v1409_v3 = vmul.f32 %v1406_v46, %v1375_v42  ;;  %v2210_v42 = vld [vmem:[%s3113_s10] sm:$0xff] (%p1066_p12)  }
 0x3f9   : >> { %v1304_v52 = vsel %vm512_vm3, %v1302_v41, 0.0  ;;  %v1408_v21 = vmul.f32 %v1401_v49, %v1374_v19  ;;  %1558 = vst.msk [vmem:[#allocation3 + $0x8] sm:$0xff] (%p1066_p12), %vm512_vm3, %v1517_v26  ;;  %1995 = vmatpush3.bf16.msra.mxu0 (%p1066_p12), %v2210_v42  ;;  %v2211_v19 = vld [vmem:[%s3113_s10 + $0x8] sm:$0xff] (%p1066_p12)  }
 0x3fa   : >> { %v1306_v56 = vadd.f32 %v1305_v51, %v1304_v52  ;;  %1996 = vmatprep.subr.bf16.mxu0 (%p1066_p12), %v2419_v2 }
 0x3fb   : >> { %v1418_v36 = vpop.permute.xlu1 %1417 }
 0x3fc   : >> { %v1307_v37 = vrot.slane %v1306_v56, 4  ;;  %v1413_v1 = vpop.permute.xlu0 %1412  ;;  %v1421_v4 = vmul.f32 %v1418_v36, %v1397_v43  ;;  %v3150_v36 = vmov %v1516_v0  ;;  %v2213_v43 = vld [vmem:[%s3113_s10 + $0x18] sm:$0xff] (%p1066_p12)  }
 0x3fd   : >> { %v1420_v22 = vmul.f32 %v1413_v1, %v1396_v58  ;;  %1997 = vmatpush3.bf16.msra.mxu0 (%p1066_p12), %v2211_v19  ;;  %v1963_v58 = vld [vmem:[%s3112_s9] ss:$0 sm:$0xff] (%p1066_p12) }
 0x3fe   : >> { %v1308_v10 = vadd.f32 %v1307_v37, %v1306_v56  ;;  %v1423_v13 = vsub.f32 %v1409_v3, %v1421_v4  ;;  %v3149_v37 = vmov %v1517_v26  ;;  %1998 = vmatprep.subr.bf16.mxu0 (%p1066_p12), %v2419_v2  ;;  %v1567_v34 = vmul.f32 (%p1066_p12), %v1963_v58, %v2671_v48 }
 0x3ff   : >> { %v1422_v25 = vsub.f32 %v1408_v21, %v1420_v22  ;;  %v1526_v17 = vpop.permute.xlu1 %1525 }
 0x400   : >> { %v1309_v14 = vrot.slane %v1308_v10, 2  ;;  %v1521_v5 = vpop.permute.xlu0 %1520  ;;  %v1425_v6 = vsel %vm512_vm3, %v1423_v13, 0.0  ;;  %v1529_v60 = vmul.f32 %v1526_v17, %v1495_v24 }
 0x401   : >> { %v1424_v15 = vsel %vm512_vm3, %v1422_v25, 0.0  ;;  %v1528_v32 = vmul.f32 %v1521_v5, %v1494_v63  ;;  %1999 = vmatpush3.bf16.msra.mxu0 (%p1066_p12), %v2212_v44 }
 0x402   : >> { %v1310_v23 = vadd.f32 %v1309_v14, %v1308_v10  ;;  %v1426_v54 = vadd.f32 %v1425_v6, %v1424_v15  ;;  %2000 = vmatprep.subr.bf16.mxu0 (%p1066_p12), %v2419_v2 }
 0x403   : >> { %v1538_v59 = vpop.permute.xlu1 %1537 }
 0x404   : >> { %v1311_v27 = vrot.slane %v1310_v23, 1  ;;  %v1427_v30 = vrot.slane %v1426_v54, 4  ;;  %v1533_v31 = vpop.permute.xlu0 %1532  ;;  %v1541_v61 = vmul.f32 %v1538_v59, %v1517_v26 }
 0x405   : >> { %v1540_v35 = vmul.f32 %v1533_v31, %v1516_v0  ;;  %2001 = vmatpush3.bf16.msra.mxu0 (%p1066_p12), %v2213_v43 }
 0x406   : >> { %v1312_v33 = vadd.f32 %v1311_v27, %v1310_v23  ;;  %v1428_v38 = vadd.f32 %v1427_v30, %v1426_v54  ;;  %v1543_v39 = vsub.f32 %v1529_v60, %v1541_v61 }
 0x407   : >> { %v1542_v40 = vsub.f32 %v1528_v32, %v1540_v35  ;;  %v3151_v35 = vmov %v1495_v24 }
 0x408   : >> { %1914 = vst.msk [vmem:[%s2951_s19 + $0x1] sm:$0x1] %vm1193_vm6, %v1312_v33  ;;  %v1429_v41 = vrot.slane %v1428_v38, 2  ;;  %v1545_v45 = vsel %vm512_vm3, %v1543_v39, 0.0  ;;  %v1571_v36 = vpop.permute.xlu0 (%p1066_p12), %1570 }
 0x409   : >> { %v1544_v46 = vsel %vm512_vm3, %v1542_v40, 0.0 }
 0x40a   : >> { %v1430_v47 = vadd.f32 %v1429_v41, %v1428_v38  ;;  %v1546_v49 = vadd.f32 %v1545_v45, %v1544_v46 }
 0x40c   : >> { %v1431_v50 = vrot.slane %v1430_v47, 1  ;;  %v1547_v51 = vrot.slane %v1546_v49, 4 }
 0x40e   : >> { %v1432_v52 = vadd.f32 %v1431_v50, %v1430_v47  ;;  %v1548_v28 = vadd.f32 %v1547_v51, %v1546_v49 }
 0x410   : >> { %1938 = vst.msk [vmem:[%s2951_s19 + $0x2] sm:$0x1] %vm1193_vm6, %v1432_v52  ;;  %v1549_v55 = vrot.slane %v1548_v28, 2 }
 0x412   : >> { %v1550_v29 = vadd.f32 %v1549_v55, %v1548_v28  ;;  %1068 = sbr.rel (!%p1066_p12) target bundleno = 833 (0x341), region = 143 }
 0x414   : >> { %v1551_v56 = vrot.slane %v1550_v29, 1 }
 0x416   : >> { %v1552_v57 = vadd.f32 %v1551_v56, %v1550_v29 }
 0x418   : >> { %1962 = vst.msk [vmem:[%s2951_s19 + $0x3] sm:$0x1] %vm1193_vm6, %v1552_v57  ;;  %s1971_s19 = sshll.u32 (%p1066_p12), %s1663_s13, 7 }
 0x419   : > { %s3045_s12 = scalar_lea.hbm %s3154_s23, %s1971_s19 }
 0x41f   : > { %v1559_v62 = vld [vmem:[#allocation10] sm:$0xff] }
 0x420   : > { %v1568_v37 = vadd.f32 %v1567_v34, %v1559_v62 }
 0x422   : > { %v1573_v1 = vmul.f32 %v1571_v36, %v1568_v37 }
 0x424   : > { %v1574_v3 = vpack.c.bf16 %v1573_v1, %v1573_v1 }
 0x426   : > { %2003 = vmatmul.mubr.msk.bf16.vlgmr.msra.gmra.mrb[4].mxu0 %vm512_vm3, %v1574_v3 }
 0x4f9   : > { %v1644_v2 = vpop.f32.mrb[4].mxu0 }
 0x4fa   : > { %1650 = vst.msk [vmem:[%s431_s15] sm:$0xff] %vm468_vm2, %v1644_v2  ;;  %v2004_v48 = vpop.f32.mrb[5].mxu0 }
 0x4fb   : > { %v1647_v21 = vpop.f32.mrb[6].mxu0 }
 0x4fc   : > { %2283 = shalt.err (!%p2280_p13)
}
 0x4fd   : > { %s2284_s11 = scalar_lea.hbm %s3045_s12, 128  ;;  %s2288_s22 = scalar_lea.hbm %s3155_s28, 512 }
 0x4fe   : > { %p2285_p3 = scmp.ne.s32.totalorder %s3045_s12, %s2284_s11  ;;  %p2289_p2 = scmp.lt.u32.totalorder %s3045_s12, %s3155_s28 }
 0x4ff   : > { %p2290_p10 = scmp.lt.u32.totalorder %s2288_s22, %s2284_s11  ;;  %p2292_p1 = scmp.lt.u32.totalorder %s2284_s11, %s3045_s12 }
 0x500   : > { %p2286_p8 = pnand %p2285_p3, %p3156_p4 }
 0x501   : > { %p2291_p12 = por %p2290_p10, %p2289_p2 }
 0x502   : > { %p2287_p0 = pneg %p2286_p8 }
 0x503   : > { %p2293_p5 = por %p2292_p1, %p2291_p12 }
 0x505   : > { %p2294_p6 = pnand %p2293_p5, %p2287_p0 }
 0x507   : > { %2297 = shalt.err (!%p2294_p6)
}
 0x508   : > { %2014 = dma.vmem_to_hbm [thread:$0]  (%p3156_p4), %s3047_s16, 128, %s3045_s12, %s1652_s20   ;;  %v2005_v4 = vpop.f32.mrb[7].mxu0 }
 0x509 PF: > { %s3157_s19 = sld [smem:[#allocation24_spill]]  ;;  %s3158_s30 = sld [smem:[#allocation20_spill]] }
 0x50a   : > { %s3159_s24 = sld [smem:[#allocation28_spill]] }
 0x50f   : > { %p2031_p7 = scmp.ge.s32.totalorder %s3157_s19, 2  ;;  %s1679_s23 = sand.u32 1, %s3158_s30  }
 0x510   : > { %p3160_p9 = scmp.ne.s32.totalorder %s3159_s24, 0  ;;  %s1680_s21 = scalar_lea.sflag [#allocation13], %s1679_s23 }
 0x512   : > { %p2024_p11 = pnand %p2031_p7, %p3160_p9 }
 0x514   : > { %2359 = dma.done.wait (!%p2024_p11), %s1680_s21, 128  }
 0x515   : > { %2361 = vsyncadd (!%p2024_p11), %s1680_s21, 4294967168  ;;  %s26_s24 = sadd.s32 1, %s3157_s19   ;;  %s3161_s29 = sld [smem:[#allocation21_spill]] }
 0x516   : > { %p23_p13 = scmp.ge.s32.totalorder %s26_s24, 6   ;;  %s3162_s19 = sld [smem:[#allocation29_spill]] }
 0x517   : > { %s3163_s20 = sld [smem:[#allocation22_spill]]  ;;  %s3164_s21 = sld [smem:[#allocation23_spill]] }
 0x518   : > { %s3165_s22 = sld [smem:[#allocation25_spill]]  ;;  %s3166_s23 = sld [smem:[#allocation27_spill]] }
 0x519   : > { %s3167_s17 = smov %s2368_s18  ;;  %25 = sbr.rel (!%p23_p13) target bundleno = 9 (0x9), region = 154 }
 0x51b   : > { %s3168_s18 = smov %s3161_s29 }
 0x520   :  { %1685 = vsyncpa [#allocation12], 1 }
 0x521   :  { %1687 = vsyncpa [#allocation12 + $0x1], 1 }
 0x522   :  { %1688 = vsyncpa [#allocation15], 1 }
 0x523   :  { %1689 = vsyncpa [#allocation13], 1 }
 0x524   :  { %1691 = vsyncpa [#allocation13 + $0x1], 1 }

</bundles_post_ra>
